<compile_context>
chip_gen: v5e
topology: v5e:2x2
jax: 0.10.0
libtpu: 0.0.40
codegen_flags: <defaults>
</compile_context>

<pallas_src>
import numpy as np
import jax
import jax.numpy as jnp
from jax.experimental import pallas as pl
from jax.experimental.pallas import tpu as pltpu


# --------------------------------------------------------------------------- kernel

def _cnn_fused_kernel(x_ref, w1_ref, b1_ref, w2_ref, b2_ref,
                      wf1_ref, bf1_ref, wf2_ref, bf2_ref,
                      out_ref,
                      im2a_ref, pad2_ref, im2b_ref, fcin_ref):
    nb = x_ref.shape[0]

    # ---- conv1 (3->16, 3x3, pad 1) as ONE banded matmul -----------------------
    # x_ref: (nb, 17, 204) bf16 = zero-padded 34x34x3 NHWC input with row pairs
    # merged into lanes (lane = s*102 + x*3 + c).  Each im2row row covers two
    # output image rows: K = 4 padded rows * 102 = 408.
    im2a_ref[:, :, 0:204] = x_ref[:, 0:16, :]
    im2a_ref[:, :, 204:408] = x_ref[:, 1:17, :]
    h1 = jnp.dot(im2a_ref[...].reshape(nb * 16, 408), w1_ref[...],
                 preferred_element_type=jnp.float32)                 # (nb*16, 1024)
    h1 = jnp.maximum(h1 + b1_ref[...], 0.0)

    # ---- pool1 (2x2): output cols are (y-parity, x-parity, x//2, c) -> max of
    # four lane-aligned 256-wide quarters.  Rows = (n, y//2), cols = (x//2)*16 + c.
    p1 = jnp.maximum(jnp.maximum(h1[:, 0:256], h1[:, 256:512]),
                     jnp.maximum(h1[:, 512:768], h1[:, 768:1024]))   # (nb*16, 256)

    # ---- conv2 padded input: halo-only zeroing, then interior write -----------
    z_row = jnp.zeros((nb, 1, 288), pad2_ref.dtype)
    z_col = jnp.zeros((nb, 18, 16), pad2_ref.dtype)
    pad2_ref[:, 0:1, :] = z_row
    pad2_ref[:, 17:18, :] = z_row
    pad2_ref[:, :, 0:16] = z_col
    pad2_ref[:, :, 272:288] = z_col
    pad2_ref[:, 1:17, 16:272] = p1.reshape(nb, 16, 256).astype(pad2_ref.dtype)

    # ---- conv2 (16->32, 3x3, pad 1) as ONE banded matmul (K = 3*288 = 864) ----
    im2b_ref[:, :, 0:288] = pad2_ref[:, 0:16, :]
    im2b_ref[:, :, 288:576] = pad2_ref[:, 1:17, :]
    im2b_ref[:, :, 576:864] = pad2_ref[:, 2:18, :]
    h2 = jnp.dot(im2b_ref[...].reshape(nb * 16, 864), w2_ref[...],
                 preferred_element_type=jnp.float32)                 # (nb*16, 512)
    h2 = jnp.maximum(h2 + b2_ref[...], 0.0)

    # ---- pool2: x-pool = max of the two lane-aligned halves; the y-pool is fused
    # into the flatten: 8 lane-aligned 256-wide writes into the (nb, 2048) scratch.
    hx2 = jnp.maximum(h2[:, 0:256], h2[:, 256:512])                  # (nb*16, 256)
    hx2 = hx2.reshape(nb, 16, 256)
    for yo in range(8):
        fcin_ref[:, 256 * yo:256 * (yo + 1)] = jnp.maximum(
            hx2[:, 2 * yo, :], hx2[:, 2 * yo + 1, :]).astype(fcin_ref.dtype)

    # ---- fc head: fc1 (2048->128) + ReLU, fc2 (128->10) -----------------------
    g = jnp.dot(fcin_ref[...], wf1_ref[...], preferred_element_type=jnp.float32)
    g = jnp.maximum(g + bf1_ref[...], 0.0)
    logits = jnp.dot(g.astype(jnp.bfloat16), wf2_ref[...],
                     preferred_element_type=jnp.float32)
    out_ref[...] = logits + bf2_ref[...]


# --------------------------------------------------------------------------- wrapper

def _full_spec(arr):
    nd = arr.ndim
    return pl.BlockSpec(arr.shape, lambda i, _nd=nd: (0,) * _nd)


def cnn_forward_pallas(x_grouped, kp, nb):
    n = x_grouped.shape[0]
    wb = [kp["w1b"], kp["b1r"], kp["w2b"], kp["b2r"],
          kp["wf1"], kp["bf1"], kp["wf2"], kp["bf2"]]
    in_specs = [pl.BlockSpec((nb, 17, 204), lambda i: (i, 0, 0))]
    in_specs += [_full_spec(w) for w in wb]
    return pl.pallas_call(
        _cnn_fused_kernel,
        out_shape=jax.ShapeDtypeStruct((n, 10), jnp.float32),
        grid=(n // nb,),
        in_specs=in_specs,
        out_specs=pl.BlockSpec((nb, 10), lambda i: (i, 0)),
        scratch_shapes=[
            pltpu.VMEM((nb, 16, 408), jnp.bfloat16),   # conv1 im2row
            pltpu.VMEM((nb, 18, 288), jnp.bfloat16),   # conv2 zero-padded input
            pltpu.VMEM((nb, 16, 864), jnp.bfloat16),   # conv2 im2row
            pltpu.VMEM((nb, 2048), jnp.bfloat16),      # flattened fc1 input
        ],
        compiler_params=pltpu.CompilerParams(dimension_semantics=("parallel",)),
    )(x_grouped, *wb)


@jax.jit
def cnn_forward(x_nchw, kp):
    n = x_nchw.shape[0]
    nb = n if n <= 8 else 8
    assert n % nb == 0  # TODO(synk): pad ragged batches to a multiple of the block
    # input glue: NCHW -> NHWC, 1-pixel zero pad, merge (row-pair, W, C) into lanes.
    x = jnp.transpose(x_nchw, (0, 2, 3, 1))
    x = jnp.pad(x, ((0, 0), (1, 1), (1, 1), (0, 0)))
    x = x.reshape(n, 17, 204).astype(jnp.bfloat16)
    return cnn_forward_pallas(x, kp, nb)


# --------------------------------------------------------------------------- params

def init_params(key):
    ks = jax.random.split(key, 8)

    def u(k, shape, fan_in):
        b = 1.0 / np.sqrt(float(fan_in))
        return jax.random.uniform(k, shape, jnp.float32, -b, b)

    return {
        "conv1_w": u(ks[0], (16, 3, 3, 3), 3 * 9),
        "conv1_b": u(ks[1], (16,), 3 * 9),
        "conv2_w": u(ks[2], (32, 16, 3, 3), 16 * 9),
        "conv2_b": u(ks[3], (32,), 16 * 9),
        "fc1_w": u(ks[4], (128, 32 * 8 * 8), 32 * 8 * 8),
        "fc1_b": u(ks[5], (128,), 32 * 8 * 8),
        "fc2_w": u(ks[6], (10, 128), 128),
        "fc2_b": u(ks[7], (10,), 128),
    }


def prepare_kernel_params(params):
    """One-time weight re-layout (outside the hot path).

    conv layers become single banded 'row matmuls':
      conv1: (408, 1024), K = 4 padded rows * 102, out cols (y-parity, x-parity, x//2, c)
      conv2: (864, 512),  K = 3 padded rows * 288, out cols (x-parity, x//2, c)
    fc1's weight rows are permuted to the kernel's (y, x, c) flatten order.
    """
    w1 = np.asarray(jax.device_get(params["conv1_w"]), np.float32)   # (16,3,3,3)
    w2 = np.asarray(jax.device_get(params["conv2_w"]), np.float32)   # (32,16,3,3)

    w1b = np.zeros((4, 34, 3, 2, 2, 16, 16), np.float32)  # (dr, xin, cin, yp, p, j, cout)
    for yp in range(2):
        for x in range(32):
            j, p = divmod(x, 2)
            for dy in range(3):
                for dx in range(3):
                    w1b[yp + dy, x + dx, :, yp, p, j, :] = w1[:, :, dy, dx].T
    w1b = w1b.reshape(408, 1024)

    w2b = np.zeros((3, 18, 16, 2, 8, 32), np.float32)     # (dy, xin, cin, p, j, cout)
    for x in range(16):
        j, p = divmod(x, 2)
        for dx in range(3):
            w2b[:, x + dx, :, p, j, :] = np.transpose(w2[:, :, :, dx], (2, 1, 0))
    w2b = w2b.reshape(864, 512)

    b1 = np.asarray(jax.device_get(params["conv1_b"]), np.float32)
    b2 = np.asarray(jax.device_get(params["conv2_b"]), np.float32)
    fc1w = np.asarray(jax.device_get(params["fc1_w"]), np.float32)   # (128, 2048)
    wf1 = fc1w.reshape(128, 32, 8, 8).transpose(0, 2, 3, 1).reshape(128, 2048).T
    fc2w = np.asarray(jax.device_get(params["fc2_w"]), np.float32)   # (10, 128)

    return {
        "w1b": jnp.asarray(w1b, jnp.bfloat16),
        "b1r": jnp.asarray(np.tile(b1, 64).reshape(1, 1024), jnp.float32),
        "w2b": jnp.asarray(w2b, jnp.bfloat16),
        "b2r": jnp.asarray(np.tile(b2, 16).reshape(1, 512), jnp.float32),
        "wf1": jnp.asarray(wf1, jnp.bfloat16),
        "bf1": jnp.asarray(jax.device_get(params["fc1_b"]),
                           jnp.float32).reshape(1, 128),
        "wf2": jnp.asarray(fc2w.T, jnp.bfloat16),
        "bf2": jnp.asarray(jax.device_get(params["fc2_b"]),
                           jnp.float32).reshape(1, 10),
    }


# --------------------------------------------------------------------------- reference

def cnn_reference(x_nchw, params):
    dn = ("NCHW", "OIHW", "NCHW")

    def conv(x, w, b):
        y = jax.lax.conv_general_dilated(x, w, (1, 1), ((1, 1), (1, 1)),
                                         dimension_numbers=dn)
        return jnp.maximum(y + b[None, :, None, None], 0.0)

    def pool(x):
        n, c, h, w = x.shape
        return jnp.max(x.reshape(n, c, h // 2, 2, w // 2, 2), axis=(3, 5))

    h = pool(conv(x_nchw, params["conv1_w"], params["conv1_b"]))
    h = pool(conv(h, params["conv2_w"], params["conv2_b"]))
    f = h.reshape(h.shape[0], -1)                       # NCHW flatten, like .view()
    f = jnp.maximum(f @ params["fc1_w"].T + params["fc1_b"], 0.0)
    return f @ params["fc2_w"].T + params["fc2_b"]


# --------------------------------------------------------------------------- main

if __name__ == "__main__":
    key = jax.random.PRNGKey(0)
    pkey, xkey = jax.random.split(key)
    params = init_params(pkey)
    kp = prepare_kernel_params(params)

    # fc1 expects 32*8*8 features after two 2x2 pools -> input must be 3x32x32.
    x = jax.random.normal(xkey, (2, 3, 32, 32), jnp.float32)

    out = jax.block_until_ready(cnn_forward(x, kp))
    assert out.shape == (2, 10) and out.dtype == jnp.float32

    ref = cnn_reference(x, params)
    max_err = float(jnp.max(jnp.abs(out - ref)))
    assert max_err < 5e-2, f"numerical mismatch vs f32 reference: {max_err}"
    print("KERNEL_OK")
</pallas_src>

<mosaic_0001>
module attributes {stable_mosaic.version = 11 : i64} {
  func.func @_cnn_fused_kernel(%arg0: i32, %arg1: memref<2x17x204xbf16, #tpu.memory_space<vmem>>, %arg2: memref<408x1024xbf16, #tpu.memory_space<vmem>>, %arg3: memref<1x1024xf32, #tpu.memory_space<vmem>>, %arg4: memref<864x512xbf16, #tpu.memory_space<vmem>>, %arg5: memref<1x512xf32, #tpu.memory_space<vmem>>, %arg6: memref<2048x128xbf16, #tpu.memory_space<vmem>>, %arg7: memref<1x128xf32, #tpu.memory_space<vmem>>, %arg8: memref<128x10xbf16, #tpu.memory_space<vmem>>, %arg9: memref<1x10xf32, #tpu.memory_space<vmem>>, %arg10: memref<2x10xf32, #tpu.memory_space<vmem>>, %arg11: memref<2x16x408xbf16, #tpu.memory_space<vmem>>, %arg12: memref<2x18x288xbf16, #tpu.memory_space<vmem>>, %arg13: memref<2x16x864xbf16, #tpu.memory_space<vmem>>, %arg14: memref<2x2048xbf16, #tpu.memory_space<vmem>>) attributes {dimension_semantics = [#tpu.dimension_semantics<parallel>], iteration_bounds = array<i64: 1>, scalar_prefetch = 0 : i64, scratch_operands = 4 : i64, tpu.core_type = #tpu.core_type<tc>, window_params = [{transform_indices = @transform_0, window_bounds = array<i64: 2, 17, 204>}, {pipeline_mode = #tpu.pipeline_mode<synchronous>, transform_indices = @transform_1, window_bounds = array<i64: 408, 1024>}, {pipeline_mode = #tpu.pipeline_mode<synchronous>, transform_indices = @transform_2, window_bounds = array<i64: 1, 1024>}, {pipeline_mode = #tpu.pipeline_mode<synchronous>, transform_indices = @transform_3, window_bounds = array<i64: 864, 512>}, {pipeline_mode = #tpu.pipeline_mode<synchronous>, transform_indices = @transform_4, window_bounds = array<i64: 1, 512>}, {pipeline_mode = #tpu.pipeline_mode<synchronous>, transform_indices = @transform_5, window_bounds = array<i64: 2048, 128>}, {pipeline_mode = #tpu.pipeline_mode<synchronous>, transform_indices = @transform_6, window_bounds = array<i64: 1, 128>}, {pipeline_mode = #tpu.pipeline_mode<synchronous>, transform_indices = @transform_7, window_bounds = array<i64: 128, 10>}, {pipeline_mode = #tpu.pipeline_mode<synchronous>, transform_indices = @transform_8, window_bounds = array<i64: 1, 10>}, {transform_indices = @transform_9, window_bounds = array<i64: 2, 10>}]} {
    %c0 = arith.constant 0 : index
    %c0_0 = arith.constant 0 : index
    %c0_1 = arith.constant 0 : index
    %0 = vector.load %arg1[%c0, %c0_0, %c0_1] : memref<2x17x204xbf16, #tpu.memory_space<vmem>>, vector<2x16x204xbf16>
    %c0_2 = arith.constant 0 : index
    %c0_3 = arith.constant 0 : index
    %c0_4 = arith.constant 0 : index
    %1 = vector.load %arg11[%c0_2, %c0_3, %c0_4] : memref<2x16x408xbf16, #tpu.memory_space<vmem>>, vector<2x16x204xbf16>
    tpu.vector_store %arg11[%c0_2, %c0_3, %c0_4], %0 {strides = array<i32>} : memref<2x16x408xbf16, #tpu.memory_space<vmem>>, vector<2x16x204xbf16>,
    %c0_5 = arith.constant 0 : index
    %c1 = arith.constant 1 : index
    %c0_6 = arith.constant 0 : index
    %2 = vector.load %arg1[%c0_5, %c1, %c0_6] : memref<2x17x204xbf16, #tpu.memory_space<vmem>>, vector<2x16x204xbf16>
    %c0_7 = arith.constant 0 : index
    %c0_8 = arith.constant 0 : index
    %c204 = arith.constant 204 : index
    %3 = vector.load %arg11[%c0_7, %c0_8, %c204] : memref<2x16x408xbf16, #tpu.memory_space<vmem>>, vector<2x16x204xbf16>
    tpu.vector_store %arg11[%c0_7, %c0_8, %c204], %2 {strides = array<i32>} : memref<2x16x408xbf16, #tpu.memory_space<vmem>>, vector<2x16x204xbf16>,
    %c0_9 = arith.constant 0 : index
    %c0_10 = arith.constant 0 : index
    %c0_11 = arith.constant 0 : index
    %4 = vector.load %arg11[%c0_9, %c0_10, %c0_11] : memref<2x16x408xbf16, #tpu.memory_space<vmem>>, vector<2x16x408xbf16>
    %5 = vector.shape_cast %4 : vector<2x16x408xbf16> to vector<32x408xbf16>
    %c0_12 = arith.constant 0 : index
    %c0_13 = arith.constant 0 : index
    %6 = vector.load %arg2[%c0_12, %c0_13] : memref<408x1024xbf16, #tpu.memory_space<vmem>>, vector<408x1024xbf16>
    %cst = arith.constant dense<0.000000e+00> : vector<32x1024xf32>
    %7 = tpu.matmul %5, %6, %cst {dimension_numbers = #tpu.dot_dimension_numbers<[1], [0], [0], [1], [0, 0, 1, 1], [], []>} : vector<32x408xbf16>, vector<408x1024xbf16>, vector<32x1024xf32> -> vector<32x1024xf32>
    %c0_14 = arith.constant 0 : index
    %c0_15 = arith.constant 0 : index
    %8 = vector.load %arg3[%c0_14, %c0_15] : memref<1x1024xf32, #tpu.memory_space<vmem>>, vector<1x1024xf32>
    %9 = vector.broadcast %8 : vector<1x1024xf32> to vector<32x1024xf32>
    %10 = arith.addf %7, %9 : vector<32x1024xf32>
    %cst_16 = arith.constant 0.000000e+00 : f32
    %11 = vector.broadcast %cst_16 : f32 to vector<32x1024xf32>
    %12 = arith.maximumf %10, %11 : vector<32x1024xf32>
    %13 = vector.extract_strided_slice %12 {offsets = [0, 0], sizes = [32, 256], strides = [1, 1]} : vector<32x1024xf32> to vector<32x256xf32>
    %14 = vector.extract_strided_slice %12 {offsets = [0, 256], sizes = [32, 256], strides = [1, 1]} : vector<32x1024xf32> to vector<32x256xf32>
    %15 = arith.maximumf %13, %14 : vector<32x256xf32>
    %16 = vector.extract_strided_slice %12 {offsets = [0, 512], sizes = [32, 256], strides = [1, 1]} : vector<32x1024xf32> to vector<32x256xf32>
    %17 = vector.extract_strided_slice %12 {offsets = [0, 768], sizes = [32, 256], strides = [1, 1]} : vector<32x1024xf32> to vector<32x256xf32>
    %18 = arith.maximumf %16, %17 : vector<32x256xf32>
    %19 = arith.maximumf %15, %18 : vector<32x256xf32>
    %cst_17 = arith.constant 0.000000e+00 : bf16
    %20 = vector.broadcast %cst_17 : bf16 to vector<2x1x288xbf16>
    %cst_18 = arith.constant 0.000000e+00 : bf16
    %21 = vector.broadcast %cst_18 : bf16 to vector<2x18x16xbf16>
    %c0_19 = arith.constant 0 : index
    %c0_20 = arith.constant 0 : index
    %c0_21 = arith.constant 0 : index
    %22 = vector.load %arg12[%c0_19, %c0_20, %c0_21] : memref<2x18x288xbf16, #tpu.memory_space<vmem>>, vector<2x1x288xbf16>
    tpu.vector_store %arg12[%c0_19, %c0_20, %c0_21], %20 {strides = array<i32>} : memref<2x18x288xbf16, #tpu.memory_space<vmem>>, vector<2x1x288xbf16>,
    %c0_22 = arith.constant 0 : index
    %c17 = arith.constant 17 : index
    %c0_23 = arith.constant 0 : index
    %23 = vector.load %arg12[%c0_22, %c17, %c0_23] : memref<2x18x288xbf16, #tpu.memory_space<vmem>>, vector<2x1x288xbf16>
    tpu.vector_store %arg12[%c0_22, %c17, %c0_23], %20 {strides = array<i32>} : memref<2x18x288xbf16, #tpu.memory_space<vmem>>, vector<2x1x288xbf16>,
    %c0_24 = arith.constant 0 : index
    %c0_25 = arith.constant 0 : index
    %c0_26 = arith.constant 0 : index
    %24 = vector.load %arg12[%c0_24, %c0_25, %c0_26] : memref<2x18x288xbf16, #tpu.memory_space<vmem>>, vector<2x18x16xbf16>
    tpu.vector_store %arg12[%c0_24, %c0_25, %c0_26], %21 {strides = array<i32>} : memref<2x18x288xbf16, #tpu.memory_space<vmem>>, vector<2x18x16xbf16>,
    %c0_27 = arith.constant 0 : index
    %c0_28 = arith.constant 0 : index
    %c272 = arith.constant 272 : index
    %25 = vector.load %arg12[%c0_27, %c0_28, %c272] : memref<2x18x288xbf16, #tpu.memory_space<vmem>>, vector<2x18x16xbf16>
    tpu.vector_store %arg12[%c0_27, %c0_28, %c272], %21 {strides = array<i32>} : memref<2x18x288xbf16, #tpu.memory_space<vmem>>, vector<2x18x16xbf16>,
    %26 = vector.shape_cast %19 : vector<32x256xf32> to vector<2x16x256xf32>
    %27 = arith.truncf %26 : vector<2x16x256xf32> to vector<2x16x256xbf16>
    %c0_29 = arith.constant 0 : index
    %c1_30 = arith.constant 1 : index
    %c16 = arith.constant 16 : index
    %28 = vector.load %arg12[%c0_29, %c1_30, %c16] : memref<2x18x288xbf16, #tpu.memory_space<vmem>>, vector<2x16x256xbf16>
    tpu.vector_store %arg12[%c0_29, %c1_30, %c16], %27 {strides = array<i32>} : memref<2x18x288xbf16, #tpu.memory_space<vmem>>, vector<2x16x256xbf16>,
    %c0_31 = arith.constant 0 : index
    %c0_32 = arith.constant 0 : index
    %c0_33 = arith.constant 0 : index
    %29 = vector.load %arg12[%c0_31, %c0_32, %c0_33] : memref<2x18x288xbf16, #tpu.memory_space<vmem>>, vector<2x16x288xbf16>
    %c0_34 = arith.constant 0 : index
    %c0_35 = arith.constant 0 : index
    %c0_36 = arith.constant 0 : index
    %30 = vector.load %arg13[%c0_34, %c0_35, %c0_36] : memref<2x16x864xbf16, #tpu.memory_space<vmem>>, vector<2x16x288xbf16>
    tpu.vector_store %arg13[%c0_34, %c0_35, %c0_36], %29 {strides = array<i32>} : memref<2x16x864xbf16, #tpu.memory_space<vmem>>, vector<2x16x288xbf16>,
    %c0_37 = arith.constant 0 : index
    %c1_38 = arith.constant 1 : index
    %c0_39 = arith.constant 0 : index
    %31 = vector.load %arg12[%c0_37, %c1_38, %c0_39] : memref<2x18x288xbf16, #tpu.memory_space<vmem>>, vector<2x16x288xbf16>
    %c0_40 = arith.constant 0 : index
    %c0_41 = arith.constant 0 : index
    %c288 = arith.constant 288 : index
    %32 = vector.load %arg13[%c0_40, %c0_41, %c288] : memref<2x16x864xbf16, #tpu.memory_space<vmem>>, vector<2x16x288xbf16>
    tpu.vector_store %arg13[%c0_40, %c0_41, %c288], %31 {strides = array<i32>} : memref<2x16x864xbf16, #tpu.memory_space<vmem>>, vector<2x16x288xbf16>,
    %c0_42 = arith.constant 0 : index
    %c2 = arith.constant 2 : index
    %c0_43 = arith.constant 0 : index
    %33 = vector.load %arg12[%c0_42, %c2, %c0_43] : memref<2x18x288xbf16, #tpu.memory_space<vmem>>, vector<2x16x288xbf16>
    %c0_44 = arith.constant 0 : index
    %c0_45 = arith.constant 0 : index
    %c576 = arith.constant 576 : index
    %34 = vector.load %arg13[%c0_44, %c0_45, %c576] : memref<2x16x864xbf16, #tpu.memory_space<vmem>>, vector<2x16x288xbf16>
    tpu.vector_store %arg13[%c0_44, %c0_45, %c576], %33 {strides = array<i32>} : memref<2x16x864xbf16, #tpu.memory_space<vmem>>, vector<2x16x288xbf16>,
    %c0_46 = arith.constant 0 : index
    %c0_47 = arith.constant 0 : index
    %c0_48 = arith.constant 0 : index
    %35 = vector.load %arg13[%c0_46, %c0_47, %c0_48] : memref<2x16x864xbf16, #tpu.memory_space<vmem>>, vector<2x16x864xbf16>
    %36 = vector.shape_cast %35 : vector<2x16x864xbf16> to vector<32x864xbf16>
    %c0_49 = arith.constant 0 : index
    %c0_50 = arith.constant 0 : index
    %37 = vector.load %arg4[%c0_49, %c0_50] : memref<864x512xbf16, #tpu.memory_space<vmem>>, vector<864x512xbf16>
    %cst_51 = arith.constant dense<0.000000e+00> : vector<32x512xf32>
    %38 = tpu.matmul %36, %37, %cst_51 {dimension_numbers = #tpu.dot_dimension_numbers<[1], [0], [0], [1], [0, 0, 1, 1], [], []>} : vector<32x864xbf16>, vector<864x512xbf16>, vector<32x512xf32> -> vector<32x512xf32>
    %c0_52 = arith.constant 0 : index
    %c0_53 = arith.constant 0 : index
    %39 = vector.load %arg5[%c0_52, %c0_53] : memref<1x512xf32, #tpu.memory_space<vmem>>, vector<1x512xf32>
    %40 = vector.broadcast %39 : vector<1x512xf32> to vector<32x512xf32>
    %41 = arith.addf %38, %40 : vector<32x512xf32>
    %cst_54 = arith.constant 0.000000e+00 : f32
    %42 = vector.broadcast %cst_54 : f32 to vector<32x512xf32>
    %43 = arith.maximumf %41, %42 : vector<32x512xf32>
    %44 = vector.extract_strided_slice %43 {offsets = [0, 0], sizes = [32, 256], strides = [1, 1]} : vector<32x512xf32> to vector<32x256xf32>
    %45 = vector.extract_strided_slice %43 {offsets = [0, 256], sizes = [32, 256], strides = [1, 1]} : vector<32x512xf32> to vector<32x256xf32>
    %46 = arith.maximumf %44, %45 : vector<32x256xf32>
    %47 = vector.shape_cast %46 : vector<32x256xf32> to vector<2x16x256xf32>
    %48 = vector.extract_strided_slice %47 {offsets = [0, 0, 0], sizes = [2, 1, 256], strides = [1, 1, 1]} : vector<2x16x256xf32> to vector<2x1x256xf32>
    %49 = vector.shape_cast %48 : vector<2x1x256xf32> to vector<2x256xf32>
    %50 = vector.extract_strided_slice %47 {offsets = [0, 1, 0], sizes = [2, 1, 256], strides = [1, 1, 1]} : vector<2x16x256xf32> to vector<2x1x256xf32>
    %51 = vector.shape_cast %50 : vector<2x1x256xf32> to vector<2x256xf32>
    %52 = arith.maximumf %49, %51 : vector<2x256xf32>
    %53 = arith.truncf %52 : vector<2x256xf32> to vector<2x256xbf16>
    %c0_55 = arith.constant 0 : index
    %c0_56 = arith.constant 0 : index
    %54 = vector.load %arg14[%c0_55, %c0_56] : memref<2x2048xbf16, #tpu.memory_space<vmem>>, vector<2x256xbf16>
    tpu.vector_store %arg14[%c0_55, %c0_56], %53 {strides = array<i32>} : memref<2x2048xbf16, #tpu.memory_space<vmem>>, vector<2x256xbf16>,
    %55 = vector.extract_strided_slice %47 {offsets = [0, 2, 0], sizes = [2, 1, 256], strides = [1, 1, 1]} : vector<2x16x256xf32> to vector<2x1x256xf32>
    %56 = vector.shape_cast %55 : vector<2x1x256xf32> to vector<2x256xf32>
    %57 = vector.extract_strided_slice %47 {offsets = [0, 3, 0], sizes = [2, 1, 256], strides = [1, 1, 1]} : vector<2x16x256xf32> to vector<2x1x256xf32>
    %58 = vector.shape_cast %57 : vector<2x1x256xf32> to vector<2x256xf32>
    %59 = arith.maximumf %56, %58 : vector<2x256xf32>
    %60 = arith.truncf %59 : vector<2x256xf32> to vector<2x256xbf16>
    %c0_57 = arith.constant 0 : index
    %c256 = arith.constant 256 : index
    %61 = vector.load %arg14[%c0_57, %c256] : memref<2x2048xbf16, #tpu.memory_space<vmem>>, vector<2x256xbf16>
    tpu.vector_store %arg14[%c0_57, %c256], %60 {strides = array<i32>} : memref<2x2048xbf16, #tpu.memory_space<vmem>>, vector<2x256xbf16>,
    %62 = vector.extract_strided_slice %47 {offsets = [0, 4, 0], sizes = [2, 1, 256], strides = [1, 1, 1]} : vector<2x16x256xf32> to vector<2x1x256xf32>
    %63 = vector.shape_cast %62 : vector<2x1x256xf32> to vector<2x256xf32>
    %64 = vector.extract_strided_slice %47 {offsets = [0, 5, 0], sizes = [2, 1, 256], strides = [1, 1, 1]} : vector<2x16x256xf32> to vector<2x1x256xf32>
    %65 = vector.shape_cast %64 : vector<2x1x256xf32> to vector<2x256xf32>
    %66 = arith.maximumf %63, %65 : vector<2x256xf32>
    %67 = arith.truncf %66 : vector<2x256xf32> to vector<2x256xbf16>
    %c0_58 = arith.constant 0 : index
    %c512 = arith.constant 512 : index
    %68 = vector.load %arg14[%c0_58, %c512] : memref<2x2048xbf16, #tpu.memory_space<vmem>>, vector<2x256xbf16>
    tpu.vector_store %arg14[%c0_58, %c512], %67 {strides = array<i32>} : memref<2x2048xbf16, #tpu.memory_space<vmem>>, vector<2x256xbf16>,
    %69 = vector.extract_strided_slice %47 {offsets = [0, 6, 0], sizes = [2, 1, 256], strides = [1, 1, 1]} : vector<2x16x256xf32> to vector<2x1x256xf32>
    %70 = vector.shape_cast %69 : vector<2x1x256xf32> to vector<2x256xf32>
    %71 = vector.extract_strided_slice %47 {offsets = [0, 7, 0], sizes = [2, 1, 256], strides = [1, 1, 1]} : vector<2x16x256xf32> to vector<2x1x256xf32>
    %72 = vector.shape_cast %71 : vector<2x1x256xf32> to vector<2x256xf32>
    %73 = arith.maximumf %70, %72 : vector<2x256xf32>
    %74 = arith.truncf %73 : vector<2x256xf32> to vector<2x256xbf16>
    %c0_59 = arith.constant 0 : index
    %c768 = arith.constant 768 : index
    %75 = vector.load %arg14[%c0_59, %c768] : memref<2x2048xbf16, #tpu.memory_space<vmem>>, vector<2x256xbf16>
    tpu.vector_store %arg14[%c0_59, %c768], %74 {strides = array<i32>} : memref<2x2048xbf16, #tpu.memory_space<vmem>>, vector<2x256xbf16>,
    %76 = vector.extract_strided_slice %47 {offsets = [0, 8, 0], sizes = [2, 1, 256], strides = [1, 1, 1]} : vector<2x16x256xf32> to vector<2x1x256xf32>
    %77 = vector.shape_cast %76 : vector<2x1x256xf32> to vector<2x256xf32>
    %78 = vector.extract_strided_slice %47 {offsets = [0, 9, 0], sizes = [2, 1, 256], strides = [1, 1, 1]} : vector<2x16x256xf32> to vector<2x1x256xf32>
    %79 = vector.shape_cast %78 : vector<2x1x256xf32> to vector<2x256xf32>
    %80 = arith.maximumf %77, %79 : vector<2x256xf32>
    %81 = arith.truncf %80 : vector<2x256xf32> to vector<2x256xbf16>
    %c0_60 = arith.constant 0 : index
    %c1024 = arith.constant 1024 : index
    %82 = vector.load %arg14[%c0_60, %c1024] : memref<2x2048xbf16, #tpu.memory_space<vmem>>, vector<2x256xbf16>
    tpu.vector_store %arg14[%c0_60, %c1024], %81 {strides = array<i32>} : memref<2x2048xbf16, #tpu.memory_space<vmem>>, vector<2x256xbf16>,
    %83 = vector.extract_strided_slice %47 {offsets = [0, 10, 0], sizes = [2, 1, 256], strides = [1, 1, 1]} : vector<2x16x256xf32> to vector<2x1x256xf32>
    %84 = vector.shape_cast %83 : vector<2x1x256xf32> to vector<2x256xf32>
    %85 = vector.extract_strided_slice %47 {offsets = [0, 11, 0], sizes = [2, 1, 256], strides = [1, 1, 1]} : vector<2x16x256xf32> to vector<2x1x256xf32>
    %86 = vector.shape_cast %85 : vector<2x1x256xf32> to vector<2x256xf32>
    %87 = arith.maximumf %84, %86 : vector<2x256xf32>
    %88 = arith.truncf %87 : vector<2x256xf32> to vector<2x256xbf16>
    %c0_61 = arith.constant 0 : index
    %c1280 = arith.constant 1280 : index
    %89 = vector.load %arg14[%c0_61, %c1280] : memref<2x2048xbf16, #tpu.memory_space<vmem>>, vector<2x256xbf16>
    tpu.vector_store %arg14[%c0_61, %c1280], %88 {strides = array<i32>} : memref<2x2048xbf16, #tpu.memory_space<vmem>>, vector<2x256xbf16>,
    %90 = vector.extract_strided_slice %47 {offsets = [0, 12, 0], sizes = [2, 1, 256], strides = [1, 1, 1]} : vector<2x16x256xf32> to vector<2x1x256xf32>
    %91 = vector.shape_cast %90 : vector<2x1x256xf32> to vector<2x256xf32>
    %92 = vector.extract_strided_slice %47 {offsets = [0, 13, 0], sizes = [2, 1, 256], strides = [1, 1, 1]} : vector<2x16x256xf32> to vector<2x1x256xf32>
    %93 = vector.shape_cast %92 : vector<2x1x256xf32> to vector<2x256xf32>
    %94 = arith.maximumf %91, %93 : vector<2x256xf32>
    %95 = arith.truncf %94 : vector<2x256xf32> to vector<2x256xbf16>
    %c0_62 = arith.constant 0 : index
    %c1536 = arith.constant 1536 : index
    %96 = vector.load %arg14[%c0_62, %c1536] : memref<2x2048xbf16, #tpu.memory_space<vmem>>, vector<2x256xbf16>
    tpu.vector_store %arg14[%c0_62, %c1536], %95 {strides = array<i32>} : memref<2x2048xbf16, #tpu.memory_space<vmem>>, vector<2x256xbf16>,
    %97 = vector.extract_strided_slice %47 {offsets = [0, 14, 0], sizes = [2, 1, 256], strides = [1, 1, 1]} : vector<2x16x256xf32> to vector<2x1x256xf32>
    %98 = vector.shape_cast %97 : vector<2x1x256xf32> to vector<2x256xf32>
    %99 = vector.extract_strided_slice %47 {offsets = [0, 15, 0], sizes = [2, 1, 256], strides = [1, 1, 1]} : vector<2x16x256xf32> to vector<2x1x256xf32>
    %100 = vector.shape_cast %99 : vector<2x1x256xf32> to vector<2x256xf32>
    %101 = arith.maximumf %98, %100 : vector<2x256xf32>
    %102 = arith.truncf %101 : vector<2x256xf32> to vector<2x256xbf16>
    %c0_63 = arith.constant 0 : index
    %c1792 = arith.constant 1792 : index
    %103 = vector.load %arg14[%c0_63, %c1792] : memref<2x2048xbf16, #tpu.memory_space<vmem>>, vector<2x256xbf16>
    tpu.vector_store %arg14[%c0_63, %c1792], %102 {strides = array<i32>} : memref<2x2048xbf16, #tpu.memory_space<vmem>>, vector<2x256xbf16>,
    %c0_64 = arith.constant 0 : index
    %c0_65 = arith.constant 0 : index
    %104 = vector.load %arg14[%c0_64, %c0_65] : memref<2x2048xbf16, #tpu.memory_space<vmem>>, vector<2x2048xbf16>
    %c0_66 = arith.constant 0 : index
    %c0_67 = arith.constant 0 : index
    %105 = vector.load %arg6[%c0_66, %c0_67] : memref<2048x128xbf16, #tpu.memory_space<vmem>>, vector<2048x128xbf16>
    %cst_68 = arith.constant dense<0.000000e+00> : vector<2x128xf32>
    %106 = tpu.matmul %104, %105, %cst_68 {dimension_numbers = #tpu.dot_dimension_numbers<[1], [0], [0], [1], [0, 0, 1, 1], [], []>} : vector<2x2048xbf16>, vector<2048x128xbf16>, vector<2x128xf32> -> vector<2x128xf32>
    %c0_69 = arith.constant 0 : index
    %c0_70 = arith.constant 0 : index
    %107 = vector.load %arg7[%c0_69, %c0_70] : memref<1x128xf32, #tpu.memory_space<vmem>>, vector<1x128xf32>
    %108 = vector.broadcast %107 : vector<1x128xf32> to vector<2x128xf32>
    %109 = arith.addf %106, %108 : vector<2x128xf32>
    %cst_71 = arith.constant 0.000000e+00 : f32
    %110 = vector.broadcast %cst_71 : f32 to vector<2x128xf32>
    %111 = arith.maximumf %109, %110 : vector<2x128xf32>
    %112 = arith.truncf %111 : vector<2x128xf32> to vector<2x128xbf16>
    %c0_72 = arith.constant 0 : index
    %c0_73 = arith.constant 0 : index
    %113 = vector.load %arg8[%c0_72, %c0_73] : memref<128x10xbf16, #tpu.memory_space<vmem>>, vector<128x10xbf16>
    %cst_74 = arith.constant dense<0.000000e+00> : vector<2x10xf32>
    %114 = tpu.matmul %112, %113, %cst_74 {dimension_numbers = #tpu.dot_dimension_numbers<[1], [0], [0], [1], [0, 0, 1, 1], [], []>} : vector<2x128xbf16>, vector<128x10xbf16>, vector<2x10xf32> -> vector<2x10xf32>
    %c0_75 = arith.constant 0 : index
    %c0_76 = arith.constant 0 : index
    %115 = vector.load %arg9[%c0_75, %c0_76] : memref<1x10xf32, #tpu.memory_space<vmem>>, vector<1x10xf32>
    %116 = vector.broadcast %115 : vector<1x10xf32> to vector<2x10xf32>
    %117 = arith.addf %114, %116 : vector<2x10xf32>
    %c0_77 = arith.constant 0 : index
    %c0_78 = arith.constant 0 : index
    %118 = vector.load %arg10[%c0_77, %c0_78] : memref<2x10xf32, #tpu.memory_space<vmem>>, vector<2x10xf32>
    tpu.vector_store %arg10[%c0_77, %c0_78], %117 {strides = array<i32>} : memref<2x10xf32, #tpu.memory_space<vmem>>, vector<2x10xf32>,
    return
  }
  func.func @transform_0(%arg0: i32) -> (i32, i32, i32) {
    %c0_i32 = arith.constant 0 : i32
    %c0_i32_0 = arith.constant 0 : i32
    %c0_i32_1 = arith.constant 0 : i32
    return %arg0, %c0_i32, %c0_i32_0 : i32, i32, i32
  }
  func.func @transform_1(%arg0: i32) -> (i32, i32) {
    %c0_i32 = arith.constant 0 : i32
    %c0_i32_0 = arith.constant 0 : i32
    %c0_i32_1 = arith.constant 0 : i32
    return %c0_i32, %c0_i32_0 : i32, i32
  }
  func.func @transform_2(%arg0: i32) -> (i32, i32) {
    %c0_i32 = arith.constant 0 : i32
    %c0_i32_0 = arith.constant 0 : i32
    %c0_i32_1 = arith.constant 0 : i32
    return %c0_i32, %c0_i32_0 : i32, i32
  }
  func.func @transform_3(%arg0: i32) -> (i32, i32) {
    %c0_i32 = arith.constant 0 : i32
    %c0_i32_0 = arith.constant 0 : i32
    %c0_i32_1 = arith.constant 0 : i32
    return %c0_i32, %c0_i32_0 : i32, i32
  }
  func.func @transform_4(%arg0: i32) -> (i32, i32) {
    %c0_i32 = arith.constant 0 : i32
    %c0_i32_0 = arith.constant 0 : i32
    %c0_i32_1 = arith.constant 0 : i32
    return %c0_i32, %c0_i32_0 : i32, i32
  }
  func.func @transform_5(%arg0: i32) -> (i32, i32) {
    %c0_i32 = arith.constant 0 : i32
    %c0_i32_0 = arith.constant 0 : i32
    %c0_i32_1 = arith.constant 0 : i32
    return %c0_i32, %c0_i32_0 : i32, i32
  }
  func.func @transform_6(%arg0: i32) -> (i32, i32) {
    %c0_i32 = arith.constant 0 : i32
    %c0_i32_0 = arith.constant 0 : i32
    %c0_i32_1 = arith.constant 0 : i32
    return %c0_i32, %c0_i32_0 : i32, i32
  }
  func.func @transform_7(%arg0: i32) -> (i32, i32) {
    %c0_i32 = arith.constant 0 : i32
    %c0_i32_0 = arith.constant 0 : i32
    %c0_i32_1 = arith.constant 0 : i32
    return %c0_i32, %c0_i32_0 : i32, i32
  }
  func.func @transform_8(%arg0: i32) -> (i32, i32) {
    %c0_i32 = arith.constant 0 : i32
    %c0_i32_0 = arith.constant 0 : i32
    %c0_i32_1 = arith.constant 0 : i32
    return %c0_i32, %c0_i32_0 : i32, i32
  }
  func.func @transform_9(%arg0: i32) -> (i32, i32) {
    %c0_i32 = arith.constant 0 : i32
    %c0_i32_0 = arith.constant 0 : i32
    return %arg0, %c0_i32 : i32, i32
  }
}

</mosaic_0001>

<bundles_post_ra>
// kernel: cnn_forward.1
= control target key start
LH: loop header
LB: loop body
LE: loop exit
PB: predicated region body
PF: predicated region fallthrough
CT: control target
= control target key end

     0   :  { %vm51_vm0 = vsmask.f32 3328  ;;  %vm52_vm1 = vsmask.f32 7440  ;;  %v13191_v25 = vmov 0  ;;  %s9105_s11 = smov 76   ;;  %s13177_s0 = inlined_call_operand.vmem [shape: bf16[2,17,204], index: 0, kind: input, shape index: {}]   ;;  %s13178_s1 = inlined_call_operand.vmem [shape: bf16[408,1024], index: 1, kind: input, shape index: {}]   ;;  %s13179_s2 = inlined_call_operand.vmem [shape: f32[1,1024], index: 2, kind: input, shape index: {}]   ;;  %s13180_s3 = inlined_call_operand.vmem [shape: bf16[864,512], index: 3, kind: input, shape index: {}]   ;;  %s13181_s4 = inlined_call_operand.vmem [shape: f32[1,512], index: 4, kind: input, shape index: {}]   ;;  %s13182_s5 = inlined_call_operand.vmem [shape: bf16[2048,128], index: 5, kind: input, shape index: {}]   ;;  %s13183_s6 = inlined_call_operand.vmem [shape: f32[1,128], index: 6, kind: input, shape index: {}]   ;;  %s13184_s7 = inlined_call_operand.vmem [shape: bf16[128,10], index: 7, kind: input, shape index: {}]   ;;  %s13185_s8 = inlined_call_operand.vmem [shape: f32[1,10], index: 8, kind: input, shape index: {}]   ;;  %s13186_s9 = inlined_call_operand.hbm [shape: f32[2,10], index: 9, kind: output, shape index: {}]  }
   0x1   :  { %v9164_v0 = vld [vmem:[%s13177_s0] sm:$0xff]  ;;  %v9169_v1 = vld [vmem:[%s13177_s0 + $0x8] sm:$0xff]  ;;  %v9178_v6 = vld [vmem:[%s13177_s0 + $0x18] sm:$0xff]  ;;  %vm38_vm3 = vcmask 1043456   ;;  %vm39_vm4 = vcmask 621572  }
   0x2   :  { %v55_v2 = vshrl.u32 %v9164_v0, 16  ;;  %v58_v3 = vshll.u32 %v9164_v0, 16  ;;  %v64_v4 = vshll.u32 %v9169_v1, 16  ;;  %v68_v5 = vshrl.u32 %v9169_v1, 16  ;;  %v9183_v7 = vld [vmem:[%s13177_s0 + $0x20] sm:$0xff]  ;;  %vm9206_vm2 = vmor %vm51_vm0, %vm52_vm1 }
   0x3   :  { %v79_v8 = vshrl.u32 %v9178_v6, 16  ;;  %v82_v9 = vshll.u32 %v9178_v6, 16  ;;  %v47_v10 = vld [vmem:[%s13177_s0 + $0x10] sm:$0x11]  ;;  %v50_v15 = vld [vmem:[%s13177_s0 + $0x28] sm:$0x11]  ;;  %vm9238_vm5 = vmor %vm39_vm4, %vm38_vm3 }
   0x4   :  { %v57_v11 = vrot.slane %v55_v2, 4  ;;  %v60_v12 = vrot.slane %v58_v3, 5  ;;  %v66_v13 = vrot.slane %v64_v4, 5  ;;  %v70_v14 = vrot.slane %v68_v5, 4  ;;  %v6430_v20 = vld [vmem:[%s13178_s1 + $0x1c0] sm:$0xf] }
   0x5   :  { %v81_v16 = vrot.slane %v79_v8, 4  ;;  %v84_v17 = vrot.slane %v82_v9, 5  ;;  %v88_v18 = vshll.u32 %v9183_v7, 16  ;;  %v92_v19 = vshrl.u32 %v9183_v7, 16  ;;  %v8564_v23 = vld [vmem:[%s13178_s1 + $0x1dc] sm:$0xf0] }
   0x6   :  { %v61_v21 = vor.u32 %v60_v12, %v57_v11  ;;  %v71_v22 = vor.u32 %v70_v14, %v66_v13  ;;  %v6398_v24 = vld [vmem:[%s13178_s1 + $0x180] sm:$0xf]  ;;  %v13192_v25 = vsel %vm9206_vm2, 4294967295, %v13191_v25  ;;  %v6431_v29 = vor.u32 %v8564_v23, %v6430_v20  ;;  %41 = vst.msk [vmem:[#allocation2] sm:$0xff] %vm9238_vm5, %v9164_v0 }
   0x7   :  { %13193 = vst [vmem:[#allocation9_spill] sm:$0xff] %v13192_v25  ;;  %v85_v26 = vor.u32 %v84_v17, %v81_v16  ;;  %v90_v27 = vrot.slane %v88_v18, 5  ;;  %v94_v28 = vrot.slane %v92_v19, 4  ;;  %v8556_v30 = vld [vmem:[%s13178_s1 + $0x19c] sm:$0xf0]  ;;  %v74_v32 = vshll.u32 %v47_v10, 16 }
   0x8   :  { %v62_v31 = vrot.slane %v61_v21, 4  ;;  %v98_v33 = vshll.u32 %v50_v15, 16  ;;  %1458 = vmatpush.bf16.msra.mxu0 %v6431_v29  ;;  %v6399_v36 = vor.u32 %v8556_v30, %v6398_v24  ;;  %v6366_v38 = vld [vmem:[%s13178_s1 + $0x140] sm:$0xf]  ;;  %v72_v41 = vrot.slane %v71_v22, 4  ;;  %42 = vst.msk [vmem:[#allocation2 + $0x10] sm:$0xff] %vm9238_vm5, %v9169_v1 }
   0x9   :  { %v86_v34 = vrot.slane %v85_v26, 4  ;;  %v95_v35 = vor.u32 %v94_v28, %v90_v27  ;;  %v8548_v39 = vld [vmem:[%s13178_s1 + $0x15c] sm:$0xf0]  ;;  %v76_v42 = vrot.slane %v74_v32, 5  ;;  %43 = vst.msk [vmem:[#allocation2 + $0x20] sm:$0xff] %vm9238_vm5, %v9178_v6 }
   0xa   :  { %v67_v37 = vsel %vm9206_vm2, %v62_v31, %v66_v13  ;;  %v100_v43 = vrot.slane %v98_v33, 5  ;;  %v6334_v44 = vld [vmem:[%s13178_s1 + $0x100] sm:$0xf]  ;;  %v6367_v47 = vor.u32 %v8548_v39, %v6366_v38  ;;  %44 = vst.msk [vmem:[#allocation2 + $0x30] sm:$0xff] %vm9238_vm5, %v9183_v7 }
   0xb   :  { %102 = vrot.lane.b32.xlu0 %v67_v37, %s9105_s11  ;;  %v91_v40 = vsel %vm9206_vm2, %v86_v34, %v90_v27  ;;  %v8540_v45 = vld [vmem:[%s13178_s1 + $0x11c] sm:$0xf0]  ;;  %v96_v46 = vrot.slane %v95_v35, 4  ;;  %v77_v55 = vsel %vm9206_vm2, %v72_v41, %v76_v42 }
   0xc   :  { %106 = vrot.lane.b32.xlu1 %v91_v40, %s9105_s11  ;;  %1459 = vmatpush.bf16.msra.mxu0 %v6399_v36  ;;  %v6686_v48 = vld [vmem:[%s13178_s1 + $0x3c0] sm:$0xf]  ;;  %v6335_v59 = vor.u32 %v8540_v45, %v6334_v44 }
   0xd   :  { %v8628_v49 = vld [vmem:[%s13178_s1 + $0x3dc] sm:$0xf0]  ;;  %v101_v58 = vsel %vm9206_vm2, %v96_v46, %v100_v43 }
   0xe   :  { %v6687_v51 = vor.u32 %v8628_v49, %v6686_v48  ;;  %v6942_v52 = vld [vmem:[%s13178_s1 + $0x5c0] sm:$0xf] }
   0xf   :  { %v8692_v53 = vld [vmem:[%s13178_s1 + $0x5dc] sm:$0xf0] }
  0x10   :  { %v6943_v54 = vor.u32 %v8692_v53, %v6942_v52  ;;  %1477 = vmatpush.bf16.msra.mxu1 %v6687_v51  ;;  %v6654_v56 = vld [vmem:[%s13178_s1 + $0x380] sm:$0xf]  ;;  %1460 = vmatpush.bf16.msra.mxu0 %v6367_v47 }
  0x11   :  { %v8620_v57 = vld [vmem:[%s13178_s1 + $0x39c] sm:$0xf0] }
  0x12   :  { %v6302_v60 = vld [vmem:[%s13178_s1 + $0xc0] sm:$0xf]  ;;  %1496 = vmatpush.bf16.msra.mxu2 %v6943_v54  ;;  %v6655_v61 = vor.u32 %v8620_v57, %v6654_v56 }
  0x13   :  { %v6910_v62 = vld [vmem:[%s13178_s1 + $0x580] sm:$0xf]  ;;  %104 = vrot.lane.b32.xlu0 %v77_v55, %s9105_s11 }
  0x14   :  { %v8684_v63 = vld [vmem:[%s13178_s1 + $0x59c] sm:$0xf0]  ;;  %108 = vrot.lane.b32.xlu1 %v101_v58, %s9105_s11  ;;  %1478 = vmatpush.bf16.msra.mxu1 %v6655_v61 }
  0x15   :  { %v8532_v0 = vld [vmem:[%s13178_s1 + $0xdc] sm:$0xf0]  ;;  %v6911_v1 = vor.u32 %v8684_v63, %v6910_v62  ;;  %1461 = vmatpush.bf16.msra.mxu0 %v6335_v59 }
  0x16   :  { %v6622_v2 = vld [vmem:[%s13178_s1 + $0x340] sm:$0xf]  ;;  %v6303_v9 = vor.u32 %v8532_v0, %v6302_v60 }
  0x17   :  { %v8612_v3 = vld [vmem:[%s13178_s1 + $0x35c] sm:$0xf0]  ;;  %1497 = vmatpush.bf16.msra.mxu2 %v6911_v1 }
  0x18   :  { %v6878_v4 = vld [vmem:[%s13178_s1 + $0x540] sm:$0xf]  ;;  %v6623_v8 = vor.u32 %v8612_v3, %v6622_v2 }
  0x19   :  { %v8676_v5 = vld [vmem:[%s13178_s1 + $0x55c] sm:$0xf0] }
  0x1a   :  { %v6879_v10 = vor.u32 %v8676_v5, %v6878_v4 }
  0x1b   :  { %14 = vsyncpa [#allocation7], 0  ;;  %v6270_v11 = vld [vmem:[%s13178_s1 + $0x80] sm:$0xf]  ;;  %1479 = vmatpush.bf16.msra.mxu1 %v6623_v8  ;;  %1462 = vmatpush.bf16.msra.mxu0 %v6303_v9  ;;  %v8624_v17 = vld [vmem:[%s13178_s1 + $0x3c4] sm:$0xf] }
  0x1c   :  { %v8524_v12 = vld [vmem:[%s13178_s1 + $0x9c] sm:$0xf0]  ;;  %1498 = vmatpush.bf16.msra.mxu2 %v6879_v10  ;;  %v6688_v18 = vld [vmem:[%s13178_s1 + $0x3e0] sm:$0xf0]  ;;  %v6174_v20 = vld [vmem:[#allocation2] sm:$0xf] }
  0x1d   :  { %v6271_v6 = vor.u32 %v8524_v12, %v6270_v11  ;;  %v6238_v13 = vld [vmem:[%s13178_s1 + $0x40] sm:$0xf]  ;;  %v8498_v21 = vld [vmem:[#allocation2 + $0xc] sm:$0xf0]  ;;  %v6691_v22 = vor.u32 %v8624_v17, %v6688_v18  ;;  %v8616_v23 = vld [vmem:[%s13178_s1 + $0x384] sm:$0xf] }
  0x1e   :  { %v8516_v7 = vld [vmem:[%s13178_s1 + $0x5c] sm:$0xf0]  ;;  %v6656_v24 = vld [vmem:[%s13178_s1 + $0x3a0] sm:$0xf0]  ;;  %v9326_v26 = vor.u32 %v8498_v21, %v6174_v20  ;;  %v6190_v40 = vld [vmem:[#allocation2 + $0x20] sm:$0xf] }
  0x1f   :  { %1463 = vmatpush.bf16.msra.mxu0 %v6271_v6  ;;  %v6239_v14 = vor.u32 %v8516_v7, %v6238_v13  ;;  %v6206_v15 = vld [vmem:[%s13178_s1] sm:$0xf]  ;;  %v6659_v27 = vor.u32 %v8616_v23, %v6656_v24  ;;  %v8608_v28 = vld [vmem:[%s13178_s1 + $0x344] sm:$0xf]  ;;  %v8502_v41 = vld [vmem:[#allocation2 + $0x2c] sm:$0xf0] }
  0x20   :  { %v8508_v16 = vld [vmem:[%s13178_s1 + $0x1c] sm:$0xf0]  ;;  %v6624_v29 = vld [vmem:[%s13178_s1 + $0x360] sm:$0xf0]  ;;  %v9353_v42 = vor.u32 %v8502_v41, %v6190_v40  ;;  %vm127_vm6 = vcmask 1044064   ;;  %vm128_vm7 = vcmask 1047556  }
  0x21   :  { %v6207_v19 = vor.u32 %v8508_v16, %v6206_v15  ;;  %v6627_v30 = vor.u32 %v8608_v28, %v6624_v29  ;;  %v6590_v31 = vld [vmem:[%s13178_s1 + $0x300] sm:$0xf]  ;;  %v8600_v36 = vld [vmem:[%s13178_s1 + $0x304] sm:$0xf]  ;;  %v6694_v29 = vld [vmem:[%s13178_s1 + $0x3c8] sm:$0xf] }
  0x22   :  { %v8604_v32 = vld [vmem:[%s13178_s1 + $0x31c] sm:$0xf0]  ;;  %v6592_v37 = vld [vmem:[%s13178_s1 + $0x320] sm:$0xf0]  ;;  %vm114_vm8 = vcmask 621568   ;;  %vm131_vm9 = vcmask 191488   ;;  %vm9514_vm10 = vmor %vm128_vm7, %vm127_vm6 }
  0x23   :  { %1464 = vmatpush.bf16.msra.mxu0 %v6239_v14  ;;  %v6846_v33 = vld [vmem:[%s13178_s1 + $0x500] sm:$0xf]  ;;  %v6591_v34 = vor.u32 %v8604_v32, %v6590_v31  ;;  %v6595_v39 = vor.u32 %v8600_v36, %v6592_v37  ;;  %v8592_v48 = vld [vmem:[%s13178_s1 + $0x2c4] sm:$0xf]  ;;  %v8629_v31 = vld [vmem:[%s13178_s1 + $0x3e4] sm:$0xf0] }
  0x24   :  { %v8668_v35 = vld [vmem:[%s13178_s1 + $0x51c] sm:$0xf0]  ;;  %v6560_v49 = vld [vmem:[%s13178_s1 + $0x2e0] sm:$0xf0]  ;;  %v6695_v32 = vor.u32 %v8629_v31, %v6694_v29  ;;  %vm1427_vm11 = vcmask 195584   ;;  %vm13189_vm14 = vcmask 1040384  }
  0x25   :  { %v6847_v38 = vor.u32 %v8668_v35, %v6846_v33  ;;  %1480 = vmatpush.bf16.msra.mxu1 %v6591_v34  ;;  %v6558_v43 = vld [vmem:[%s13178_s1 + $0x2c0] sm:$0xf]  ;;  %v6563_v51 = vor.u32 %v8592_v48, %v6560_v49  ;;  %v8584_v57 = vld [vmem:[%s13178_s1 + $0x284] sm:$0xf]  ;;  %v6630_v48 = vld [vmem:[%s13178_s1 + $0x348] sm:$0xf] }
  0x26   :  { %v8596_v44 = vld [vmem:[%s13178_s1 + $0x2dc] sm:$0xf0]  ;;  %v6528_v58 = vld [vmem:[%s13178_s1 + $0x2a0] sm:$0xf0]  ;;  %v8613_v49 = vld [vmem:[%s13178_s1 + $0x364] sm:$0xf0] }
  0x27   :  { %1465 = vmatpush.bf16.msra.mxu0 %v6207_v19  ;;  %1499 = vmatpush.bf16.msra.mxu2 %v6847_v38  ;;  %v6814_v45 = vld [vmem:[%s13178_s1 + $0x4c0] sm:$0xf]  ;;  %v6559_v46 = vor.u32 %v8596_v44, %v6558_v43  ;;  %v6531_v60 = vor.u32 %v8584_v57, %v6528_v58  ;;  %v8576_v5 = vld [vmem:[%s13178_s1 + $0x244] sm:$0xf]  ;;  %v6662_v38 = vld [vmem:[%s13178_s1 + $0x388] sm:$0xf] }
  0x28   :  { %v8660_v47 = vld [vmem:[%s13178_s1 + $0x4dc] sm:$0xf0]  ;;  %v6496_v8 = vld [vmem:[%s13178_s1 + $0x260] sm:$0xf0]  ;;  %v6598_v57 = vld [vmem:[%s13178_s1 + $0x308] sm:$0xf] }
  0x29   :  { %v6815_v50 = vor.u32 %v8660_v47, %v6814_v45  ;;  %1481 = vmatpush.bf16.msra.mxu1 %v6559_v46  ;;  %v6526_v52 = vld [vmem:[%s13178_s1 + $0x280] sm:$0xf]  ;;  %v6499_v10 = vor.u32 %v8576_v5, %v6496_v8  ;;  %v8568_v18 = vld [vmem:[%s13178_s1 + $0x204] sm:$0xf]  ;;  %v8605_v58 = vld [vmem:[%s13178_s1 + $0x324] sm:$0xf0] }
  0x2a   :  { %1466 = vmatmul.bf16.vlgmr.msra.gmra.mxu0 %v9326_v26  ;;  %v8588_v53 = vld [vmem:[%s13178_s1 + $0x29c] sm:$0xf0]  ;;  %v6464_v19 = vld [vmem:[%s13178_s1 + $0x220] sm:$0xf0]  ;;  %vm13190_vm12 = vsmask.f32 256 }
  0x2b   :  { %1553 = vmatpush.bf16.msrb.mxu0 %v6691_v22  ;;  %1500 = vmatpush.bf16.msra.mxu2 %v6815_v50  ;;  %v6782_v54 = vld [vmem:[%s13178_s1 + $0x480] sm:$0xf]  ;;  %v6527_v55 = vor.u32 %v8588_v53, %v6526_v52  ;;  %v6467_v21 = vor.u32 %v8568_v18, %v6464_v19  ;;  %v8560_v22 = vld [vmem:[%s13178_s1 + $0x1c4] sm:$0xf]  ;;  %v6631_v53 = vor.u32 %v8613_v49, %v6630_v48  ;;  %vm2181_vm13 = vsmask.f32 4368  ;;  %vm10833_vm0 = vmand %vm13189_vm14, %vm13190_vm12 }
  0x2c   :  { %v8652_v56 = vld [vmem:[%s13178_s1 + $0x49c] sm:$0xf0]  ;;  %v6432_v23 = vld [vmem:[%s13178_s1 + $0x1e0] sm:$0xf0]  ;;  %vm2125_vm15 = vcmask 1044484   ;;  %vm2132_vm5 = vcmask 253952  }
  0x2d   :  { %v6783_v59 = vor.u32 %v8652_v56, %v6782_v54  ;;  %v9395_v61 = vld [vmem:[%s13178_s1 + $0x640] sm:$0xff]  ;;  %1482 = vmatpush.bf16.msra.mxu1 %v6527_v55  ;;  %v6435_v24 = vor.u32 %v8560_v22, %v6432_v23  ;;  %vm2126_vm1 = vsmask.f32 4352  ;;  %vm2143_vm6 = vsmask.f32 7938  ;;  %s9106_s16 = smov 16  }
  0x2e   :  { %v1011_v62 = vunpack.c.l.b16 %v9395_v61  ;;  %v6494_v63 = vld [vmem:[%s13178_s1 + $0x240] sm:$0xf]  ;;  %v6944_v28 = vld [vmem:[%s13178_s1 + $0x5e0] sm:$0xf0]  ;;  %vm10845_vm4 = vmand %vm2125_vm15, %vm2126_vm1  ;;  %vm2254_vm1 = vcmask 1043584   ;;  %s9108_s11 = smov 32  }
  0x2f   :  { %1554 = vmatpush.bf16.msrb.mxu0 %v6659_v27  ;;  %1501 = vmatpush.bf16.msra.mxu2 %v6783_v59  ;;  %v8580_v0 = vld [vmem:[%s13178_s1 + $0x25c] sm:$0xf0]  ;;  %v8688_v27 = vld [vmem:[%s13178_s1 + $0x5c4] sm:$0xf]  ;;  %s9109_s25 = smov 64   ;;  %s9110_s27 = smov [#allocation6]  }
  0x30   :  { %v6750_v1 = vld [vmem:[%s13178_s1 + $0x440] sm:$0xf]  ;;  %v1219_v2 = vpack.c.b16 %v1011_v62, %v1011_v62  ;;  %v6495_v3 = vor.u32 %v8580_v0, %v6494_v63  ;;  %v8552_v33 = vld [vmem:[%s13178_s1 + $0x184] sm:$0xf]  ;;  %s6161_s28 = sshll.u32 %s9110_s27, 4  ;;  %s6162_s28 = int_to_ptr.vmem [resolvable:$true] %s6161_s28 }
  0x31   :  { %v8644_v4 = vld [vmem:[%s13178_s1 + $0x45c] sm:$0xf0]  ;;  %v6400_v34 = vld [vmem:[%s13178_s1 + $0x1a0] sm:$0xf0] }
  0x32   :  { %v6751_v9 = vor.u32 %v8644_v4, %v6750_v1  ;;  %v6974_v11 = vld [vmem:[%s13178_s1 + $0x600] sm:$0xf]  ;;  %v1435_v13 = vsel %vm38_vm3, %v1219_v2, 0  ;;  %1483 = vmatpush.bf16.msra.mxu1 %v6495_v3  ;;  %v8680_v35 = vld [vmem:[%s13178_s1 + $0x584] sm:$0xf]  ;;  %v6403_v36 = vor.u32 %v8552_v33, %v6400_v34  ;;  %v6599_v1 = vor.u32 %v8605_v58, %v6598_v57 }
  0x33   :  { %1555 = vmatpush.bf16.msrb.mxu0 %v6627_v30  ;;  %v8700_v12 = vld [vmem:[%s13178_s1 + $0x61c] sm:$0xf0]  ;;  %1521 = vmatpush.bf16.msra.mxu3 %v1435_v13  ;;  %v6947_v30 = vor.u32 %v8688_v27, %v6944_v28  ;;  %v6912_v37 = vld [vmem:[%s13178_s1 + $0x5a0] sm:$0xf0]  ;;  %v8597_v13 = vld [vmem:[%s13178_s1 + $0x2e4] sm:$0xf0] }
  0x34   :  { %v6462_v6 = vld [vmem:[%s13178_s1 + $0x200] sm:$0xf]  ;;  %1502 = vmatpush.bf16.msra.mxu2 %v6751_v9  ;;  %v6975_v15 = vor.u32 %v8700_v12, %v6974_v11  ;;  %v6915_v40 = vor.u32 %v8680_v35, %v6912_v37  ;;  %v8544_v43 = vld [vmem:[%s13178_s1 + $0x144] sm:$0xf] }
  0x35   :  { %v8572_v7 = vld [vmem:[%s13178_s1 + $0x21c] sm:$0xf0]  ;;  %v6368_v44 = vld [vmem:[%s13178_s1 + $0x160] sm:$0xf0] }
  0x36   :  { %v6718_v14 = vld [vmem:[%s13178_s1 + $0x400] sm:$0xf]  ;;  %v6463_v16 = vor.u32 %v8572_v7, %v6462_v6  ;;  %v8672_v45 = vld [vmem:[%s13178_s1 + $0x544] sm:$0xf]  ;;  %v6371_v46 = vor.u32 %v8544_v43, %v6368_v44  ;;  %v6566_v6 = vld [vmem:[%s13178_s1 + $0x2c8] sm:$0xf]  ;;  %v1012_v7 = vunpack.c.h.b16 %v9395_v61 }
  0x37   :  { %1556 = vmatpush.bf16.msrb.mxu0 %v6595_v39  ;;  %v8636_v17 = vld [vmem:[%s13178_s1 + $0x41c] sm:$0xf0]  ;;  %1522 = vmatpush.bf16.msra.mxu3 %v6975_v15  ;;  %v8621_v39 = vld [vmem:[%s13178_s1 + $0x3a4] sm:$0xf0]  ;;  %v6880_v47 = vld [vmem:[%s13178_s1 + $0x560] sm:$0xf0] }
  0x38   :  { %v6719_v20 = vor.u32 %v8636_v17, %v6718_v14  ;;  %1484 = vmatpush.bf16.msra.mxu1 %v6463_v16  ;;  %v6663_v41 = vor.u32 %v8621_v39, %v6662_v38  ;;  %v8536_v50 = vld [vmem:[%s13178_s1 + $0x104] sm:$0xf]  ;;  %v6883_v52 = vor.u32 %v8672_v45, %v6880_v47  ;;  %v6567_v14 = vor.u32 %v8597_v13, %v6566_v6  ;;  %v6502_v39 = vld [vmem:[%s13178_s1 + $0x248] sm:$0xf] }
  0x39   :  { %v8664_v54 = vld [vmem:[%s13178_s1 + $0x504] sm:$0xf]  ;;  %v8557_v6 = vld [vmem:[%s13178_s1 + $0x1a4] sm:$0xf0] }
  0x3a   :  { %1471 = vmatmul.bf16.gmra.mxu0 %v9353_v42  ;;  %1503 = vmatpush.bf16.msra.mxu2 %v6719_v20  ;;  %v6848_v55 = vld [vmem:[%s13178_s1 + $0x520] sm:$0xf0]  ;;  %v6534_v20 = vld [vmem:[%s13178_s1 + $0x288] sm:$0xf] }
  0x3b   :  { %1557 = vmatpush.bf16.msrb.mxu0 %v6563_v51  ;;  %1534 = vmatpush.bf16.msrb.mxu3 %v6435_v24  ;;  %v6336_v51 = vld [vmem:[%s13178_s1 + $0x120] sm:$0xf0]  ;;  %v1220_v24 = vpack.c.b16 %v1012_v7, %v1012_v7  ;;  %v6918_v13 = vld [vmem:[%s13178_s1 + $0x588] sm:$0xf] }
  0x3c   :  { %1572 = vmatpush.bf16.msrb.mxu1 %v6947_v30  ;;  %v6339_v56 = vor.u32 %v8536_v50, %v6336_v51  ;;  %v8528_v5 = vld [vmem:[%s13178_s1 + $0xc4] sm:$0xf] }
  0x3d   :  { %v6304_v8 = vld [vmem:[%s13178_s1 + $0xe0] sm:$0xf0] }
  0x3e   :  { %v6307_v9 = vor.u32 %v8528_v5, %v6304_v8  ;;  %v6816_v11 = vld [vmem:[%s13178_s1 + $0x4e0] sm:$0xf0]  ;;  %v8693_v5 = vld [vmem:[%s13178_s1 + $0x5e4] sm:$0xf0]  ;;  %v8625_v8 = vld [vmem:[%s13178_s1 + $0x3cc] sm:$0xf] }
  0x3f   :  { %1558 = vmatpush.bf16.msrb.mxu0 %v6531_v60  ;;  %1535 = vmatpush.bf16.msrb.mxu3 %v6403_v36  ;;  %v6851_v60 = vor.u32 %v8664_v54, %v6848_v55  ;;  %v8520_v15 = vld [vmem:[%s13178_s1 + $0x84] sm:$0xf]  ;;  %v1438_v36 = vsel %vm38_vm3, %v1220_v24, 0 }
  0x40   :  { %1573 = vmatpush.bf16.msrb.mxu1 %v6915_v40  ;;  %v6272_v16 = vld [vmem:[%s13178_s1 + $0xa0] sm:$0xf0]  ;;  %1597 = vmatpush.bf16.msrb.mxu2 %v1438_v36  ;;  %v8581_v40 = vld [vmem:[%s13178_s1 + $0x264] sm:$0xf0] }
  0x41   :  { %v8648_v17 = vld [vmem:[%s13178_s1 + $0x484] sm:$0xf]  ;;  %v6275_v19 = vor.u32 %v8520_v15, %v6272_v16  ;;  %v8617_v15 = vld [vmem:[%s13178_s1 + $0x38c] sm:$0xf] }
  0x42   :  { %v6784_v61 = vld [vmem:[%s13178_s1 + $0x4a0] sm:$0xf0]  ;;  %v6664_v16 = vld [vmem:[%s13178_s1 + $0x3a8] sm:$0xf0] }
  0x43   :  { %1559 = vmatpush.bf16.msrb.mxu0 %v6499_v10  ;;  %1536 = vmatpush.bf16.msrb.mxu3 %v6371_v46  ;;  %v8656_v10 = vld [vmem:[%s13178_s1 + $0x4c4] sm:$0xf]  ;;  %v6787_v27 = vor.u32 %v8648_v17, %v6784_v61  ;;  %v8549_v61 = vld [vmem:[%s13178_s1 + $0x164] sm:$0xf0] }
  0x44   :  { %1574 = vmatpush.bf16.msrb.mxu1 %v6883_v52  ;;  %v6819_v12 = vor.u32 %v8656_v10, %v6816_v11  ;;  %v8512_v29 = vld [vmem:[%s13178_s1 + $0x44] sm:$0xf]  ;;  %v6470_v52 = vld [vmem:[%s13178_s1 + $0x208] sm:$0xf] }
  0x45   :  { %v6240_v30 = vld [vmem:[%s13178_s1 + $0x60] sm:$0xf0] }
  0x46   :  { %v6243_v33 = vor.u32 %v8512_v29, %v6240_v30  ;;  %v8640_v34 = vld [vmem:[%s13178_s1 + $0x444] sm:$0xf]  ;;  %v6342_v29 = vld [vmem:[%s13178_s1 + $0x108] sm:$0xf] }
  0x47   :  { %1560 = vmatpush.bf16.msrb.mxu0 %v6467_v21  ;;  %1537 = vmatpush.bf16.msrb.mxu3 %v6339_v56  ;;  %v8589_v21 = vld [vmem:[%s13178_s1 + $0x2a4] sm:$0xf0]  ;;  %v6752_v37 = vld [vmem:[%s13178_s1 + $0x460] sm:$0xf0] }
  0x48   :  { %1575 = vmatpush.bf16.msrb.mxu1 %v6851_v60  ;;  %v6535_v28 = vor.u32 %v8589_v21, %v6534_v20  ;;  %v6755_v38 = vor.u32 %v8640_v34, %v6752_v37  ;;  %v8504_v43 = vld [vmem:[%s13178_s1 + $0x4] sm:$0xf]  ;;  %v6886_v20 = vld [vmem:[%s13178_s1 + $0x548] sm:$0xf] }
  0x49   :  { %v6208_v44 = vld [vmem:[%s13178_s1 + $0x20] sm:$0xf0]  ;;  %v8677_v21 = vld [vmem:[%s13178_s1 + $0x564] sm:$0xf0] }
  0x4a   :  { %v8632_v45 = vld [vmem:[%s13178_s1 + $0x404] sm:$0xf]  ;;  %v6211_v46 = vor.u32 %v8504_v43, %v6208_v44  ;;  %v8541_v30 = vld [vmem:[%s13178_s1 + $0x124] sm:$0xf0]  ;;  %v6600_v43 = vld [vmem:[%s13178_s1 + $0x328] sm:$0xf0] }
  0x4b   :  { %1629 = vmatpush.bf16.msra.mxu0 %v6695_v32  ;;  %1538 = vmatpush.bf16.msrb.mxu3 %v6307_v9  ;;  %v6720_v47 = vld [vmem:[%s13178_s1 + $0x420] sm:$0xf0]  ;;  %v6696_v9 = vld [vmem:[%s13178_s1 + $0x3e8] sm:$0xf0] }
  0x4c   :  { %1576 = vmatpush.bf16.msrb.mxu1 %v6819_v12  ;;  %v8696_v48 = vld [vmem:[%s13178_s1 + $0x604] sm:$0xf]  ;;  %v6723_v50 = vor.u32 %v8632_v45, %v6720_v47  ;;  %v6699_v11 = vor.u32 %v8625_v8, %v6696_v9  ;;  %v6406_v12 = vld [vmem:[%s13178_s1 + $0x188] sm:$0xf]  ;;  %v6536_v8 = vld [vmem:[%s13178_s1 + $0x2a8] sm:$0xf0] }
  0x4d   :  { %v6976_v49 = vld [vmem:[%s13178_s1 + $0x620] sm:$0xf0]  ;;  %v6407_v7 = vor.u32 %v8557_v6, %v6406_v12  ;;  %v6246_v9 = vld [vmem:[%s13178_s1 + $0x48] sm:$0xf] }
  0x4e   :  { %v6979_v51 = vor.u32 %v8696_v48, %v6976_v49  ;;  %v6310_v48 = vld [vmem:[%s13178_s1 + $0xc8] sm:$0xf] }
  0x4f   :  { %1630 = vmatpush.bf16.msra.mxu0 %v6663_v41  ;;  %1539 = vmatpush.bf16.msrb.mxu3 %v6275_v19  ;;  %v6503_v41 = vor.u32 %v8581_v40, %v6502_v39  ;;  %v6374_v19 = vld [vmem:[%s13178_s1 + $0x148] sm:$0xf] }
  0x50   :  { %1577 = vmatpush.bf16.msrb.mxu1 %v6787_v27  ;;  %1598 = vmatpush.bf16.msrb.mxu2 %v6979_v51  ;;  %v6375_v24 = vor.u32 %v8549_v61, %v6374_v19  ;;  %v6887_v27 = vor.u32 %v8677_v21, %v6886_v20  ;;  %v8533_v49 = vld [vmem:[%s13178_s1 + $0xe4] sm:$0xf0] }
  0x51   :  { %v6822_v51 = vld [vmem:[%s13178_s1 + $0x4c8] sm:$0xf] }
  0x52   :  { %v6758_v12 = vld [vmem:[%s13178_s1 + $0x448] sm:$0xf] }
  0x53   :  { %1631 = vmatpush.bf16.msra.mxu0 %v6631_v53  ;;  %1540 = vmatpush.bf16.msrb.mxu3 %v6243_v33  ;;  %v8573_v53 = vld [vmem:[%s13178_s1 + $0x224] sm:$0xf0] }
  0x54   :  { %1578 = vmatpush.bf16.msrb.mxu1 %v6755_v38  ;;  %v6471_v57 = vor.u32 %v8573_v53, %v6470_v52  ;;  %v6343_v38 = vor.u32 %v8541_v30, %v6342_v29  ;;  %v8661_v52 = vld [vmem:[%s13178_s1 + $0x4e4] sm:$0xf0]  ;;  %v8593_v53 = vld [vmem:[%s13178_s1 + $0x2cc] sm:$0xf] }
  0x55   :  { %v8645_v6 = vld [vmem:[%s13178_s1 + $0x464] sm:$0xf0]  ;;  %v8569_v29 = vld [vmem:[%s13178_s1 + $0x20c] sm:$0xf] }
  0x56   :  { %v8509_v19 = vld [vmem:[%s13178_s1 + $0x24] sm:$0xf0]  ;;  %v6472_v30 = vld [vmem:[%s13178_s1 + $0x228] sm:$0xf0] }
  0x57   :  { %1632 = vmatpush.bf16.msra.mxu0 %v6599_v1  ;;  %1541 = vmatpush.bf16.msrb.mxu3 %v6211_v46  ;;  %v6438_v1 = vld [vmem:[%s13178_s1 + $0x1c8] sm:$0xf] }
  0x58   :  { %1579 = vmatpush.bf16.msrb.mxu1 %v6723_v50  ;;  %v6311_v50 = vor.u32 %v8533_v49, %v6310_v48  ;;  %v6982_v61 = vld [vmem:[%s13178_s1 + $0x608] sm:$0xf]  ;;  %v6920_v49 = vld [vmem:[%s13178_s1 + $0x5a8] sm:$0xf0] }
  0x59   :  { %v8701_v20 = vld [vmem:[%s13178_s1 + $0x624] sm:$0xf0] }
  0x5a   :  { %v6726_v21 = vld [vmem:[%s13178_s1 + $0x408] sm:$0xf] }
  0x5b   :  { %1633 = vmatpush.bf16.msra.mxu0 %v6567_v14  ;;  %v8685_v14 = vld [vmem:[%s13178_s1 + $0x5a4] sm:$0xf0] }
  0x5c   :  { %v6919_v17 = vor.u32 %v8685_v14, %v6918_v13  ;;  %v8577_v13 = vld [vmem:[%s13178_s1 + $0x24c] sm:$0xf] }
  0x5f   :  { %1634 = vmatpush.bf16.msra.mxu0 %v6535_v28 }
  0x63   :  { %1635 = vmatpush.bf16.msra.mxu0 %v6503_v41  ;;  %v8601_v41 = vld [vmem:[%s13178_s1 + $0x30c] sm:$0xf] }
  0x64   :  { %v6603_v47 = vor.u32 %v8601_v41, %v6600_v43  ;;  %v8553_v41 = vld [vmem:[%s13178_s1 + $0x18c] sm:$0xf] }
  0x65   :  { %v6408_v43 = vld [vmem:[%s13178_s1 + $0x1a8] sm:$0xf0] }
  0x66   :  { %v6411_v48 = vor.u32 %v8553_v41, %v6408_v43  ;;  %v8505_v43 = vld [vmem:[%s13178_s1 + $0xc] sm:$0xf] }
  0x67   :  { %1636 = vmatpush.bf16.msra.mxu0 %v6471_v57  ;;  %v6278_v57 = vld [vmem:[%s13178_s1 + $0x88] sm:$0xf] }
  0x7d   :  { %v103_v59 = vpop.permute.xlu0 %102 }
  0x7e   :  { %v110_v63 = vrot.slane %v103_v59, 4  ;;  %v107_v0 = vpop.permute.xlu1 %106 }
  0x7f   :  { %v112_v2 = vrot.slane %v107_v0, 4 }
  0x80   :  { %v115_v3 = vsel %vm114_vm8, %v110_v63, %v103_v59  ;;  %132 = vst.msk [vmem:[#allocation2 + $0xc] sm:$0xf] %vm131_vm9, %v110_v63 }
  0x81   :  { %130 = vst.msk [vmem:[#allocation2 + $0x4] sm:$0xff] %vm9514_vm10, %v115_v3  ;;  %v117_v4 = vsel %vm114_vm8, %v112_v2, %v107_v0  ;;  %v6950_v3 = vld [vmem:[%s13178_s1 + $0x5c8] sm:$0xf] }
  0x82   :  { %135 = vst.msk [vmem:[#allocation2 + $0x24] sm:$0xff] %vm9514_vm10, %v117_v4  ;;  %v6951_v10 = vor.u32 %v8693_v5, %v6950_v3  ;;  %v8653_v3 = vld [vmem:[%s13178_s1 + $0x4a4] sm:$0xf0] }
  0x83   :  { %136 = vst.msk [vmem:[#allocation2 + $0x2c] sm:$0xf] %vm131_vm9, %v112_v2  ;;  %v8565_v2 = vld [vmem:[%s13178_s1 + $0x1e4] sm:$0xf0] }
  0x84   :  { %v6439_v4 = vor.u32 %v8565_v2, %v6438_v1  ;;  %v6790_v2 = vld [vmem:[%s13178_s1 + $0x488] sm:$0xf] }
  0x85   :  { %v105_v18 = vpop.permute.xlu0 %104  ;;  %v6791_v5 = vor.u32 %v8653_v3, %v6790_v2  ;;  %v8537_v3 = vld [vmem:[%s13178_s1 + $0x10c] sm:$0xf] }
  0x86   :  { %v111_v22 = vrot.slane %v105_v18, 4  ;;  %v109_v23 = vpop.permute.xlu1 %108 }
  0x87   :  { %v113_v31 = vrot.slane %v109_v23, 4  ;;  %v8497_v54 = vld [vmem:[#allocation2 + $0xc] sm:$0xf] }
  0x88   :  { %v116_v32 = vsel %vm114_vm8, %v111_v22, %v105_v18  ;;  %134 = vst.msk [vmem:[#allocation2 + $0x1c] sm:$0xf] %vm131_vm9, %v111_v22  ;;  %v8496_v56 = vld [vmem:[#allocation2 + $0x4] sm:$0xf]  ;;  %v6182_v60 = vld [vmem:[#allocation2 + $0x8] sm:$0xf]  ;;  %v6667_v18 = vor.u32 %v8617_v15, %v6664_v16 }
  0x89   :  { %133 = vst.msk [vmem:[#allocation2 + $0x14] sm:$0xff] %vm9514_vm10, %v116_v32  ;;  %v118_v35 = vsel %vm114_vm8, %v113_v31, %v109_v23  ;;  %v8609_v22 = vld [vmem:[%s13178_s1 + $0x34c] sm:$0xf]  ;;  %v8669_v32 = vld [vmem:[%s13178_s1 + $0x524] sm:$0xf0]  ;;  %vm2128_vm8 = vmor %vm10845_vm4, %vm10833_vm0 }
  0x8a   :  { %137 = vst.msk [vmem:[#allocation2 + $0x34] sm:$0xff] %vm9514_vm10, %v118_v35  ;;  %v6632_v23 = vld [vmem:[%s13178_s1 + $0x368] sm:$0xf0]  ;;  %v6198_v34 = vld [vmem:[#allocation2 + $0x28] sm:$0xf]  ;;  %vm10857_vm10 = vmand %vm2132_vm5, %vm13190_vm12 }
  0x8b   :  { %138 = vst.msk [vmem:[#allocation2 + $0x3c] sm:$0xf] %vm131_vm9, %v113_v31  ;;  %v6635_v28 = vor.u32 %v8609_v22, %v6632_v23  ;;  %v6854_v31 = vld [vmem:[%s13178_s1 + $0x508] sm:$0xf]  ;;  %v8500_v33 = vld [vmem:[#allocation2 + $0x24] sm:$0xf]  ;;  %v6983_v23 = vor.u32 %v8701_v20, %v6982_v61 }
  0x8c   :  { %v8501_v35 = vld [vmem:[#allocation2 + $0x2c] sm:$0xf]  ;;  %v6855_v40 = vor.u32 %v8669_v32, %v6854_v31  ;;  %v6504_v16 = vld [vmem:[%s13178_s1 + $0x268] sm:$0xf0]  ;;  %v8637_v22 = vld [vmem:[%s13178_s1 + $0x424] sm:$0xf0]  ;;  %v6475_v31 = vor.u32 %v8569_v29, %v6472_v30 }
  0x8d   :  { %v8561_v32 = vld [vmem:[%s13178_s1 + $0x1cc] sm:$0xf]  ;;  %v8598_v61 = vld [vmem:[%s13178_s1 + $0x2ec] sm:$0xf0]  ;;  %vm2145_vm9 = vsmask.f32 7954 }
  0x8e   :  { %v8590_v29 = vld [vmem:[%s13178_s1 + $0x2ac] sm:$0xf0]  ;;  %vm2146_vm0 = vmand %vm2125_vm15, %vm2145_vm9  ;;  %vm2169_vm15 = vcmask 257152  }
  0x8f   :  { %v6184_v55 = vld [vmem:[#allocation2 + $0x18] sm:$0xf0] }
  0x90   :  { %v9614_v58 = vor.u32 %v8497_v54, %v6184_v55  ;;  %v6176_v59 = vld [vmem:[#allocation2 + $0x10] sm:$0xf0]  ;;  %v8499_v62 = vld [vmem:[#allocation2 + $0x14] sm:$0xf0]  ;;  %v6823_v54 = vor.u32 %v8661_v52, %v6822_v51  ;;  %v6568_v55 = vld [vmem:[%s13178_s1 + $0x2e8] sm:$0xf0] }
  0x91   :  { %v9616_v63 = vor.u32 %v8496_v56, %v6176_v59  ;;  %v9618_v0 = vor.u32 %v8499_v62, %v6182_v60  ;;  %v6192_v37 = vld [vmem:[#allocation2 + $0x30] sm:$0xf0]  ;;  %v8503_v39 = vld [vmem:[#allocation2 + $0x34] sm:$0xf0]  ;;  %v9729_v56 = vld [vmem:[%s13178_s1 + $0x648] sm:$0xff]  ;;  %v6571_v62 = vor.u32 %v8593_v53, %v6568_v55 }
  0x92   :  { %7004 = vmatmul.msk.bf16.vlgmr.msra.gmra.mxu3 %vm1427_vm11, %v9614_v58  ;;  %v6200_v36 = vld [vmem:[#allocation2 + $0x38] sm:$0xf0]  ;;  %v9699_v45 = vor.u32 %v8500_v33, %v6192_v37  ;;  %v9701_v46 = vor.u32 %v8503_v39, %v6198_v34  ;;  %v8525_v59 = vld [vmem:[%s13178_s1 + $0xa4] sm:$0xf0]  ;;  %v1013_v60 = vunpack.c.l.b16 %v9729_v56  ;;  %v6440_v33 = vld [vmem:[%s13178_s1 + $0x1e8] sm:$0xf0]  ;;  %v1014_v20 = vunpack.c.h.b16 %v9729_v56 }
  0x93   :  { %1485 = vmatmul.bf16.vlgmr.msra.gmra.mxu1 %v9616_v63  ;;  %1504 = vmatmul.bf16.vlgmr.msra.gmra.mxu2 %v9618_v0  ;;  %v9697_v44 = vor.u32 %v8501_v35, %v6200_v36  ;;  %v6279_v1 = vor.u32 %v8525_v59, %v6278_v57  ;;  %v6443_v34 = vor.u32 %v8561_v32, %v6440_v33  ;;  %v8689_v35 = vld [vmem:[%s13178_s1 + $0x5cc] sm:$0xf]  ;;  %v6702_v37 = vld [vmem:[%s13178_s1 + $0x3d0] sm:$0xf] }
  0x94   :  { %1561 = vmatmul.bf16.vlgmr.msrb.gmra.mxu0 %v9616_v63  ;;  %1610 = vmatpush.bf16.msra.mxu3 %v6439_v4  ;;  %v8585_v4 = vld [vmem:[%s13178_s1 + $0x28c] sm:$0xf]  ;;  %v8630_v39 = vld [vmem:[%s13178_s1 + $0x3ec] sm:$0xf0]  ;;  %v1222_v30 = vpack.c.b16 %v1014_v20, %v1014_v20 }
  0x95   :  { %1648 = vmatpush.bf16.msra.mxu1 %v6951_v10  ;;  %1705 = vmatpush.bf16.msrb.mxu0 %v6699_v11  ;;  %v8517_v10 = vld [vmem:[%s13178_s1 + $0x64] sm:$0xf0]  ;;  %v1221_v11 = vpack.c.b16 %v1013_v60, %v1013_v60  ;;  %v6539_v14 = vor.u32 %v8585_v4, %v6536_v8  ;;  %v6952_v36 = vld [vmem:[%s13178_s1 + $0x5e8] sm:$0xf0]  ;;  %v8622_v51 = vld [vmem:[%s13178_s1 + $0x3ac] sm:$0xf0] }
  0x96   :  { %v6247_v15 = vor.u32 %v8517_v10, %v6246_v9  ;;  %v6376_v55 = vld [vmem:[%s13178_s1 + $0x168] sm:$0xf0]  ;;  %v6638_v60 = vld [vmem:[%s13178_s1 + $0x350] sm:$0xf] }
  0x97   :  { %v8673_v57 = vld [vmem:[%s13178_s1 + $0x54c] sm:$0xf]  ;;  %v6606_v10 = vld [vmem:[%s13178_s1 + $0x310] sm:$0xf] }
  0x98   :  { %1611 = vmatpush.bf16.msra.mxu3 %v6407_v7  ;;  %v1441_v7 = vsel %vm38_vm3, %v1221_v11, 0  ;;  %v6888_v59 = vld [vmem:[%s13178_s1 + $0x568] sm:$0xf0]  ;;  %v8606_v11 = vld [vmem:[%s13178_s1 + $0x32c] sm:$0xf0] }
  0x99   :  { %1649 = vmatpush.bf16.msra.mxu1 %v6919_v17  ;;  %1706 = vmatpush.bf16.msrb.mxu0 %v6667_v18  ;;  %v6214_v17 = vld [vmem:[%s13178_s1 + $0x8] sm:$0xf]  ;;  %v6759_v18 = vor.u32 %v8645_v6, %v6758_v12  ;;  %v6891_v2 = vor.u32 %v8673_v57, %v6888_v59  ;;  %v6344_v4 = vld [vmem:[%s13178_s1 + $0x128] sm:$0xf0]  ;;  %v6542_v56 = vld [vmem:[%s13178_s1 + $0x290] sm:$0xf] }
  0x9a   :  { %1673 = vmatpush.bf16.msra.mxu2 %v1441_v7  ;;  %v8665_v8 = vld [vmem:[%s13178_s1 + $0x50c] sm:$0xf]  ;;  %v6347_v12 = vor.u32 %v8537_v3, %v6344_v4  ;;  %v6543_v32 = vor.u32 %v8590_v29, %v6542_v56  ;;  %v6958_v3 = vld [vmem:[%s13178_s1 + $0x5d0] sm:$0xf] }
  0x9b   :  { %v6856_v9 = vld [vmem:[%s13178_s1 + $0x528] sm:$0xf0]  ;;  %v8694_v4 = vld [vmem:[%s13178_s1 + $0x5ec] sm:$0xf0] }
  0x9c   :  { %1612 = vmatpush.bf16.msra.mxu3 %v6375_v24  ;;  %v6507_v24 = vor.u32 %v8577_v13, %v6504_v16  ;;  %v6859_v6 = vor.u32 %v8665_v8, %v6856_v9  ;;  %v6607_v13 = vor.u32 %v8606_v11, %v6606_v10  ;;  %v8529_v7 = vld [vmem:[%s13178_s1 + $0xcc] sm:$0xf]  ;;  %v6959_v8 = vor.u32 %v8694_v4, %v6958_v3  ;;  %v6704_v9 = vld [vmem:[%s13178_s1 + $0x3f0] sm:$0xf0]  ;;  %v6414_v11 = vld [vmem:[%s13178_s1 + $0x190] sm:$0xf] }
  0x9d   :  { %1650 = vmatpush.bf16.msra.mxu1 %v6887_v27  ;;  %1707 = vmatpush.bf16.msrb.mxu0 %v6635_v28  ;;  %v6215_v27 = vor.u32 %v8509_v19, %v6214_v17  ;;  %v6727_v28 = vor.u32 %v8637_v22, %v6726_v21  ;;  %v8657_v16 = vld [vmem:[%s13178_s1 + $0x4cc] sm:$0xf]  ;;  %v8678_v20 = vld [vmem:[%s13178_s1 + $0x56c] sm:$0xf0] }
  0x9e   :  { %1674 = vmatpush.bf16.msra.mxu2 %v6983_v23  ;;  %v6824_v17 = vld [vmem:[%s13178_s1 + $0x4e8] sm:$0xf0]  ;;  %v6862_v29 = vld [vmem:[%s13178_s1 + $0x510] sm:$0xf] }
  0x9f   :  { %v6827_v19 = vor.u32 %v8657_v16, %v6824_v17  ;;  %v8521_v22 = vld [vmem:[%s13178_s1 + $0x8c] sm:$0xf]  ;;  %v6766_v4 = vld [vmem:[%s13178_s1 + $0x450] sm:$0xf] }
  0xa0   :  { %1613 = vmatpush.bf16.msra.mxu3 %v6343_v38  ;;  %v6955_v38 = vor.u32 %v8689_v35, %v6952_v36  ;;  %v6280_v23 = vld [vmem:[%s13178_s1 + $0xa8] sm:$0xf0] }
  0xa1   :  { %1651 = vmatpush.bf16.msra.mxu1 %v6855_v40  ;;  %1708 = vmatpush.bf16.msrb.mxu0 %v6603_v47  ;;  %v6703_v40 = vor.u32 %v8630_v39, %v6702_v37  ;;  %v8681_v47 = vld [vmem:[%s13178_s1 + $0x58c] sm:$0xf]  ;;  %v6510_v37 = vld [vmem:[%s13178_s1 + $0x250] sm:$0xf]  ;;  %v1444_v39 = vsel %vm38_vm3, %v1222_v30, 0 }
  0xa2   :  { %7005 = vmatmul.msk.bf16.gmra.mxu3 %vm1427_vm11, %v9697_v44  ;;  %v6923_v52 = vor.u32 %v8681_v47, %v6920_v49  ;;  %v8513_v33 = vld [vmem:[%s13178_s1 + $0x4c] sm:$0xf]  ;;  %v8670_v30 = vld [vmem:[%s13178_s1 + $0x52c] sm:$0xf0] }
  0xa3   :  { %1490 = vmatmul.bf16.gmra.mxu1 %v9699_v45  ;;  %1509 = vmatmul.bf16.gmra.mxu2 %v9701_v46  ;;  %v8641_v35 = vld [vmem:[%s13178_s1 + $0x44c] sm:$0xf] }
  0xa4   :  { %1566 = vmatmul.bf16.gmra.mxu0 %v9699_v45  ;;  %1614 = vmatpush.bf16.msra.mxu3 %v6311_v50  ;;  %v6670_v50 = vld [vmem:[%s13178_s1 + $0x390] sm:$0xf]  ;;  %v6760_v36 = vld [vmem:[%s13178_s1 + $0x468] sm:$0xf0] }
  0xa5   :  { %1652 = vmatpush.bf16.msra.mxu1 %v6823_v54  ;;  %1709 = vmatpush.bf16.msrb.mxu0 %v6571_v62  ;;  %v6671_v53 = vor.u32 %v8622_v51, %v6670_v50  ;;  %v8545_v54 = vld [vmem:[%s13178_s1 + $0x14c] sm:$0xf]  ;;  %v8614_v62 = vld [vmem:[%s13178_s1 + $0x36c] sm:$0xf0]  ;;  %v6763_v41 = vor.u32 %v8641_v35, %v6760_v36 }
  0xa6   :  { %v6216_v47 = vld [vmem:[%s13178_s1 + $0x28] sm:$0xf0]  ;;  %v6318_v36 = vld [vmem:[%s13178_s1 + $0xd0] sm:$0xf] }
  0xa7   :  { %v6728_v50 = vld [vmem:[%s13178_s1 + $0x428] sm:$0xf0]  ;;  %v6219_v57 = vor.u32 %v8505_v43, %v6216_v47  ;;  %v6576_v47 = vld [vmem:[%s13178_s1 + $0x2f0] sm:$0xf0] }
  0xa8   :  { %1615 = vmatpush.bf16.msra.mxu3 %v6279_v1  ;;  %v6379_v1 = vor.u32 %v8545_v54, %v6376_v55  ;;  %v8697_v51 = vld [vmem:[%s13178_s1 + $0x60c] sm:$0xf]  ;;  %v6478_v54 = vld [vmem:[%s13178_s1 + $0x210] sm:$0xf] }
  0xa9   :  { %1653 = vmatpush.bf16.msra.mxu1 %v6791_v5  ;;  %1710 = vmatpush.bf16.msrb.mxu0 %v6539_v14  ;;  %v6639_v5 = vor.u32 %v8614_v62, %v6638_v60  ;;  %v6312_v14 = vld [vmem:[%s13178_s1 + $0xe8] sm:$0xf0]  ;;  %v8574_v55 = vld [vmem:[%s13178_s1 + $0x22c] sm:$0xf0] }
  0xaa   :  { %v6479_v60 = vor.u32 %v8574_v55, %v6478_v54  ;;  %v6446_v62 = vld [vmem:[%s13178_s1 + $0x1d0] sm:$0xf] }
  0xab   :  { %v6798_v54 = vld [vmem:[%s13178_s1 + $0x490] sm:$0xf] }
  0xac   :  { %1616 = vmatpush.bf16.msra.mxu3 %v6247_v15  ;;  %v6315_v15 = vor.u32 %v8529_v7, %v6312_v14  ;;  %v8686_v7 = vld [vmem:[%s13178_s1 + $0x5ac] sm:$0xf0]  ;;  %v8618_v14 = vld [vmem:[%s13178_s1 + $0x394] sm:$0xf] }
  0xad   :  { %1654 = vmatpush.bf16.msra.mxu1 %v6759_v18  ;;  %1711 = vmatpush.bf16.msrb.mxu0 %v6507_v24  ;;  %v6574_v18 = vld [vmem:[%s13178_s1 + $0x2d0] sm:$0xf]  ;;  %v8649_v24 = vld [vmem:[%s13178_s1 + $0x48c] sm:$0xf] }
  0xae   :  { %v6575_v21 = vor.u32 %v8598_v61, %v6574_v18  ;;  %v6382_v18 = vld [vmem:[%s13178_s1 + $0x150] sm:$0xf] }
  0xaf   :  { %v6894_v61 = vld [vmem:[%s13178_s1 + $0x550] sm:$0xf] }
  0xb0   :  { %1617 = vmatpush.bf16.msra.mxu3 %v6215_v27  ;;  %v6283_v27 = vor.u32 %v8521_v22, %v6280_v23  ;;  %v6640_v22 = vld [vmem:[%s13178_s1 + $0x370] sm:$0xf0]  ;;  %v8654_v55 = vld [vmem:[%s13178_s1 + $0x4ac] sm:$0xf0] }
  0xb1   :  { %1655 = vmatpush.bf16.msra.mxu1 %v6727_v28  ;;  %1712 = vmatpush.bf16.msrb.mxu0 %v6475_v31  ;;  %v6792_v28 = vld [vmem:[%s13178_s1 + $0x4a8] sm:$0xf0] }
  0xb2   :  { %1542 = vmatmul.bf16.vlgmr.msrb.gmra.mxu3 %v9326_v26  ;;  %v6795_v31 = vor.u32 %v8649_v24, %v6792_v28  ;;  %v6895_v24 = vor.u32 %v8678_v20, %v6894_v61  ;;  %v8542_v28 = vld [vmem:[%s13178_s1 + $0x12c] sm:$0xf0]  ;;  %v8570_v20 = vld [vmem:[%s13178_s1 + $0x214] sm:$0xf] }
  0xb3   :  { %1580 = vmatmul.bf16.vlgmr.msrb.gmra.mxu1 %v9618_v0  ;;  %7006 = vmatmul.msk.bf16.vlgmr.msrb.gmra.mxu2 %vm1427_vm11, %v9614_v58  ;;  %v8702_v61 = vld [vmem:[%s13178_s1 + $0x62c] sm:$0xf0] }
  0xb4   :  { %1637 = vmatmul.bf16.vlgmr.msra.gmra.mxu0 %v9616_v63  ;;  %1686 = vmatpush.bf16.msrb.mxu3 %v6443_v34  ;;  %v6248_v34 = vld [vmem:[%s13178_s1 + $0x68] sm:$0xf0] }
  0xb5   :  { %1724 = vmatpush.bf16.msrb.mxu1 %v6955_v38  ;;  %1781 = vmatpush.bf16.msra.mxu0 %v6703_v40  ;;  %v8582_v38 = vld [vmem:[%s13178_s1 + $0x26c] sm:$0xf0]  ;;  %v6251_v40 = vor.u32 %v8513_v33, %v6248_v34  ;;  %v6863_v34 = vor.u32 %v8670_v30, %v6862_v29  ;;  %v6960_v29 = vld [vmem:[%s13178_s1 + $0x5f0] sm:$0xf0]  ;;  %v6710_v30 = vld [vmem:[%s13178_s1 + $0x3d8] sm:$0xf] }
  0xb6   :  { %1749 = vmatpush.bf16.msrb.mxu2 %v1444_v39  ;;  %v6511_v49 = vor.u32 %v8582_v38, %v6510_v37  ;;  %v8534_v37 = vld [vmem:[%s13178_s1 + $0xec] sm:$0xf0] }
  0xb7   :  { %v6319_v38 = vor.u32 %v8534_v37, %v6318_v36  ;;  %v6830_v39 = vld [vmem:[%s13178_s1 + $0x4d0] sm:$0xf]  ;;  %v6416_v36 = vld [vmem:[%s13178_s1 + $0x1b0] sm:$0xf0] }
  0xb8   :  { %1687 = vmatpush.bf16.msrb.mxu3 %v6411_v48  ;;  %v8633_v48 = vld [vmem:[%s13178_s1 + $0x40c] sm:$0xf] }
  0xb9   :  { %1725 = vmatpush.bf16.msrb.mxu1 %v6923_v52  ;;  %1782 = vmatpush.bf16.msra.mxu0 %v6671_v53  ;;  %v6984_v52 = vld [vmem:[%s13178_s1 + $0x628] sm:$0xf0]  ;;  %v6731_v59 = vor.u32 %v8633_v48, %v6728_v50  ;;  %v10058_v48 = vld [vmem:[%s13178_s1 + $0x650] sm:$0xff] }
  0xba   :  { %v6987_v53 = vor.u32 %v8697_v51, %v6984_v52  ;;  %v6286_v50 = vld [vmem:[%s13178_s1 + $0x90] sm:$0xf]  ;;  %v1015_v52 = vunpack.c.l.b16 %v10058_v48 }
  0xbb   :  { %v8526_v51 = vld [vmem:[%s13178_s1 + $0xac] sm:$0xf0] }
  0xbc   :  { %1688 = vmatpush.bf16.msrb.mxu3 %v6379_v1  ;;  %1750 = vmatpush.bf16.msrb.mxu2 %v6987_v53  ;;  %v8566_v1 = vld [vmem:[%s13178_s1 + $0x1ec] sm:$0xf0]  ;;  %v6287_v53 = vor.u32 %v8526_v51, %v6286_v50  ;;  %v6384_v50 = vld [vmem:[%s13178_s1 + $0x170] sm:$0xf0] }
  0xbd   :  { %1726 = vmatpush.bf16.msrb.mxu1 %v6891_v2  ;;  %1783 = vmatpush.bf16.msra.mxu0 %v6639_v5  ;;  %v6447_v2 = vor.u32 %v8566_v1, %v6446_v62  ;;  %v8626_v5 = vld [vmem:[%s13178_s1 + $0x3d4] sm:$0xf]  ;;  %v6254_v62 = vld [vmem:[%s13178_s1 + $0x50] sm:$0xf] }
  0xbe   :  { %v6707_v10 = vor.u32 %v8626_v5, %v6704_v9  ;;  %v8518_v1 = vld [vmem:[%s13178_s1 + $0x6c] sm:$0xf0] }
  0xbf   :  { %v8646_v5 = vld [vmem:[%s13178_s1 + $0x46c] sm:$0xf0]  ;;  %v6255_v9 = vor.u32 %v8518_v1, %v6254_v62  ;;  %v8538_v62 = vld [vmem:[%s13178_s1 + $0x114] sm:$0xf] }
  0xc0   :  { %1689 = vmatpush.bf16.msrb.mxu3 %v6347_v12  ;;  %v8558_v12 = vld [vmem:[%s13178_s1 + $0x1ac] sm:$0xf0]  ;;  %v6352_v1 = vld [vmem:[%s13178_s1 + $0x130] sm:$0xf0] }
  0xc1   :  { %1727 = vmatpush.bf16.msrb.mxu1 %v6859_v6  ;;  %1784 = vmatpush.bf16.msra.mxu0 %v6607_v13  ;;  %v6926_v6 = vld [vmem:[%s13178_s1 + $0x590] sm:$0xf]  ;;  %v6415_v13 = vor.u32 %v8558_v12, %v6414_v11  ;;  %v10097_v11 = vpop.f32.mrf.mxu0 }
  0xc2   :  { %1547 = vmatmul.bf16.gmra.mxu3 %v9353_v42  ;;  %v6927_v16 = vor.u32 %v8686_v7, %v6926_v6  ;;  %v6767_v6 = vor.u32 %v8646_v5, %v6766_v4  ;;  %v8510_v7 = vld [vmem:[%s13178_s1 + $0x2c] sm:$0xf0]  ;;  %v6864_v4 = vld [vmem:[%s13178_s1 + $0x530] sm:$0xf0]  ;;  %v6614_v5 = vld [vmem:[%s13178_s1 + $0x318] sm:$0xf] }
  0xc3   :  { %1585 = vmatmul.bf16.gmra.mxu1 %v9701_v46  ;;  %7007 = vmatmul.msk.bf16.gmra.mxu2 %vm1427_vm11, %v9697_v44 }
  0xc4   :  { %1642 = vmatmul.bf16.gmra.mxu0 %v9699_v45  ;;  %1690 = vmatpush.bf16.msrb.mxu3 %v6315_v15  ;;  %v6672_v15 = vld [vmem:[%s13178_s1 + $0x3b0] sm:$0xf0] }
  0xc5   :  { %1728 = vmatpush.bf16.msrb.mxu1 %v6827_v19  ;;  %1785 = vmatpush.bf16.msra.mxu0 %v6575_v21  ;;  %v6675_v17 = vor.u32 %v8618_v14, %v6672_v15  ;;  %v8550_v19 = vld [vmem:[%s13178_s1 + $0x16c] sm:$0xf0]  ;;  %v8610_v21 = vld [vmem:[%s13178_s1 + $0x354] sm:$0xf] }
  0xc6   :  { %v6383_v23 = vor.u32 %v8550_v19, %v6382_v18  ;;  %v6643_v56 = vor.u32 %v8610_v21, %v6640_v22  ;;  %v6990_v18 = vld [vmem:[%s13178_s1 + $0x610] sm:$0xf]  ;;  %v6480_v21 = vld [vmem:[%s13178_s1 + $0x230] sm:$0xf0] }
  0xc7   :  { %v6991_v22 = vor.u32 %v8702_v61, %v6990_v18  ;;  %v1016_v18 = vunpack.c.h.b16 %v10058_v48  ;;  %v10232_v61 = vld [vmem:[%s13179_s2] sm:$0xff]  ;;  %v8650_v48 = vld [vmem:[%s13178_s1 + $0x494] sm:$0xf] }
  0xc8   :  { %1691 = vmatpush.bf16.msrb.mxu3 %v6283_v27  ;;  %v6350_v27 = vld [vmem:[%s13178_s1 + $0x110] sm:$0xf] }
  0xc9   :  { %1729 = vmatpush.bf16.msrb.mxu1 %v6795_v31  ;;  %1786 = vmatpush.bf16.msra.mxu0 %v6543_v32  ;;  %v8602_v31 = vld [vmem:[%s13178_s1 + $0x314] sm:$0xf]  ;;  %v6351_v33 = vor.u32 %v8542_v28, %v6350_v27 }
  0xca   :  { %v6608_v32 = vld [vmem:[%s13178_s1 + $0x330] sm:$0xf0] }
  0xcb   :  { %v6611_v35 = vor.u32 %v8602_v31, %v6608_v32  ;;  %v6448_v27 = vld [vmem:[%s13178_s1 + $0x1f0] sm:$0xf0]  ;;  %v10143_v31 = vpop.f32.mrf.mxu0 }
  0xcc   :  { %1692 = vmatpush.bf16.msrb.mxu3 %v6251_v40  ;;  %v8662_v40 = vld [vmem:[%s13178_s1 + $0x4ec] sm:$0xf0] }
  0xcd   :  { %1730 = vmatpush.bf16.msrb.mxu1 %v6763_v41  ;;  %1787 = vmatpush.bf16.msra.mxu0 %v6511_v49  ;;  %v8594_v41 = vld [vmem:[%s13178_s1 + $0x2d4] sm:$0xf]  ;;  %v6831_v43 = vor.u32 %v8662_v40, %v6830_v39  ;;  %v6678_v40 = vld [vmem:[%s13178_s1 + $0x398] sm:$0xf] }
  0xce   :  { %v6579_v49 = vor.u32 %v8594_v41, %v6576_v47  ;;  %v6928_v39 = vld [vmem:[%s13178_s1 + $0x5b0] sm:$0xf0] }
  0xd0   :  { %1693 = vmatpush.bf16.msrb.mxu3 %v6219_v57  ;;  %v8586_v57 = vld [vmem:[%s13178_s1 + $0x294] sm:$0xf] }
  0xd1   :  { %1731 = vmatpush.bf16.msrb.mxu1 %v6731_v59  ;;  %1788 = vmatpush.bf16.msra.mxu0 %v6479_v60  ;;  %v6799_v59 = vor.u32 %v8654_v55, %v6798_v54  ;;  %v6544_v60 = vld [vmem:[%s13178_s1 + $0x2b0] sm:$0xf0]  ;;  %v6646_v54 = vld [vmem:[%s13178_s1 + $0x358] sm:$0xf] }
  0xd2   :  { %1618 = vmatmul.bf16.vlgmr.msra.gmra.mxu3 %v9326_v26  ;;  %v6547_v3 = vor.u32 %v8586_v57, %v6544_v60  ;;  %v8615_v57 = vld [vmem:[%s13178_s1 + $0x374] sm:$0xf0] }
  0xd3   :  { %1656 = vmatmul.bf16.vlgmr.msra.gmra.mxu1 %v9618_v0  ;;  %7008 = vmatmul.msk.bf16.vlgmr.msra.gmra.mxu2 %vm1427_vm11, %v9614_v58  ;;  %v10185_v60 = vpop.f32.mrf.mxu0 }
  0xd4   :  { %1713 = vmatmul.bf16.vlgmr.msrb.gmra.mxu0 %v9616_v63  ;;  %1762 = vmatpush.bf16.msra.mxu3 %v6447_v2  ;;  %v1223_v2 = vpack.c.b16 %v1015_v52, %v1015_v52  ;;  %v8674_v52 = vld [vmem:[%s13178_s1 + $0x554] sm:$0xf] }
  0xd5   :  { %1800 = vmatpush.bf16.msra.mxu1 %v6959_v8  ;;  %1857 = vmatpush.bf16.msrb.mxu0 %v6707_v10  ;;  %v8578_v8 = vld [vmem:[%s13178_s1 + $0x254] sm:$0xf] }
  0xd6   :  { %v6512_v10 = vld [vmem:[%s13178_s1 + $0x270] sm:$0xf0]  ;;  %v1447_v12 = vsel %vm38_vm3, %v1223_v2, 0  ;;  %v6355_v2 = vor.u32 %v8538_v62, %v6352_v1 }
  0xd7   :  { %1825 = vmatpush.bf16.msra.mxu2 %v1447_v12  ;;  %v6515_v14 = vor.u32 %v8578_v8, %v6512_v10  ;;  %v8530_v12 = vld [vmem:[%s13178_s1 + $0xd4] sm:$0xf] }
  0xd8   :  { %1763 = vmatpush.bf16.msra.mxu3 %v6415_v13  ;;  %v6222_v13 = vld [vmem:[%s13178_s1 + $0x10] sm:$0xf] }
  0xd9   :  { %1801 = vmatpush.bf16.msra.mxu1 %v6927_v16  ;;  %1858 = vmatpush.bf16.msrb.mxu0 %v6675_v17  ;;  %v6223_v15 = vor.u32 %v8510_v7, %v6222_v13  ;;  %v6734_v16 = vld [vmem:[%s13178_s1 + $0x410] sm:$0xf]  ;;  %v8658_v7 = vld [vmem:[%s13178_s1 + $0x4d4] sm:$0xf] }
  0xda   :  { %v8638_v17 = vld [vmem:[%s13178_s1 + $0x42c] sm:$0xf0] }
  0xdb   :  { %v6735_v19 = vor.u32 %v8638_v17, %v6734_v16  ;;  %1826 = vmatpush.bf16.msra.mxu2 %v6991_v22  ;;  %v8599_v17 = vld [vmem:[%s13178_s1 + $0x2f4] sm:$0xf0]  ;;  %v1224_v22 = vpack.c.b16 %v1016_v18, %v1016_v18 }
  0xdc   :  { %1764 = vmatpush.bf16.msra.mxu3 %v6383_v23  ;;  %v6483_v23 = vor.u32 %v8570_v20, %v6480_v21  ;;  %v8522_v20 = vld [vmem:[%s13178_s1 + $0x94] sm:$0xf] }
  0xdd   :  { %1802 = vmatpush.bf16.msra.mxu1 %v6895_v24  ;;  %1859 = vmatpush.bf16.msrb.mxu0 %v6643_v56  ;;  %v8562_v24 = vld [vmem:[%s13178_s1 + $0x1d4] sm:$0xf] }
  0xde   :  { %v6451_v28 = vor.u32 %v8562_v24, %v6448_v27  ;;  %v8690_v56 = vld [vmem:[%s13178_s1 + $0x5d4] sm:$0xf]  ;;  %v6550_v27 = vld [vmem:[%s13178_s1 + $0x298] sm:$0xf] }
  0xdf   :  { %v6963_v32 = vor.u32 %v8690_v56, %v6960_v29  ;;  %v6288_v21 = vld [vmem:[%s13178_s1 + $0xb0] sm:$0xf0]  ;;  %v8591_v29 = vld [vmem:[%s13178_s1 + $0x2b4] sm:$0xf0] }
  0xe0   :  { %1765 = vmatpush.bf16.msra.mxu3 %v6351_v33  ;;  %v8631_v33 = vld [vmem:[%s13178_s1 + $0x3f4] sm:$0xf0]  ;;  %v6800_v24 = vld [vmem:[%s13178_s1 + $0x4b0] sm:$0xf0] }
  0xe1   :  { %1803 = vmatpush.bf16.msra.mxu1 %v6863_v34  ;;  %1860 = vmatpush.bf16.msrb.mxu0 %v6611_v35  ;;  %v6711_v34 = vor.u32 %v8631_v33, %v6710_v30  ;;  %v8554_v35 = vld [vmem:[%s13178_s1 + $0x194] sm:$0xf]  ;;  %v6803_v56 = vor.u32 %v8650_v48, %v6800_v24  ;;  %v1450_v30 = vsel %vm38_vm3, %v1224_v22, 0  ;;  %v10256_v33 = vperm.slane %v10232_v61, 0  ;;  %v8619_v22 = vld [vmem:[%s13178_s1 + $0x39c] sm:$0xf] }
  0xe2   :  { %1623 = vmatmul.bf16.gmra.mxu3 %v9353_v42  ;;  %v6419_v37 = vor.u32 %v8554_v35, %v6416_v36  ;;  %v6256_v35 = vld [vmem:[%s13178_s1 + $0x70] sm:$0xf0]  ;;  %v6680_v24 = vld [vmem:[%s13178_s1 + $0x3b8] sm:$0xf0] }
  0xe3   :  { %1661 = vmatmul.bf16.gmra.mxu1 %v9701_v46  ;;  %7009 = vmatmul.msk.bf16.gmra.mxu2 %vm1427_vm11, %v9697_v44 }
  0xe4   :  { %1718 = vmatmul.bf16.gmra.mxu0 %v9699_v45  ;;  %1766 = vmatpush.bf16.msra.mxu3 %v6319_v38  ;;  %v8682_v38 = vld [vmem:[%s13178_s1 + $0x594] sm:$0xf] }
  0xe5   :  { %1804 = vmatpush.bf16.msra.mxu1 %v6831_v43  ;;  %1861 = vmatpush.bf16.msrb.mxu0 %v6579_v49  ;;  %v6931_v41 = vor.u32 %v8682_v38, %v6928_v39  ;;  %v8623_v43 = vld [vmem:[%s13178_s1 + $0x3b4] sm:$0xf0]  ;;  %v8546_v49 = vld [vmem:[%s13178_s1 + $0x154] sm:$0xf] }
  0xe6   :  { %v6679_v47 = vor.u32 %v8623_v43, %v6678_v40  ;;  %v6387_v51 = vor.u32 %v8546_v49, %v6384_v50  ;;  %v6768_v38 = vld [vmem:[%s13178_s1 + $0x470] sm:$0xf0]  ;;  %v6518_v39 = vld [vmem:[%s13178_s1 + $0x258] sm:$0xf] }
  0xe7   :  { %v8506_v49 = vld [vmem:[%s13178_s1 + $0x14] sm:$0xf] }
  0xe8   :  { %1767 = vmatpush.bf16.msra.mxu3 %v6287_v53  ;;  %v6896_v53 = vld [vmem:[%s13178_s1 + $0x570] sm:$0xf0] }
  0xe9   :  { %1805 = vmatpush.bf16.msra.mxu1 %v6799_v59  ;;  %1862 = vmatpush.bf16.msrb.mxu0 %v6547_v3  ;;  %v6899_v55 = vor.u32 %v8674_v52, %v6896_v53  ;;  %v6647_v59 = vor.u32 %v8615_v57, %v6646_v54  ;;  %v8666_v3 = vld [vmem:[%s13178_s1 + $0x514] sm:$0xf]  ;;  %v6486_v57 = vld [vmem:[%s13178_s1 + $0x218] sm:$0xf] }
  0xea   :  { %v6867_v8 = vor.u32 %v8666_v3, %v6864_v4  ;;  %v6224_v50 = vld [vmem:[%s13178_s1 + $0x30] sm:$0xf0] }
  0xeb   :  { %v8634_v52 = vld [vmem:[%s13178_s1 + $0x414] sm:$0xf] }
  0xec   :  { %1768 = vmatpush.bf16.msra.mxu3 %v6255_v9  ;;  %v8607_v9 = vld [vmem:[%s13178_s1 + $0x334] sm:$0xf0]  ;;  %v6736_v53 = vld [vmem:[%s13178_s1 + $0x430] sm:$0xf0] }
  0xed   :  { %1806 = vmatpush.bf16.msra.mxu1 %v6767_v6  ;;  %1863 = vmatpush.bf16.msrb.mxu0 %v6515_v14  ;;  %v6615_v10 = vor.u32 %v8607_v9, %v6614_v5  ;;  %v6320_v6 = vld [vmem:[%s13178_s1 + $0xf0] sm:$0xf0]  ;;  %v6739_v54 = vor.u32 %v8634_v52, %v6736_v53  ;;  %v6454_v5 = vld [vmem:[%s13178_s1 + $0x1d8] sm:$0xf] }
  0xee   :  { %v6323_v13 = vor.u32 %v8530_v12, %v6320_v6  ;;  %v6832_v14 = vld [vmem:[%s13178_s1 + $0x4f0] sm:$0xf0]  ;;  %v8695_v12 = vld [vmem:[%s13178_s1 + $0x5f4] sm:$0xf0]  ;;  %v8627_v6 = vld [vmem:[%s13178_s1 + $0x3dc] sm:$0xf] }
  0xef   :  { %v6835_v16 = vor.u32 %v8658_v7, %v6832_v14  ;;  %v6712_v7 = vld [vmem:[%s13178_s1 + $0x3f8] sm:$0xf0] }
  0xf0   :  { %1769 = vmatpush.bf16.msra.mxu3 %v6223_v15  ;;  %v6582_v15 = vld [vmem:[%s13178_s1 + $0x2d8] sm:$0xf]  ;;  %v6715_v14 = vor.u32 %v8627_v6, %v6712_v7 }
  0xf1   :  { %1807 = vmatpush.bf16.msra.mxu1 %v6735_v19  ;;  %1864 = vmatpush.bf16.msrb.mxu0 %v6483_v23  ;;  %v6583_v19 = vor.u32 %v8599_v17, %v6582_v15  ;;  %v6291_v23 = vor.u32 %v8522_v20, %v6288_v21  ;;  %v8559_v17 = vld [vmem:[%s13178_s1 + $0x1b4] sm:$0xf0] }
  0xf2   :  { %1694 = vmatmul.bf16.vlgmr.msrb.gmra.mxu3 %v9326_v26  ;;  %v6934_v20 = vld [vmem:[%s13178_s1 + $0x598] sm:$0xf] }
  0xf3   :  { %1732 = vmatmul.bf16.vlgmr.msrb.gmra.mxu1 %v9618_v0  ;;  %7010 = vmatmul.msk.bf16.vlgmr.msrb.gmra.mxu2 %vm1427_vm11, %v9614_v58  ;;  %v8687_v21 = vld [vmem:[%s13178_s1 + $0x5b4] sm:$0xf0] }
  0xf4   :  { %1789 = vmatmul.bf16.vlgmr.msra.gmra.mxu0 %v9616_v63  ;;  %1838 = vmatpush.bf16.msrb.mxu3 %v6451_v28  ;;  %v10249_v28 = vpop.f32.mrf.mxu0  ;;  %v6935_v48 = vor.u32 %v8687_v21, %v6934_v20  ;;  %v8663_v6 = vld [vmem:[%s13178_s1 + $0x4f4] sm:$0xf0] }
  0xf5   :  { %1876 = vmatpush.bf16.msrb.mxu1 %v6963_v32  ;;  %1933 = vmatpush.bf16.msra.mxu0 %v6711_v34  ;;  %v6551_v32 = vor.u32 %v8591_v29, %v6550_v27  ;;  %v8514_v34 = vld [vmem:[%s13178_s1 + $0x54] sm:$0xf]  ;;  %v1470_v29 = vadd.f32 %v10143_v31, %v10256_v33  ;;  %v8679_v31 = vld [vmem:[%s13178_s1 + $0x574] sm:$0xf0] }
  0xf6   :  { %1901 = vmatpush.bf16.msrb.mxu2 %v1450_v30  ;;  %v6259_v36 = vor.u32 %v8514_v34, %v6256_v35  ;;  %v6390_v34 = vld [vmem:[%s13178_s1 + $0x158] sm:$0xf] }
  0xf7   :  { %v8551_v35 = vld [vmem:[%s13178_s1 + $0x174] sm:$0xf0] }
  0xf8   :  { %1839 = vmatpush.bf16.msrb.mxu3 %v6419_v37  ;;  %v8642_v37 = vld [vmem:[%s13178_s1 + $0x454] sm:$0xf]  ;;  %v10425_v20 = vld [vmem:[%s13178_s1 + $0x658] sm:$0xff] }
  0xf9   :  { %1877 = vmatpush.bf16.msrb.mxu1 %v6931_v41  ;;  %1934 = vmatpush.bf16.msra.mxu0 %v6679_v47  ;;  %v6771_v40 = vor.u32 %v8642_v37, %v6768_v38  ;;  %v8583_v41 = vld [vmem:[%s13178_s1 + $0x274] sm:$0xf0]  ;;  %v1468_v47 = vadd.f32 %v10097_v11, %v10256_v33  ;;  %v8698_v11 = vld [vmem:[%s13178_s1 + $0x614] sm:$0xf]  ;;  %v8611_v38 = vld [vmem:[%s13178_s1 + $0x35c] sm:$0xf] }
  0xfa   :  { %v6519_v43 = vor.u32 %v8583_v41, %v6518_v39  ;;  %v6902_v37 = vld [vmem:[%s13178_s1 + $0x558] sm:$0xf] }
  0xfb   :  { %v6903_v39 = vor.u32 %v8679_v31, %v6902_v37 }
  0xfc   :  { %1840 = vmatpush.bf16.msrb.mxu3 %v6387_v51  ;;  %v6227_v51 = vor.u32 %v8506_v49, %v6224_v50  ;;  %v6358_v50 = vld [vmem:[%s13178_s1 + $0x118] sm:$0xf] }
  0xfd   :  { %1878 = vmatpush.bf16.msrb.mxu1 %v6899_v55  ;;  %1935 = vmatpush.bf16.msra.mxu0 %v6647_v59  ;;  %v6992_v55 = vld [vmem:[%s13178_s1 + $0x630] sm:$0xf0]  ;;  %v8575_v59 = vld [vmem:[%s13178_s1 + $0x234] sm:$0xf0] }
  0xfe   :  { %v6995_v1 = vor.u32 %v8698_v11, %v6992_v55  ;;  %v6487_v4 = vor.u32 %v8575_v59, %v6486_v57  ;;  %v6870_v11 = vld [vmem:[%s13178_s1 + $0x518] sm:$0xf]  ;;  %v6616_v59 = vld [vmem:[%s13178_s1 + $0x338] sm:$0xf0] }
 0x100   :  { %1841 = vmatpush.bf16.msrb.mxu3 %v6355_v2  ;;  %1902 = vmatpush.bf16.msrb.mxu2 %v6995_v1 }
 0x101   :  { %1879 = vmatpush.bf16.msrb.mxu1 %v6867_v8  ;;  %1936 = vmatpush.bf16.msra.mxu0 %v6615_v10  ;;  %v8567_v8 = vld [vmem:[%s13178_s1 + $0x1f4] sm:$0xf0] }
 0x102   :  { %1699 = vmatmul.bf16.gmra.mxu3 %v9353_v42  ;;  %v6455_v9 = vor.u32 %v8567_v8, %v6454_v5  ;;  %v6966_v10 = vld [vmem:[%s13178_s1 + $0x5d8] sm:$0xf] }
 0x103   :  { %1737 = vmatmul.bf16.gmra.mxu1 %v9701_v46  ;;  %7011 = vmatmul.msk.bf16.gmra.mxu2 %vm1427_vm11, %v9697_v44  ;;  %v6326_v8 = vld [vmem:[%s13178_s1 + $0xd8] sm:$0xf] }
 0x104   :  { %1794 = vmatmul.bf16.gmra.mxu0 %v9699_v45  ;;  %1842 = vmatpush.bf16.msrb.mxu3 %v6323_v13  ;;  %v6967_v13 = vor.u32 %v8695_v12, %v6966_v10  ;;  %v6838_v12 = vld [vmem:[%s13178_s1 + $0x4d8] sm:$0xf] }
 0x105   :  { %1880 = vmatpush.bf16.msrb.mxu1 %v6835_v16  ;;  %1937 = vmatpush.bf16.msra.mxu0 %v6583_v19  ;;  %v6422_v16 = vld [vmem:[%s13178_s1 + $0x198] sm:$0xf]  ;;  %v6839_v7 = vor.u32 %v8663_v6, %v6838_v12 }
 0x106   :  { %v6423_v19 = vor.u32 %v8559_v17, %v6422_v16  ;;  %v6294_v17 = vld [vmem:[%s13178_s1 + $0x98] sm:$0xf] }
 0x108   :  { %1843 = vmatpush.bf16.msrb.mxu3 %v6291_v23 }
 0x109   :  { %1881 = vmatpush.bf16.msrb.mxu1 %v6803_v56  ;;  %1938 = vmatpush.bf16.msra.mxu0 %v6551_v32  ;;  %v6683_v56 = vor.u32 %v8619_v22, %v6680_v24  ;;  %v6806_v22 = vld [vmem:[%s13178_s1 + $0x498] sm:$0xf]  ;;  %v1017_v24 = vunpack.c.l.b16 %v10425_v20 }
 0x10c   :  { %1844 = vmatpush.bf16.msrb.mxu3 %v6259_v36  ;;  %v6391_v36 = vor.u32 %v8551_v35, %v6390_v34 }
 0x10d   :  { %1882 = vmatpush.bf16.msrb.mxu1 %v6771_v40  ;;  %1939 = vmatpush.bf16.msra.mxu0 %v6519_v43  ;;  %v6648_v40 = vld [vmem:[%s13178_s1 + $0x378] sm:$0xf0]  ;;  %v1473_v43 = vadd.f32 %v10185_v60, %v10256_v33  ;;  %v8671_v60 = vld [vmem:[%s13178_s1 + $0x534] sm:$0xf0] }
 0x10e   :  { %v6651_v41 = vor.u32 %v8611_v38, %v6648_v40  ;;  %v6871_v57 = vor.u32 %v8671_v60, %v6870_v11  ;;  %v1225_v38 = vpack.c.b16 %v1017_v24, %v1017_v24  ;;  %v8519_v40 = vld [vmem:[%s13178_s1 + $0x74] sm:$0xf0]  ;;  %v6424_v24 = vld [vmem:[%s13178_s1 + $0x1b8] sm:$0xf0] }
 0x10f   :  { %v6230_v11 = vld [vmem:[%s13178_s1 + $0x18] sm:$0xf] }
 0x110   :  { %v1486_v62 = vpop.f32.mrf.mxu1  ;;  %1845 = vmatpush.bf16.msrb.mxu3 %v6227_v51  ;;  %v8543_v51 = vld [vmem:[%s13178_s1 + $0x134] sm:$0xf0] }
 0x111   :  { %v1487_v2 = vadd.f32 %v1486_v62, %v1468_v47  ;;  %v10302_v3 = vpop.f32.mrf.mxu0  ;;  %1883 = vmatpush.bf16.msrb.mxu1 %v6739_v54  ;;  %1940 = vmatpush.bf16.msra.mxu0 %v6487_v4  ;;  %v6359_v53 = vor.u32 %v8543_v51, %v6358_v50  ;;  %v8603_v54 = vld [vmem:[%s13178_s1 + $0x31c] sm:$0xf]  ;;  %v8511_v60 = vld [vmem:[%s13178_s1 + $0x34] sm:$0xf0] }
 0x112   :  { %1770 = vmatmul.bf16.vlgmr.msra.gmra.mxu3 %v9326_v26  ;;  %v6619_v1 = vor.u32 %v8603_v54, %v6616_v59  ;;  %v6520_v50 = vld [vmem:[%s13178_s1 + $0x278] sm:$0xf0]  ;;  %v8639_v59 = vld [vmem:[%s13178_s1 + $0x434] sm:$0xf0] }
 0x113   :  { %1808 = vmatmul.bf16.vlgmr.msra.gmra.mxu1 %v9618_v0  ;;  %7012 = vmatmul.msk.bf16.vlgmr.msra.gmra.mxu2 %vm1427_vm11, %v9614_v58 }
 0x114   :  { %1865 = vmatmul.bf16.vlgmr.msrb.gmra.mxu0 %v9616_v63  ;;  %1914 = vmatpush.bf16.msra.mxu3 %v6455_v9  ;;  %v8535_v9 = vld [vmem:[%s13178_s1 + $0xf4] sm:$0xf0] }
 0x115   :  { %v1524_v15 = vpop.f32.mrf.mxu3  ;;  %1952 = vmatpush.bf16.msra.mxu1 %v6967_v13  ;;  %2009 = vmatpush.bf16.msrb.mxu0 %v6715_v14  ;;  %v6327_v10 = vor.u32 %v8535_v9, %v6326_v8  ;;  %v8595_v13 = vld [vmem:[%s13178_s1 + $0x2dc] sm:$0xf]  ;;  %v8703_v8 = vld [vmem:[%s13178_s1 + $0x634] sm:$0xf0] }
 0x116   :  { %v1505_v18 = vpop.f32.mrf.mxu2  ;;  %v6584_v14 = vld [vmem:[%s13178_s1 + $0x2f8] sm:$0xf0] }
 0x117   :  { %v1506_v23 = vadd.f32 %v1505_v18, %v1487_v2  ;;  %v8527_v18 = vld [vmem:[%s13178_s1 + $0xb4] sm:$0xf0]  ;;  %v8571_v9 = vld [vmem:[%s13178_s1 + $0x21c] sm:$0xf] }
 0x118   :  { %v1488_v27 = vpop.f32.mrf.mxu1  ;;  %1915 = vmatpush.bf16.msra.mxu3 %v6423_v19  ;;  %v6295_v21 = vor.u32 %v8527_v18, %v6294_v17  ;;  %v10501_v17 = vperm.slane %v10232_v61, 1 }
 0x119   :  { %v10347_v30 = vadd.f32 %v1524_v15, %v1506_v23  ;;  %v10349_v32 = vpop.f32.mrf.mxu0  ;;  %1953 = vmatpush.bf16.msra.mxu1 %v6935_v48  ;;  %2010 = vmatpush.bf16.msrb.mxu0 %v6683_v56  ;;  %v1489_v47 = vadd.f32 %v1488_v27, %v1470_v29  ;;  %v6587_v15 = vor.u32 %v8595_v13, %v6584_v14  ;;  %v8655_v23 = vld [vmem:[%s13178_s1 + $0x4b4] sm:$0xf0]  ;;  %v8587_v56 = vld [vmem:[%s13178_s1 + $0x29c] sm:$0xf] }
 0x11a   :  { %v6807_v27 = vor.u32 %v8655_v23, %v6806_v22  ;;  %v6552_v29 = vld [vmem:[%s13178_s1 + $0x2b8] sm:$0xf0] }
 0x11b   :  { %v6555_v35 = vor.u32 %v8587_v56, %v6552_v29 }
 0x11c   :  { %1916 = vmatpush.bf16.msra.mxu3 %v6391_v36  ;;  %v1475_v36 = vadd.f32 %v10249_v28, %v10256_v33  ;;  %v6774_v28 = vld [vmem:[%s13178_s1 + $0x458] sm:$0xf] }
 0x11d   :  { %v1526_v49 = vpop.f32.mrf.mxu3  ;;  %1954 = vmatpush.bf16.msra.mxu1 %v6903_v39  ;;  %2011 = vmatpush.bf16.msrb.mxu0 %v6651_v41  ;;  %v6262_v39 = vld [vmem:[%s13178_s1 + $0x58] sm:$0xf] }
 0x11e   :  { %v1507_v52 = vpop.f32.mrf.mxu2  ;;  %v6263_v41 = vor.u32 %v8519_v40, %v6262_v39  ;;  %v8647_v33 = vld [vmem:[%s13178_s1 + $0x474] sm:$0xf0] }
 0x11f   :  { %v1508_v55 = vadd.f32 %v1507_v52, %v1489_v47  ;;  %v1453_v47 = vsel %vm38_vm3, %v1225_v38, 0 }
 0x120   :  { %v1491_v62 = vpop.f32.mrf.mxu1  ;;  %1917 = vmatpush.bf16.msra.mxu3 %v6359_v53  ;;  %1977 = vmatpush.bf16.msra.mxu2 %v1453_v47  ;;  %v8675_v47 = vld [vmem:[%s13178_s1 + $0x55c] sm:$0xf] }
 0x121   :  { %v10389_v2 = vadd.f32 %v1526_v49, %v1508_v55  ;;  %v1492_v4 = vadd.f32 %v1491_v62, %v1473_v43  ;;  %v10391_v5 = vpop.f32.mrf.mxu0  ;;  %1955 = vmatpush.bf16.msra.mxu1 %v6871_v57  ;;  %2012 = vmatpush.bf16.msrb.mxu0 %v6619_v1  ;;  %v8579_v43 = vld [vmem:[%s13178_s1 + $0x25c] sm:$0xf]  ;;  %v6775_v49 = vor.u32 %v8647_v33, %v6774_v28  ;;  %v6742_v57 = vld [vmem:[%s13178_s1 + $0x418] sm:$0xf] }
 0x122   :  { %1775 = vmatmul.bf16.gmra.mxu3 %v9353_v42  ;;  %v6523_v51 = vor.u32 %v8579_v43, %v6520_v50  ;;  %v6231_v55 = vor.u32 %v8511_v60, %v6230_v11  ;;  %v6998_v62 = vld [vmem:[%s13178_s1 + $0x618] sm:$0xf]  ;;  %v6392_v28 = vld [vmem:[%s13178_s1 + $0x178] sm:$0xf0] }
 0x123   :  { %1813 = vmatmul.bf16.gmra.mxu1 %v9701_v46  ;;  %7013 = vmatmul.msk.bf16.gmra.mxu2 %vm1427_vm11, %v9697_v44  ;;  %v6999_v6 = vor.u32 %v8703_v8, %v6998_v62  ;;  %v8531_v8 = vld [vmem:[%s13178_s1 + $0xdc] sm:$0xf] }
 0x124   :  { %1870 = vmatmul.bf16.gmra.mxu0 %v9699_v45  ;;  %1918 = vmatpush.bf16.msra.mxu3 %v6327_v10  ;;  %v6488_v10 = vld [vmem:[%s13178_s1 + $0x238] sm:$0xf0] }
 0x125   :  { %v1529_v16 = vpop.f32.mrf.mxu3  ;;  %1956 = vmatpush.bf16.msra.mxu1 %v6839_v7  ;;  %2013 = vmatpush.bf16.msrb.mxu0 %v6587_v15  ;;  %v6491_v14 = vor.u32 %v8571_v9, %v6488_v10  ;;  %v8563_v15 = vld [vmem:[%s13178_s1 + $0x1dc] sm:$0xf] }
 0x126   :  { %v1510_v19 = vpop.f32.mrf.mxu2  ;;  %1978 = vmatpush.bf16.msra.mxu2 %v6999_v6  ;;  %v6328_v9 = vld [vmem:[%s13178_s1 + $0xf8] sm:$0xf0] }
 0x127   :  { %v1511_v48 = vadd.f32 %v1510_v19, %v1492_v4  ;;  %v6743_v4 = vor.u32 %v8639_v59, %v6742_v57  ;;  %v8691_v19 = vld [vmem:[%s13178_s1 + $0x5dc] sm:$0xf] }
 0x128   :  { %v1493_v34 = vpop.f32.mrf.mxu1  ;;  %1919 = vmatpush.bf16.msra.mxu3 %v6295_v21  ;;  %v6968_v21 = vld [vmem:[%s13178_s1 + $0x5f8] sm:$0xf0] }
 0x129   :  { %v10442_v37 = vadd.f32 %v1529_v16, %v1511_v48  ;;  %v10444_v31 = vpop.f32.mrf.mxu0  ;;  %1957 = vmatpush.bf16.msra.mxu1 %v6807_v27  ;;  %2014 = vmatpush.bf16.msrb.mxu0 %v6555_v35  ;;  %v1494_v52 = vadd.f32 %v1493_v34, %v1475_v36  ;;  %v6456_v16 = vld [vmem:[%s13178_s1 + $0x1f8] sm:$0xf0]  ;;  %v6971_v22 = vor.u32 %v8691_v19, %v6968_v21 }
 0x12a   :  { %v6459_v18 = vor.u32 %v8563_v15, %v6456_v16  ;;  %v8555_v48 = vld [vmem:[%s13178_s1 + $0x19c] sm:$0xf] }
 0x12b   :  { %v6427_v29 = vor.u32 %v8555_v48, %v6424_v24  ;;  %v8683_v34 = vld [vmem:[%s13178_s1 + $0x59c] sm:$0xf] }
 0x12c   :  { %1920 = vmatpush.bf16.msra.mxu3 %v6263_v41  ;;  %v6936_v35 = vld [vmem:[%s13178_s1 + $0x5b8] sm:$0xf0] }
 0x12d   :  { %v1531_v53 = vpop.f32.mrf.mxu3  ;;  %1958 = vmatpush.bf16.msra.mxu1 %v6775_v49  ;;  %2015 = vmatpush.bf16.msrb.mxu0 %v6523_v51  ;;  %v6939_v36 = vor.u32 %v8683_v34, %v6936_v35  ;;  %v8547_v41 = vld [vmem:[%s13178_s1 + $0x15c] sm:$0xf]  ;;  %v1018_v34 = vunpack.c.h.b16 %v10425_v20 }
 0x12e   :  { %v1512_v54 = vpop.f32.mrf.mxu2  ;;  %v6395_v43 = vor.u32 %v8547_v41, %v6392_v28  ;;  %v6872_v57 = vld [vmem:[%s13178_s1 + $0x538] sm:$0xf0] }
 0x12f   :  { %v1513_v1 = vadd.f32 %v1512_v54, %v1494_v52  ;;  %v8539_v52 = vld [vmem:[%s13178_s1 + $0x11c] sm:$0xf]  ;;  %v1226_v41 = vpack.c.b16 %v1018_v34, %v1018_v34 }
 0x130   :  { %v1581_v12 = vpop.f32.mrf.mxu1  ;;  %1921 = vmatpush.bf16.msra.mxu3 %v6231_v55  ;;  %v8667_v55 = vld [vmem:[%s13178_s1 + $0x51c] sm:$0xf] }
 0x131   :  { %v10489_v13 = vadd.f32 %v1531_v53, %v1513_v1  ;;  %v10491_v7 = vpop.f32.mrf.mxu0  ;;  %1959 = vmatpush.bf16.msra.mxu1 %v6743_v4  ;;  %2016 = vmatpush.bf16.msrb.mxu0 %v6491_v14  ;;  %v6360_v53 = vld [vmem:[%s13178_s1 + $0x138] sm:$0xf0]  ;;  %v6875_v59 = vor.u32 %v8667_v55, %v6872_v57 }
 0x132   :  { %1846 = vmatmul.bf16.vlgmr.msrb.gmra.mxu3 %v9326_v26  ;;  %v6363_v54 = vor.u32 %v8539_v52, %v6360_v53  ;;  %v6840_v6 = vld [vmem:[%s13178_s1 + $0x4f8] sm:$0xf0] }
 0x133   :  { %13198 = vst [vmem:[#allocation10_spill] sm:$0xff] %v10489_v13  ;;  %1884 = vmatmul.bf16.vlgmr.msrb.gmra.mxu1 %v9618_v0  ;;  %7014 = vmatmul.msk.bf16.vlgmr.msrb.gmra.mxu2 %vm1427_vm11, %v9614_v58  ;;  %v6296_v19 = vld [vmem:[%s13178_s1 + $0xb8] sm:$0xf0] }
 0x134   :  { %1941 = vmatmul.bf16.vlgmr.msra.gmra.mxu0 %v9616_v63  ;;  %1990 = vmatpush.bf16.msrb.mxu3 %v6459_v18  ;;  %v8523_v18 = vld [vmem:[%s13178_s1 + $0x9c] sm:$0xf] }
 0x135   :  { %v1543_v23 = vpop.f32.mrf.mxu3  ;;  %2028 = vmatpush.bf16.msrb.mxu1 %v6971_v22  ;;  %v8651_v48 = vld [vmem:[%s13178_s1 + $0x49c] sm:$0xf] }
 0x136   :  { %v1544_v27 = vadd.f32 %v1543_v23, %v10501_v17  ;;  %v1600_v56 = vpop.f32.mrf.mxu2  ;;  %v6299_v23 = vor.u32 %v8523_v18, %v6296_v19  ;;  %v6808_v24 = vld [vmem:[%s13178_s1 + $0x4b8] sm:$0xf0] }
 0x137   :  { %v6776_v20 = vld [vmem:[%s13178_s1 + $0x478] sm:$0xf0] }
 0x138   :  { %v1563_v38 = vadd.f32 %v10302_v3, %v1544_v27  ;;  %v1583_v39 = vpop.f32.mrf.mxu1  ;;  %1991 = vmatpush.bf16.msrb.mxu3 %v6427_v29  ;;  %v6904_v3 = vld [vmem:[%s13178_s1 + $0x578] sm:$0xf0]  ;;  %v6811_v27 = vor.u32 %v8651_v48, %v6808_v24 }
 0x139   :  { %v10527_v40 = vpop.f32.mrf.mxu0  ;;  %2029 = vmatpush.bf16.msrb.mxu1 %v6939_v36  ;;  %v6907_v49 = vor.u32 %v8675_v47, %v6904_v3  ;;  %v8515_v36 = vld [vmem:[%s13178_s1 + $0x5c] sm:$0xf]  ;;  %v1456_v47 = vsel %vm38_vm3, %v1226_v41, 0  ;;  %vm10840_vm3 = vmor %vm13190_vm12, %vm2181_vm13 }
 0x13a   :  { %v1582_v33 = vadd.f32 %v1581_v12, %v1563_v38  ;;  %v6331_v12 = vor.u32 %v8531_v8, %v6328_v9  ;;  %v6264_v38 = vld [vmem:[%s13178_s1 + $0x78] sm:$0xf0]  ;;  %2053 = vmatpush.bf16.msrb.mxu2 %v1456_v47  ;;  %vm10866_vm13 = vmand %vm13189_vm14, %vm2143_vm6 }
 0x13b   :  { %v6267_v28 = vor.u32 %v8515_v36, %v6264_v38  ;;  %v8699_v57 = vld [vmem:[%s13178_s1 + $0x61c] sm:$0xf]  ;;  %vm10882_vm14 = vmand %vm2132_vm5, %vm2143_vm6 }
 0x13c   :  { %v10541_v50 = vadd.f32 %v1600_v56, %v1582_v33  ;;  %1992 = vmatpush.bf16.msrb.mxu3 %v6395_v43  ;;  %vm10898_vm5 = vmand %vm128_vm7, %vm2145_vm9  ;;  %vm2172_vm9 = vcmask 254080  }
 0x13d   :  { %v1545_v51 = vpop.f32.mrf.mxu3  ;;  %2030 = vmatpush.bf16.msrb.mxu1 %v6907_v49  ;;  %v8507_v49 = vld [vmem:[%s13178_s1 + $0x1c] sm:$0xf] }
 0x13e   :  { %v1546_v11 = vadd.f32 %v1545_v51, %v10501_v17  ;;  %v1602_v60 = vpop.f32.mrf.mxu2  ;;  %v6232_v51 = vld [vmem:[%s13178_s1 + $0x38] sm:$0xf0] }
 0x140   :  { %v1565_v62 = vadd.f32 %v10349_v32, %v1546_v11  ;;  %v1586_v1 = vpop.f32.mrf.mxu1  ;;  %1993 = vmatpush.bf16.msrb.mxu3 %v6363_v54  ;;  %v8659_v32 = vld [vmem:[%s13178_s1 + $0x4dc] sm:$0xf]  ;;  %v6235_v11 = vor.u32 %v8507_v49, %v6232_v51 }
 0x141   :  { %v10557_v4 = vpop.f32.mrf.mxu0  ;;  %2031 = vmatpush.bf16.msrb.mxu1 %v6875_v59  ;;  %v6843_v14 = vor.u32 %v8659_v32, %v6840_v6  ;;  %v6744_v54 = vld [vmem:[%s13178_s1 + $0x438] sm:$0xf0] }
 0x142   :  { %v1584_v10 = vadd.f32 %v1583_v39, %v1565_v62  ;;  %1851 = vmatmul.bf16.gmra.mxu3 %v9353_v42  ;;  %v7000_v59 = vld [vmem:[%s13178_s1 + $0x638] sm:$0xf0] }
 0x143   :  { %1889 = vmatmul.bf16.gmra.mxu1 %v9701_v46  ;;  %7015 = vmatmul.msk.bf16.gmra.mxu2 %vm1427_vm11, %v9697_v44 }
 0x144   :  { %v10575_v15 = vadd.f32 %v1602_v60, %v1584_v10  ;;  %1946 = vmatmul.bf16.gmra.mxu0 %v9699_v45  ;;  %1994 = vmatpush.bf16.msrb.mxu3 %v6331_v12  ;;  %v8635_v60 = vld [vmem:[%s13178_s1 + $0x41c] sm:$0xf]  ;;  %v10632_v10 = vperm.slane %v10232_v61, 2 }
 0x145   :  { %v1548_v16 = vpop.f32.mrf.mxu3  ;;  %2032 = vmatpush.bf16.msrb.mxu1 %v6843_v14  ;;  %v6747_v55 = vor.u32 %v8635_v60, %v6744_v54 }
 0x146   :  { %v1549_v21 = vadd.f32 %v1548_v16, %v10501_v17  ;;  %v1605_v22 = vpop.f32.mrf.mxu2 }
 0x148   :  { %v1568_v56 = vadd.f32 %v10391_v5, %v1549_v21  ;;  %v1588_v29 = vpop.f32.mrf.mxu1  ;;  %1995 = vmatpush.bf16.msrb.mxu3 %v6299_v23  ;;  %v8643_v5 = vld [vmem:[%s13178_s1 + $0x45c] sm:$0xf]  ;;  %v2066_v23 = vmax.f32 %v10347_v30, 0.0  ;;  %s6163_s1 = sshll.u32 %s13186_s9, 4  ;;  %s6164_s1 = int_to_ptr.hbm [resolvable:$true] %s6163_s1 }
 0x149   :  { %v10593_v35 = vpop.f32.mrf.mxu0  ;;  %2033 = vmatpush.bf16.msrb.mxu1 %v6811_v27  ;;  %v6779_v33 = vor.u32 %v8643_v5, %v6776_v20 }
 0x14a   :  { %v1587_v39 = vadd.f32 %v1586_v1, %v1568_v56  ;;  %v7003_v1 = vor.u32 %v8699_v57, %v7000_v59 }
 0x14c   :  { %v10607_v43 = vadd.f32 %v1605_v22, %v1587_v39  ;;  %1996 = vmatpush.bf16.msrb.mxu3 %v6267_v28  ;;  %2054 = vmatpush.bf16.msrb.mxu2 %v7003_v1  ;;  %v2082_v28 = vmax.f32 %v10442_v37, 0.0 }
 0x14d   :  { %v1550_v3 = vpop.f32.mrf.mxu3  ;;  %2034 = vmatpush.bf16.msrb.mxu1 %v6779_v33 }
 0x14e   :  { %v1551_v52 = vadd.f32 %v1550_v3, %v10501_v17  ;;  %v1607_v53 = vpop.f32.mrf.mxu2 }
 0x150   :  { %v1570_v17 = vadd.f32 %v10444_v31, %v1551_v52  ;;  %v1657_v62 = vpop.f32.mrf.mxu1  ;;  %1997 = vmatpush.bf16.msrb.mxu3 %v6235_v11 }
 0x151   :  { %v1714_v8 = vpop.f32.mrf.mxu0  ;;  %2035 = vmatpush.bf16.msrb.mxu1 %v6747_v55 }
 0x152   :  { %v1589_v9 = vadd.f32 %v1588_v29, %v1570_v17  ;;  %1922 = vmatmul.bf16.vlgmr.msra.gmra.mxu3 %v9326_v26 }
 0x153   :  { %1960 = vmatmul.bf16.vlgmr.msra.gmra.mxu1 %v9618_v0  ;;  %7016 = vmatmul.msk.bf16.vlgmr.msra.gmra.mxu2 %vm1427_vm11, %v9614_v58 }
 0x154   :  { %v10637_v12 = vadd.f32 %v1607_v53, %v1589_v9  ;;  %2017 = vmatmul.bf16.vlgmr.msrb.gmra.mxu0 %v9616_v63 }
 0x155   :  { %v1619_v31 = vpop.f32.mrf.mxu3 }
 0x156   :  { %13199 = vst [vmem:[#allocation11_spill] sm:$0xff] %v10637_v12  ;;  %v1620_v32 = vadd.f32 %v1619_v31, %v10632_v10  ;;  %v1676_v6 = vpop.f32.mrf.mxu2 }
 0x158   :  { %v1639_v14 = vadd.f32 %v10491_v7, %v1620_v32  ;;  %v10642_v16 = vpop.f32.mrf.mxu1 }
 0x159   :  { %v10644_v19 = vpop.f32.mrf.mxu0 }
 0x15a   :  { %v1658_v18 = vadd.f32 %v1657_v62, %v1639_v14 }
 0x15c   :  { %v1677_v21 = vadd.f32 %v1676_v6, %v1658_v18 }
 0x15d   :  { %v10646_v22 = vpop.f32.mrf.mxu3 }
 0x15e   :  { %v2068_v48 = vmax.f32 %v1677_v21, 0.0  ;;  %v10649_v24 = vpop.f32.mrf.mxu2  ;;  %v10705_v21 = vperm.slane %v10232_v61, 4 }
 0x160   :  { %v10651_v63 = vmax.f32 %v2066_v23, %v2068_v48  ;;  %v1662_v27 = vpop.f32.mrf.mxu1 }
 0x161   :  { %v1719_v7 = vpop.f32.mrf.mxu0 }
 0x162   :  { %1927 = vmatmul.bf16.gmra.mxu3 %v9353_v42 }
 0x163   :  { %1965 = vmatmul.bf16.gmra.mxu1 %v9701_v46  ;;  %7017 = vmatmul.msk.bf16.gmra.mxu2 %vm1427_vm11, %v9697_v44 }
 0x164   :  { %2022 = vmatmul.bf16.gmra.mxu0 %v9699_v45 }
 0x165   :  { %v1624_v56 = vpop.f32.mrf.mxu3 }
 0x166   :  { %v1625_v29 = vadd.f32 %v1624_v56, %v10632_v10  ;;  %v1681_v30 = vpop.f32.mrf.mxu2 }
 0x168   :  { %v1644_v34 = vadd.f32 %v10557_v4, %v1625_v29  ;;  %v10660_v36 = vpop.f32.mrf.mxu1  ;;  %v10673_v4 = vperm.slane %v10232_v61, 3 }
 0x169   :  { %v10667_v33 = vpop.f32.mrf.mxu0 }
 0x16a   :  { %v1663_v38 = vadd.f32 %v1662_v27, %v1644_v34 }
 0x16c   :  { %v1682_v39 = vadd.f32 %v1681_v30, %v1663_v38 }
 0x16d   :  { %v10662_v41 = vpop.f32.mrf.mxu3 }
 0x16e   :  { %v2084_v5 = vmax.f32 %v1682_v39, 0.0  ;;  %v10665_v20 = vpop.f32.mrf.mxu2 }
 0x170   :  { %v10669_v45 = vmax.f32 %v2082_v28, %v2084_v5  ;;  %v1733_v47 = vpop.f32.mrf.mxu1 }
 0x171   :  { %v1790_v53 = vpop.f32.mrf.mxu0 }
 0x172   :  { %1998 = vmatmul.bf16.vlgmr.msrb.gmra.mxu3 %v9326_v26  ;;  %v2067_v26 = vmax.f32 %v10541_v50, 0.0 }
 0x173   :  { %2036 = vmatmul.bf16.vlgmr.msrb.gmra.mxu1 %v9618_v0  ;;  %7018 = vmatmul.msk.bf16.vlgmr.msrb.gmra.mxu2 %vm1427_vm11, %v9614_v58 }
 0x175   :  { %v1695_v3 = vpop.f32.mrf.mxu3 }
 0x176   :  { %v1696_v37 = vadd.f32 %v1695_v3, %v10673_v4  ;;  %v1752_v49 = vpop.f32.mrf.mxu2 }
 0x178   :  { %v1715_v51 = vadd.f32 %v1714_v8, %v1696_v37  ;;  %v10679_v52 = vpop.f32.mrf.mxu1 }
 0x179   :  { %v10689_v59 = vpop.f32.mrf.mxu0 }
 0x17a   :  { %v1734_v11 = vadd.f32 %v1733_v47, %v1715_v51 }
 0x17c   :  { %v1753_v60 = vadd.f32 %v1752_v49, %v1734_v11 }
 0x17d   :  { %v10681_v54 = vpop.f32.mrf.mxu3 }
 0x17e   :  { %v2069_v55 = vmax.f32 %v1753_v60, 0.0  ;;  %v10684_v57 = vpop.f32.mrf.mxu2 }
 0x180   :  { %v10686_v0 = vmax.f32 %v2067_v26, %v2069_v55  ;;  %v1738_v58 = vpop.f32.mrf.mxu1 }
 0x181   :  { %v1795_v32 = vpop.f32.mrf.mxu0 }
 0x182   :  { %2003 = vmatmul.bf16.gmra.mxu3 %v9353_v42  ;;  %v2083_v42 = vmax.f32 %v10607_v43, 0.0 }
 0x183   :  { %2041 = vmatmul.bf16.gmra.mxu1 %v9701_v46  ;;  %7019 = vmatmul.msk.bf16.gmra.mxu2 %vm1427_vm11, %v9697_v44  ;;  %vm2161_vm11 = vcmask 125952  }
 0x184   :  { %vm11028_vm12 = vmand %vm2161_vm11, %vm2143_vm6 }
 0x185   :  { %v1700_v17 = vpop.f32.mrf.mxu3 }
 0x186   :  { %v1701_v62 = vadd.f32 %v1700_v17, %v10673_v4  ;;  %v1757_v1 = vpop.f32.mrf.mxu2 }
 0x188   :  { %v1720_v50 = vadd.f32 %v1719_v7, %v1701_v62  ;;  %v10695_v8 = vpop.f32.mrf.mxu1 }
 0x189   :  { %v10708_v7 = vpop.f32.mrf.mxu0 }
 0x18a   :  { %v1739_v9 = vadd.f32 %v1738_v58, %v1720_v50  ;;  %v10726_v58 = vperm.slane %v10232_v61, 5 }
 0x18c   :  { %v1758_v31 = vadd.f32 %v1757_v1, %v1739_v9 }
 0x18d   :  { %v10697_v6 = vpop.f32.mrf.mxu3 }
 0x18e   :  { %v2085_v14 = vmax.f32 %v1758_v31, 0.0  ;;  %v10700_v18 = vpop.f32.mrf.mxu2 }
 0x190   :  { %v10702_v46 = vmax.f32 %v2083_v42, %v2085_v14  ;;  %v1809_v44 = vpop.f32.mrf.mxu1 }
 0x191   :  { %v1866_v28 = vpop.f32.mrf.mxu0 }
 0x192   :  { %13200 = vst [vmem:[#allocation12_spill] sm:$0xff] %v10702_v46 }
 0x195   :  { %v1771_v23 = vpop.f32.mrf.mxu3 }
 0x196   :  { %v1772_v48 = vadd.f32 %v1771_v23, %v10705_v21  ;;  %v1828_v27 = vpop.f32.mrf.mxu2 }
 0x198   :  { %v1791_v56 = vadd.f32 %v1790_v53, %v1772_v48  ;;  %v10710_v29 = vpop.f32.mrf.mxu1 }
 0x199   :  { %v10719_v11 = vpop.f32.mrf.mxu0 }
 0x19a   :  { %v1810_v30 = vadd.f32 %v1809_v44, %v1791_v56 }
 0x19c   :  { %v1829_v43 = vadd.f32 %v1828_v27, %v1810_v30 }
 0x19d   :  { %v10712_v34 = vpop.f32.mrf.mxu3 }
 0x19e   :  { %v10714_v38 = vpop.f32.mrf.mxu2 }
 0x1a0   :  { %v1814_v39 = vpop.f32.mrf.mxu1 }
 0x1a1   :  { %v1871_v17 = vpop.f32.mrf.mxu0 }
 0x1a5   :  { %v1776_v5 = vpop.f32.mrf.mxu3 }
 0x1a6   :  { %v1777_v47 = vadd.f32 %v1776_v5, %v10705_v21  ;;  %v1833_v3 = vpop.f32.mrf.mxu2 }
 0x1a8   :  { %v1796_v37 = vadd.f32 %v1795_v32, %v1777_v47  ;;  %v10717_v49 = vpop.f32.mrf.mxu1 }
 0x1a9   :  { %v10735_v23 = vpop.f32.mrf.mxu0 }
 0x1aa   :  { %v1815_v51 = vadd.f32 %v1814_v39, %v1796_v37 }
 0x1ac   :  { %v1834_v53 = vadd.f32 %v1833_v3, %v1815_v51 }
 0x1ad   :  { %v10721_v60 = vpop.f32.mrf.mxu3 }
 0x1ae   :  { %v10723_v26 = vpop.f32.mrf.mxu2 }
 0x1af   :  { %13201 = vst [vmem:[#allocation13_spill] sm:$0xff] %v10723_v26 }
 0x1b0   :  { %v1885_v55 = vpop.f32.mrf.mxu1 }
 0x1b1   :  { %v1942_v47 = vpop.f32.mrf.mxu0 }
 0x1b5   :  { %v1847_v62 = vpop.f32.mrf.mxu3 }
 0x1b6   :  { %v1848_v1 = vadd.f32 %v1847_v62, %v10726_v58  ;;  %v1904_v50 = vpop.f32.mrf.mxu2  ;;  %v10747_v62 = vperm.slane %v10232_v61, 6 }
 0x1b8   :  { %v1867_v9 = vadd.f32 %v1866_v28, %v1848_v1  ;;  %v10729_v31 = vpop.f32.mrf.mxu1 }
 0x1b9   :  { %v1944_v1 = vpop.f32.mrf.mxu0 }
 0x1ba   :  { %v1886_v32 = vadd.f32 %v1885_v55, %v1867_v9 }
 0x1bc   :  { %v10731_v42 = vadd.f32 %v1904_v50, %v1886_v32 }
 0x1bd   :  { %v1849_v14 = vpop.f32.mrf.mxu3 }
 0x1be   :  { %v10733_v44 = vpop.f32.mrf.mxu2 }
 0x1c0   :  { %v1890_v48 = vpop.f32.mrf.mxu1 }
 0x1c5   :  { %v1852_v27 = vpop.f32.mrf.mxu3 }
 0x1c6   :  { %v1853_v56 = vadd.f32 %v1852_v27, %v10726_v58  ;;  %v1909_v30 = vpop.f32.mrf.mxu2 }
 0x1c8   :  { %v1872_v39 = vadd.f32 %v1871_v17, %v1853_v56  ;;  %v10738_v5 = vpop.f32.mrf.mxu1 }
 0x1c9   :  { %13202 = vst [vmem:[#allocation14_spill] sm:$0xff] %v10738_v5 }
 0x1ca   :  { %v1891_v28 = vadd.f32 %v1890_v48, %v1872_v39  ;;  %v1947_v48 = vpop.f32.mrf.mxu0  ;;  %v2070_v39 = vmax.f32 %v1829_v43, 0.0 }
 0x1cc   :  { %v10740_v3 = vadd.f32 %v1909_v30, %v1891_v28 }
 0x1cd   :  { %v10742_v37 = vpop.f32.mrf.mxu3 }
 0x1ce   :  { %13203 = vst [vmem:[#allocation15_spill] sm:$0xff] %v10740_v3  ;;  %v10744_v51 = vpop.f32.mrf.mxu2 }
 0x1cf   :  { %13204 = vst [vmem:[#allocation16_spill] sm:$0xff] %v10744_v51 }
 0x1d0   :  { %v1961_v55 = vpop.f32.mrf.mxu1 }
 0x1d2   :  { %v10755_v5 = vpop.f32.mrf.mxu0 }
 0x1d5   :  { %v1923_v50 = vpop.f32.mrf.mxu3 }
 0x1d6   :  { %v1924_v9 = vadd.f32 %v1923_v50, %v10747_v62  ;;  %v1980_v32 = vpop.f32.mrf.mxu2 }
 0x1d8   :  { %v1943_v17 = vadd.f32 %v1942_v47, %v1924_v9  ;;  %v1963_v27 = vpop.f32.mrf.mxu1 }
 0x1da   :  { %v1962_v56 = vadd.f32 %v1961_v55, %v1943_v17  ;;  %v2086_v17 = vmax.f32 %v1834_v53, 0.0 }
 0x1dc   :  { %v1981_v25 = vadd.f32 %v1980_v32, %v1962_v56 }
 0x1dd   :  { %v1925_v30 = vpop.f32.mrf.mxu3 }
 0x1de   :  { %v2072_v28 = vmax.f32 %v1981_v25, 0.0  ;;  %v1982_v12 = vpop.f32.mrf.mxu2  ;;  %v1622_v25 = vadd.f32 %v10646_v22, %v10632_v10  ;;  %v10772_v22 = vperm.slane %v10232_v61, 7 }
 0x1e0   :  { %v10750_v13 = vmax.f32 %v2070_v39, %v2072_v28  ;;  %v1966_v46 = vpop.f32.mrf.mxu1  ;;  %v1698_v28 = vadd.f32 %v10681_v54, %v10673_v4  ;;  %v1641_v51 = vadd.f32 %v10527_v40, %v1622_v25  ;;  %v1850_v54 = vadd.f32 %v1849_v14, %v10726_v58 }
 0x1e2   :  { %v1717_v53 = vadd.f32 %v10644_v19, %v1698_v28 }
 0x1e4   :  { %v1736_v61 = vadd.f32 %v10679_v52, %v1717_v53 }
 0x1e5   :  { %v1928_v26 = vpop.f32.mrf.mxu3 }
 0x1e6   :  { %v1929_v3 = vadd.f32 %v1928_v26, %v10747_v62  ;;  %v1985_v50 = vpop.f32.mrf.mxu2 }
 0x1e8   :  { %v1948_v47 = vadd.f32 %v1947_v48, %v1929_v3  ;;  %v10757_v55 = vpop.f32.mrf.mxu1  ;;  %v2018_v3 = vpop.f32.mrf.mxu0  ;;  %v1926_v48 = vadd.f32 %v1925_v30, %v10747_v62  ;;  %v1627_v30 = vadd.f32 %v10662_v41, %v10632_v10  ;;  %v1703_v10 = vadd.f32 %v10697_v6, %v10673_v4 }
 0x1ea   :  { %v1967_v9 = vadd.f32 %v1966_v46, %v1948_v47  ;;  %v1945_v40 = vadd.f32 %v1944_v1, %v1926_v48  ;;  %v1755_v1 = vadd.f32 %v10684_v57, %v1736_v61  ;;  %v1722_v4 = vadd.f32 %v10667_v33, %v1703_v10 }
 0x1ec   :  { %v1986_v32 = vadd.f32 %v1985_v50, %v1967_v9  ;;  %v1774_v50 = vadd.f32 %v10712_v34, %v10705_v21  ;;  %v1660_v9 = vadd.f32 %v10642_v16, %v1641_v51  ;;  %v1964_v28 = vadd.f32 %v1963_v27, %v1945_v40 }
 0x1ed   :  { %v1930_v43 = vpop.f32.mrf.mxu3  ;;  %v1646_v16 = vadd.f32 %v10593_v35, %v1627_v30  ;;  %v2071_v35 = vmax.f32 %v10731_v42, 0.0  ;;  %v1855_v42 = vadd.f32 %v10742_v37, %v10726_v58 }
 0x1ee   :  { %v2088_v56 = vmax.f32 %v1986_v32, 0.0  ;;  %v10761_v39 = vpop.f32.mrf.mxu2  ;;  %v1793_v19 = vadd.f32 %v10689_v59, %v1774_v50  ;;  %v1679_v14 = vadd.f32 %v10649_v24, %v1660_v9  ;;  %v1931_v33 = vadd.f32 %v1930_v43, %v10747_v62 }
 0x1ef   :  { %v1665_v24 = vadd.f32 %v10660_v36, %v1646_v16  ;;  %v1779_v36 = vadd.f32 %v10721_v60, %v10705_v21  ;;  %v13205_v21 = vmax.f32 %v10651_v63, %v10750_v13  ;;  %v8748_v13 = vld [vmem:[%s13180_s3 + $0xec] sm:$0xf0]  ;;  %v7322_v63 = vld [vmem:[%s13180_s3 + $0x1e0] sm:$0xf] }
 0x1f0   :  { %v10765_v26 = vmax.f32 %v2086_v17, %v2088_v56  ;;  %v2037_v47 = vpop.f32.mrf.mxu1  ;;  %v1869_v56 = vadd.f32 %v10719_v11, %v1850_v54  ;;  %v1812_v41 = vadd.f32 %v10710_v29, %v1793_v19  ;;  %v2020_v48 = vpop.f32.mrf.mxu0  ;;  %v2076_v53 = vmax.f32 %v1679_v14, 0.0 }
 0x1f1   :  { %v1983_v11 = vadd.f32 %v1982_v12, %v1964_v28  ;;  %v2077_v54 = vmax.f32 %v1755_v1, 0.0  ;;  %v2075_v12 = vmax.f32 %v10575_v15, 0.0  ;;  %v1741_v15 = vadd.f32 %v10695_v8, %v1722_v4  ;;  %v7194_v8 = vld [vmem:[%s13180_s3 + $0xe0] sm:$0xf] }
 0x1f2   :  { %v2118_v46 = vmax.f32 %v10669_v45, %v10765_v26  ;;  %v1888_v52 = vadd.f32 %v10729_v31, %v1869_v56  ;;  %v1831_v6 = vadd.f32 %v10714_v38, %v1812_v41  ;;  %v10806_v38 = vadd.f32 %v10665_v20, %v1665_v24  ;;  %v2134_v24 = vld [vmem:[#allocation3 + $0x8] sm:$0x1] }
 0x1f3   :  { %v1798_v58 = vadd.f32 %v10708_v7, %v1779_v36  ;;  %v1874_v20 = vadd.f32 %v10735_v23, %v1855_v42  ;;  %v7195_v28 = vor.u32 %v8748_v13, %v7194_v8  ;;  %v13216_v36 = vld [vmem:[#allocation14_spill] sm:$0xff] }
 0x1f4   :  { %v1907_v29 = vadd.f32 %v10733_v44, %v1888_v52 }
 0x1f5   :  { %v1999_v32 = vpop.f32.mrf.mxu3  ;;  %3971 = vmatpush.bf16.msra.mxu3 %v7195_v28  ;;  %v1893_v42 = vadd.f32 %v13216_v36, %v1874_v20  ;;  %v2092_v28 = vmax.f32 %v10806_v38, 0.0  ;;  %v13227_v38 = vld [vmem:[#allocation10_spill] sm:$0xff] }
 0x1f6   :  { %v2000_v25 = vadd.f32 %v1999_v32, %v10772_v22  ;;  %v2056_v17 = vpop.f32.mrf.mxu2  ;;  %v2080_v32 = vmax.f32 %v1983_v11, 0.0  ;;  %v2079_v61 = vmax.f32 %v1907_v29, 0.0  ;;  %v2148_v29 = vld [vmem:[#allocation3 + $0x18] sm:$0x11] }
 0x1f8   :  { %v2019_v34 = vadd.f32 %v2018_v3, %v2000_v25  ;;  %v2039_v3 = vpop.f32.mrf.mxu1  ;;  %v2101_v25 = vmax.f32 %v2075_v12, %v2077_v54  ;;  %v2023_v62 = vpop.f32.mrf.mxu0  ;;  %v2135_v12 = vsel %vm10857_vm10, 0, %v2134_v24 }
 0x1f9   :  { %2136 = vst [vmem:[#allocation3 + $0x8] sm:$0x1] %v2135_v12 }
 0x1fa   :  { %v2038_v51 = vadd.f32 %v2037_v47, %v2019_v34  ;;  %v2074_v47 = vmax.f32 %v10389_v2, 0.0 }
 0x1fc   :  { %v2057_v59 = vadd.f32 %v2056_v17, %v2038_v51  ;;  %v2100_v30 = vmax.f32 %v2074_v47, %v2076_v53  ;;  %v2078_v17 = vmax.f32 %v1831_v6, 0.0  ;;  %v2129_v51 = vld [vmem:[#allocation3] sm:$0x11] }
 0x1fd   :  { %v2001_v50 = vpop.f32.mrf.mxu3  ;;  %v2130_v54 = vsel %vm2128_vm8, 0, %v2129_v51 }
 0x1fe   :  { %v2073_v27 = vmax.f32 %v2057_v59, 0.0  ;;  %v2002_v57 = vadd.f32 %v2001_v50, %v10772_v22  ;;  %v2058_v31 = vpop.f32.mrf.mxu2  ;;  %v2108_v37 = vmax.f32 %v2078_v17, %v2080_v32  ;;  %2131 = vst [vmem:[#allocation3] sm:$0x11] %v2130_v54 }
 0x200   :  { %v2107_v9 = vmax.f32 %v2071_v35, %v2073_v27  ;;  %v2021_v40 = vadd.f32 %v2020_v48, %v2002_v57  ;;  %v2042_v14 = vpop.f32.mrf.mxu1  ;;  %v2137_v48 = vld [vmem:[#allocation3 + $0x24] sm:$0x11]  ;;  %v2116_v59 = vmax.f32 %v2100_v30, %v2108_v37  ;;  %v1817_v57 = vadd.f32 %v10717_v49, %v1798_v58  ;;  %v13217_v30 = vld [vmem:[#allocation15_spill] sm:$0xff] }
 0x201   :  { %v2138_v6 = vsel %vm2128_vm8, 0, %v2137_v48  ;;  %vm2147_vm8 = vmor %vm2146_vm0, %vm10866_vm13  ;;  %v2090_v48 = vmax.f32 %v13227_v38, 0.0  ;;  %v8756_v38 = vld [vmem:[%s13180_s3 + $0x12c] sm:$0xf0] }
 0x202   :  { %v2115_v44 = vmax.f32 %v10686_v0, %v2107_v9  ;;  %v2040_v2 = vadd.f32 %v2039_v3, %v2021_v40  ;;  %v1950_v0 = vadd.f32 %v10755_v5, %v1931_v33  ;;  %v8780_v5 = vld [vmem:[%s13180_s3 + $0x1ec] sm:$0xf0]  ;;  %v2155_v9 = vld [vmem:[#allocation3 + $0x3c] sm:$0x11]  ;;  %v1760_v40 = vadd.f32 %v10700_v18, %v1741_v15  ;;  %2139 = vst [vmem:[#allocation3 + $0x24] sm:$0x11] %v2138_v6  ;;  %vm10890_vm13 = vmand %vm2254_vm1, %vm2143_vm6 }
 0x203   :  { %v7323_v16 = vor.u32 %v8780_v5, %v7322_v63  ;;  %v13218_v18 = vld [vmem:[#allocation13_spill] sm:$0xff]  ;;  %vm2258_vm0 = vmor %vm10898_vm5, %vm10890_vm13  ;;  %v2104_v24 = vmax.f32 %v2090_v48, %v2092_v28  ;;  %vm2494_vm13 = vcmask 1046532   ;;  %vm2441_vm5 = vcmask 261120  }
 0x204   :  { %v2059_v19 = vadd.f32 %v2058_v31, %v2040_v2  ;;  %v2177_v60 = vpack.c.bf16 %v2115_v44, %v13205_v21  ;;  %v1969_v53 = vadd.f32 %v10757_v55, %v1950_v0  ;;  %v2087_v44 = vmax.f32 %v13217_v30, 0.0  ;;  %v13223_v0 = vld [vmem:[#allocation16_spill] sm:$0xff]  ;;  %v7306_v30 = vld [vmem:[%s13180_s3 + $0x1c0] sm:$0xf]  ;;  %vm11046_vm6 = vmor %vm128_vm7, %vm2254_vm1 }
 0x205   :  { %v2004_v43 = vpop.f32.mrf.mxu3  ;;  %3990 = vmatpush.bf16.msra.mxu0 %v7323_v16  ;;  %v1836_v15 = vadd.f32 %v13218_v18, %v1817_v57  ;;  %v2156_v21 = vsel %vm2147_vm8, 0, %v2155_v9  ;;  %v2093_v16 = vmax.f32 %v1760_v40, 0.0  ;;  %v8776_v3 = vld [vmem:[%s13180_s3 + $0x1cc] sm:$0xf0]  ;;  %v7290_v18 = vld [vmem:[%s13180_s3 + $0x1a0] sm:$0xf] }
 0x206   :  { %v2081_v7 = vmax.f32 %v2059_v19, 0.0  ;;  %v2005_v23 = vadd.f32 %v2004_v43, %v10772_v22  ;;  %v2184_v56 = vshrl.u32 %v2177_v60, 16  ;;  %v2187_v34 = vshll.u32 %v2177_v60, 16  ;;  %v2061_v11 = vpop.f32.mrf.mxu2  ;;  %2157 = vst [vmem:[#allocation3 + $0x3c] sm:$0x11] %v2156_v21 }
 0x207   :  { %v1988_v32 = vadd.f32 %v10761_v39, %v1969_v53  ;;  %v2149_v39 = vsel %vm2147_vm8, 0, %v2148_v29  ;;  %v9107_v60 = vmov 0   ;;  %v1912_v43 = vadd.f32 %v13223_v0, %v1893_v42  ;;  %v7146_v21 = vld [vmem:[%s13180_s3 + $0x80] sm:$0xf] }
 0x208   :  { %v2109_v1 = vmax.f32 %v2079_v61, %v2081_v7  ;;  %v2024_v10 = vadd.f32 %v2023_v62, %v2005_v23  ;;  %v10829_v41 = vrot.slane %v2184_v56, 7  ;;  %v2025_v61 = vpop.f32.mrf.mxu0  ;;  %2162 = vst.msk [vmem:[#allocation3] sm:$0xf] %vm2161_vm11, %v9107_v60  ;;  %v2044_v13 = vpop.f32.mrf.mxu1  ;;  %v13226_v23 = vld [vmem:[#allocation12_spill] sm:$0xff]  ;;  %vm2235_vm8 = vcmask 130048  }
 0x209   :  { %2150 = vst [vmem:[#allocation3 + $0x18] sm:$0x11] %v2149_v39  ;;  %v2096_v8 = vmax.f32 %v1988_v32, 0.0  ;;  %v2095_v45 = vmax.f32 %v1912_v43, 0.0  ;;  %v7178_v32 = vld [vmem:[%s13180_s3 + $0xc0] sm:$0xf] }
 0x20a   :  { %v2117_v35 = vmax.f32 %v2101_v25, %v2109_v1  ;;  %v2043_v27 = vadd.f32 %v2042_v14, %v2024_v10  ;;  %v2189_v55 = vor.u32 %v2187_v34, %v10829_v41  ;;  %v2190_v63 = vrot.slane %v10829_v41, 4  ;;  %2170 = vst.msk [vmem:[#allocation3 + $0x8] sm:$0xf] %vm2169_vm15, %v9107_v60  ;;  %v7130_v43 = vld [vmem:[%s13180_s3 + $0x60] sm:$0xf] }
 0x20b   :  { %2163 = vst.msk [vmem:[#allocation3 + $0xc] sm:$0xf] %vm2161_vm11, %v9107_v60  ;;  %v2094_v1 = vmax.f32 %v1836_v15, 0.0  ;;  %vm13234_vm1 = vsmask.f32 256 }
 0x20c   :  { %v2178_v31 = vpack.c.bf16 %v2117_v35, %v2116_v59  ;;  %v2062_v47 = vadd.f32 %v2061_v11, %v2043_v27  ;;  %2217 = vrot.lane.b32.xlu2 %v2189_v55, %s9106_s16  ;;  %2166 = vst.msk [vmem:[#allocation3 + $0x24] sm:$0xf] %vm2161_vm11, %v9107_v60  ;;  %v13228_v59 = vld [vmem:[#allocation11_spill] sm:$0xff] }
 0x20d   :  { %v2006_v33 = vpop.f32.mrf.mxu3  ;;  %v2091_v53 = vmax.f32 %v13228_v59, 0.0  ;;  %2167 = vst.msk [vmem:[#allocation3 + $0x30] sm:$0xf] %vm2161_vm11, %v9107_v60  ;;  %v2112_v26 = vmax.f32 %v2094_v1, %v2096_v8  ;;  %v8732_v8 = vld [vmem:[%s13180_s3 + $0x6c] sm:$0xf0] }
 0x20e   :  { %v2089_v2 = vmax.f32 %v2062_v47, 0.0  ;;  %v2007_v25 = vadd.f32 %v2006_v33, %v10772_v22  ;;  %v2192_v17 = vshrl.u32 %v2178_v31, 16  ;;  %v2195_v37 = vshll.u32 %v2178_v31, 16  ;;  %v2063_v51 = vpop.f32.mrf.mxu2  ;;  %2171 = vst.msk [vmem:[#allocation3 + $0x14] sm:$0xf] %vm2169_vm15, %v9107_v60 }
 0x20f   :  { %2175 = vst.msk [vmem:[#allocation3 + $0x38] sm:$0xf] %vm2169_vm15, %v9107_v60  ;;  %v2105_v35 = vmax.f32 %v2091_v53, %v2093_v16  ;;  %v2120_v54 = vmax.f32 %v2104_v24, %v2112_v26  ;;  %v8744_v33 = vld [vmem:[%s13180_s3 + $0xcc] sm:$0xf0]  ;;  %v7098_v1 = vld [vmem:[%s13180_s3 + $0x20] sm:$0xf] }
 0x210   :  { %v2111_v22 = vmax.f32 %v2087_v44, %v2089_v2  ;;  %v2026_v58 = vadd.f32 %v2025_v61, %v2007_v25  ;;  %v2194_v20 = vrot.slane %v2192_v17, 7  ;;  %v7179_v44 = vor.u32 %v8744_v33, %v7178_v32  ;;  %v7162_v25 = vld [vmem:[%s13180_s3 + $0xa0] sm:$0xf]  ;;  %v8740_v17 = vld [vmem:[%s13180_s3 + $0xac] sm:$0xf0] }
 0x211   :  { %v7307_v2 = vor.u32 %v8776_v3, %v7306_v30  ;;  %v7163_v15 = vor.u32 %v8740_v17, %v7162_v25  ;;  %v8772_v61 = vld [vmem:[%s13180_s3 + $0x1ac] sm:$0xf0]  ;;  %v2152_v59 = vld [vmem:[#allocation3 + $0x20] sm:$0x1]  ;;  %v7082_v53 = vld [vmem:[%s13180_s3] sm:$0xf] }
 0x212   :  { %v2119_v56 = vmax.f32 %v13226_v23, %v2111_v22  ;;  %v2045_v34 = vadd.f32 %v2044_v13, %v2026_v58  ;;  %v2199_v5 = vrot.slane %v2194_v20, 4  ;;  %v2197_v14 = vor.u32 %v2195_v37, %v2194_v20  ;;  %3972 = vmatpush.bf16.msra.mxu3 %v7179_v44  ;;  %v8736_v22 = vld [vmem:[%s13180_s3 + $0x8c] sm:$0xf0]  ;;  %v7274_v58 = vld [vmem:[%s13180_s3 + $0x180] sm:$0xf] }
 0x213   :  { %3991 = vmatpush.bf16.msra.mxu0 %v7307_v2  ;;  %v7291_v39 = vor.u32 %v8772_v61, %v7290_v18  ;;  %v7147_v20 = vor.u32 %v8736_v22, %v7146_v21  ;;  %v8768_v37 = vld [vmem:[%s13180_s3 + $0x18c] sm:$0xf0]  ;;  %v7258_v13 = vld [vmem:[%s13180_s3 + $0x160] sm:$0xf]  ;;  %v2153_v24 = vsel %vm10882_vm14, 0, %v2152_v59 }
 0x214   :  { %v2179_v10 = vpack.c.bf16 %v2119_v56, %v2118_v46  ;;  %v2064_v41 = vadd.f32 %v2063_v51, %v2045_v34  ;;  %2221 = vrot.lane.b32.xlu0 %v2199_v5, %s9106_s16  ;;  %v2198_v52 = vsel %vm10840_vm3, %v2190_v63, %v2197_v14  ;;  %v7275_v0 = vor.u32 %v8768_v37, %v7274_v58  ;;  %v8764_v23 = vld [vmem:[%s13180_s3 + $0x16c] sm:$0xf0]  ;;  %v7114_v34 = vld [vmem:[%s13180_s3 + $0x40] sm:$0xf] }
 0x215   :  { %2219 = vrot.lane.b32.xlu2 %v2198_v52, %s9106_s16  ;;  %v7131_v63 = vor.u32 %v8732_v8, %v7130_v43  ;;  %v7259_v56 = vor.u32 %v8764_v23, %v7258_v13  ;;  %v8728_v5 = vld [vmem:[%s13180_s3 + $0x4c] sm:$0xf0]  ;;  %v7242_v14 = vld [vmem:[%s13180_s3 + $0x140] sm:$0xf]  ;;  %2154 = vst [vmem:[#allocation3 + $0x20] sm:$0x1] %v2153_v24 }
 0x216   :  { %v2097_v46 = vmax.f32 %v2064_v41, 0.0  ;;  %v2201_v11 = vshrl.u32 %v2179_v10, 16  ;;  %v2204_v57 = vshll.u32 %v2179_v10, 16  ;;  %3973 = vmatpush.bf16.msra.mxu3 %v7163_v15  ;;  %v7115_v28 = vor.u32 %v8728_v5, %v7114_v34  ;;  %v8760_v16 = vld [vmem:[%s13180_s3 + $0x14c] sm:$0xf0] }
 0x217   :  { %3992 = vmatpush.bf16.msra.mxu0 %v7291_v39  ;;  %v7243_v51 = vor.u32 %v8760_v16, %v7242_v14  ;;  %v8724_v10 = vld [vmem:[%s13180_s3 + $0x2c] sm:$0xf0]  ;;  %v7226_v41 = vld [vmem:[%s13180_s3 + $0x120] sm:$0xf]  ;;  %2173 = vst.msk [vmem:[#allocation3 + $0x20] sm:$0x1] %vm2172_vm9, %v9107_v60 }
 0x218   :  { %v2113_v27 = vmax.f32 %v2095_v45, %v2097_v46  ;;  %v2203_v55 = vrot.slane %v2201_v11, 7  ;;  %v7099_v52 = vor.u32 %v8724_v10, %v7098_v1  ;;  %v7227_v48 = vor.u32 %v8756_v38, %v7226_v41  ;;  %v8720_v45 = vld [vmem:[%s13180_s3 + $0xc] sm:$0xf0]  ;;  %v7210_v26 = vld [vmem:[%s13180_s3 + $0x100] sm:$0xf] }
 0x219   :  { %v7083_v46 = vor.u32 %v8720_v45, %v7082_v53  ;;  %v8752_v11 = vld [vmem:[%s13180_s3 + $0x10c] sm:$0xf0]  ;;  %v7498_v21 = vld [vmem:[%s13180_s3 + $0x340] sm:$0xf] }
 0x21a   :  { %v2121_v6 = vmax.f32 %v2105_v35, %v2113_v27  ;;  %v2206_v29 = vor.u32 %v2204_v57, %v2203_v55  ;;  %v2207_v40 = vrot.slane %v2203_v55, 4  ;;  %3974 = vmatpush.bf16.msra.mxu3 %v7147_v20  ;;  %v7211_v35 = vor.u32 %v8752_v11, %v7210_v26  ;;  %v2264_v55 = vld [vmem:[#allocation3 + $0x8] sm:$0xf] }
 0x21b   :  { %3993 = vmatpush.bf16.msra.mxu0 %v7275_v0  ;;  %v2282_v59 = vld [vmem:[#allocation3 + $0x24] sm:$0xff] }
 0x21c   :  { %v2180_v31 = vpack.c.bf16 %v2121_v6, %v2120_v54  ;;  %2223 = vrot.lane.b32.xlu1 %v2206_v29, %s9106_s16  ;;  %v2259_v54 = vld [vmem:[#allocation3] sm:$0xff]  ;;  %v2140_v29 = vld [vmem:[#allocation3 + $0x2c] sm:$0x1] }
 0x21e   :  { %v2209_v47 = vshrl.u32 %v2180_v31, 16  ;;  %v2212_v49 = vshll.u32 %v2180_v31, 16  ;;  %3975 = vmatpush.bf16.msra.mxu3 %v7131_v63  ;;  %v2141_v31 = vsel %vm10857_vm10, 0, %v2140_v29  ;;  %vm2305_vm10 = vcmask 257024  }
 0x21f   :  { %3994 = vmatpush.bf16.msra.mxu0 %v7259_v56  ;;  %2142 = vst [vmem:[#allocation3 + $0x2c] sm:$0x1] %v2141_v31  ;;  %v2279_v56 = vld [vmem:[#allocation3 + $0x20] sm:$0x1] }
 0x220   :  { %v2211_v12 = vrot.slane %v2209_v47, 7  ;;  %2174 = vst.msk [vmem:[#allocation3 + $0x2c] sm:$0xf] %vm2169_vm15, %v9107_v60 }
 0x222   :  { %v2216_v9 = vrot.slane %v2211_v12, 4  ;;  %v2214_v36 = vor.u32 %v2212_v49, %v2211_v12  ;;  %3976 = vmatpush.bf16.msra.mxu3 %v7115_v28 }
 0x223   :  { %3995 = vmatpush.bf16.msra.mxu0 %v7243_v51 }
 0x224   :  { %2227 = vrot.lane.b32.xlu0 %v2216_v9, %s9106_s16  ;;  %v2215_v42 = vsel %vm10840_vm3, %v2207_v40, %v2214_v36  ;;  %vm2164_vm3 = vcmask 122880   ;;  %v2158_v9 = vld [vmem:[#allocation3 + $0x44] sm:$0x1] }
 0x225   :  { %2225 = vrot.lane.b32.xlu2 %v2215_v42, %s9106_s16  ;;  %2165 = vst.msk [vmem:[#allocation3 + $0x18] sm:$0x1] %vm2164_vm3, %v9107_v60  ;;  %v2159_v42 = vsel %vm10882_vm14, 0, %v2158_v9  ;;  %vm2271_vm14 = vcmask 1040512  }
 0x226   :  { %3977 = vmatpush.bf16.msra.mxu3 %v7099_v52  ;;  %2168 = vst.msk [vmem:[#allocation3 + $0x3c] sm:$0x1] %vm2164_vm3, %v9107_v60  ;;  %vm11076_vm15 = vmand %vm2271_vm14, %vm13234_vm1 }
 0x227   :  { %3996 = vmatpush.bf16.msra.mxu0 %v7227_v48  ;;  %2160 = vst [vmem:[#allocation3 + $0x44] sm:$0x1] %v2159_v42  ;;  %v2285_v52 = vld [vmem:[#allocation3 + $0x2c] sm:$0xf] }
 0x228   :  { %2176 = vst.msk [vmem:[#allocation3 + $0x44] sm:$0x1] %vm2172_vm9, %v9107_v60  ;;  %vm13237_vm9 = vmmov %vm13234_vm1  ;;  %vm3964_vm1 = vcmask 785408  }
 0x22a   :  { %3978 = vmatpush.bf16.msra.mxu3 %v7083_v46 }
 0x22b   :  { %3997 = vmatpush.bf16.msra.mxu0 %v7211_v35 }
 0x22c   :  { %v2274_v5 = vld [vmem:[#allocation3 + $0x18] sm:$0x11] }
 0x266   :  { %v2218_v57 = vpop.permute.xlu2 %2217 }
 0x267   :  { %v2229_v6 = vrot.slane %v2218_v57, 4 }
 0x269   :  { %v2236_v47 = vsel %vm2235_vm8, %v2229_v6, %v2218_v57  ;;  %v2265_v12 = vsel %vm11028_vm12, %v2229_v6, %v2264_v55 }
 0x26a   :  { %v2260_v49 = vsel %vm2258_vm0, %v2236_v47, %v2259_v54  ;;  %2266 = vst [vmem:[#allocation3 + $0x8] sm:$0xf] %v2265_v12  ;;  %v2293_v47 = vld [vmem:[#allocation3 + $0x44] sm:$0x1] }
 0x26b   :  { %2261 = vst [vmem:[#allocation3] sm:$0xff] %v2260_v49  ;;  %v2326_v32 = vshrl.u32 %v2260_v49, 16  ;;  %v2329_v33 = vshll.u32 %v2260_v49, 16 }
 0x26c   :  { %2304 = vst [vmem:[#allocation4] sm:$0xff] %v2260_v49  ;;  %v2290_v49 = vld [vmem:[#allocation3 + $0x3c] sm:$0x11] }
 0x26d   :  { %v2328_v44 = vrot.slane %v2326_v32, 4  ;;  %v2331_v3 = vrot.slane %v2329_v33, 5 }
 0x26f   :  { %v2220_v4 = vpop.permute.xlu2 %2219  ;;  %v2332_v19 = vor.u32 %v2331_v3, %v2328_v44 }
 0x270   :  { %v2230_v36 = vrot.slane %v2220_v4, 4 }
 0x271   :  { %v2297_v2 = vld [vmem:[#allocation3 + $0x8] sm:$0xf]  ;;  %v2333_v15 = vrot.slane %v2332_v19, 4 }
 0x272   :  { %v2237_v30 = vsel %vm2235_vm8, %v2230_v36, %v2220_v4  ;;  %2270 = vst.msk [vmem:[#allocation3 + $0x14] sm:$0xf] %vm2161_vm11, %v2230_v36  ;;  %v2314_v54 = vld [vmem:[#allocation3 + $0x8] sm:$0xf] }
 0x273   :  { %2269 = vst.msk [vmem:[#allocation3 + $0xc] sm:$0xff] %vm11046_vm6, %v2237_v30  ;;  %v7026_v58 = vld [vmem:[#allocation4] sm:$0xf]  ;;  %v8704_v20 = vld [vmem:[#allocation4 + $0x4] sm:$0xf]  ;;  %v2340_v40 = vshrl.u32 %v2314_v54, 16 }
 0x274   :  { %2306 = vst.msk [vmem:[#allocation4 + $0x8] sm:$0xf] %vm2305_vm10, %v2297_v2  ;;  %v2343_v36 = vshll.u32 %v2314_v54, 16  ;;  %v2469_v2 = vld [vmem:[#allocation3] sm:$0xee] }
 0x279   :  { %v2299_v17 = vld [vmem:[#allocation3 + $0x14] sm:$0xf] }
 0x27a   :  { %v11059_v25 = vld [vmem:[#allocation3 + $0xc] sm:$0xff]  ;;  %2308 = vst.msk [vmem:[#allocation4 + $0x24] sm:$0xf] %vm2305_vm10, %v2299_v17  ;;  %v2316_v31 = vld [vmem:[#allocation3 + $0x14] sm:$0xf] }
 0x27b   :  { %2307 = vst [vmem:[#allocation4 + $0x1c] sm:$0xff] %v11059_v25  ;;  %v2335_v18 = vshll.u32 %v11059_v25, 16  ;;  %v2353_v1 = vshrl.u32 %v11059_v25, 16  ;;  %v2349_v33 = vshll.u32 %v2316_v31, 16  ;;  %v2363_v30 = vshrl.u32 %v2316_v31, 16 }
 0x27d   :  { %v2337_v61 = vrot.slane %v2335_v18, 5  ;;  %v2355_v48 = vrot.slane %v2353_v1, 4 }
 0x27f   :  { %v2226_v39 = vpop.permute.xlu2 %2225  ;;  %v2338_v60 = vsel %vm9206_vm2, %v2333_v15, %v2337_v61  ;;  %v2356_v11 = vor.u32 %v2355_v48, %v2337_v61 }
 0x280   :  { %v2233_v22 = vrot.slane %v2226_v39, 4  ;;  %2421 = vrot.lane.b32.xlu1 %v2338_v60, %s9108_s11 }
 0x281   :  { %v2357_v12 = vrot.slane %v2356_v11, 4 }
 0x282   :  { %v2240_v37 = vsel %vm2235_vm8, %v2233_v22, %v2226_v39  ;;  %2289 = vst.msk [vmem:[#allocation3 + $0x38] sm:$0xf] %vm2161_vm11, %v2233_v22  ;;  %v8707_v0 = vld [vmem:[#allocation4 + $0x18] sm:$0xf0]  ;;  %v7028_v43 = vld [vmem:[#allocation4 + $0x1c] sm:$0xf0]  ;;  %vm11084_vm11 = vmand %vm2164_vm3, %vm13237_vm9 }
 0x283   :  { %2288 = vst.msk [vmem:[#allocation3 + $0x30] sm:$0xff] %vm11046_vm6, %v2240_v37  ;;  %v11071_v8 = vor.u32 %v8707_v0, %v7026_v58  ;;  %v11073_v13 = vor.u32 %v8704_v20, %v7028_v43  ;;  %vm2273_vm6 = vmor %vm10845_vm4, %vm11076_vm15  ;;  %v2498_v58 = vrot.slane %v11059_v25, 5  ;;  %v11143_v25 = vrot.slane %v2349_v33, 5  ;;  %v8840_v33 = vld [vmem:[%s13180_s3 + $0x3cc] sm:$0xf0] }
 0x284   :  { %v8824_v43 = vld [vmem:[%s13180_s3 + $0x34c] sm:$0xf0]  ;;  %vm2461_vm3 = vcmask 519168   ;;  %vm13246_vm15 = vcmask 1040384  }
 0x285   :  { %3979 = vmatmul.bf16.vlgmr.msra.gmra.mxu3 %v11071_v8  ;;  %3998 = vmatmul.bf16.vlgmr.msra.gmra.mxu0 %v11073_v13  ;;  %vm13247_vm9 = vmmov %vm13246_vm15 }
 0x286   :  { %v2222_v34 = vpop.permute.xlu0 %2221 }
 0x287   :  { %v2231_v14 = vrot.slane %v2222_v34, 4 }
 0x289   :  { %v2238_v28 = vsel %vm2235_vm8, %v2231_v14, %v2222_v34  ;;  %v2280_v16 = vsel %vm11084_vm11, %v2231_v14, %v2279_v56  ;;  %v2303_v41 = vld [vmem:[#allocation3 + $0x38] sm:$0xf]  ;;  %v7020_v56 = vrot.slane %v2469_v2, 9  ;;  %v2365_v34 = vrot.slane %v2363_v30, 4 }
 0x28a   :  { %v11095_v51 = vld [vmem:[#allocation3 + $0x30] sm:$0xff]  ;;  %v2275_v10 = vsel %vm2273_vm6, %v2238_v28, %v2274_v5  ;;  %2281 = vst [vmem:[#allocation3 + $0x20] sm:$0x1] %v2280_v16  ;;  %v2342_v14 = vrot.slane %v2340_v40, 4  ;;  %v2345_v28 = vrot.slane %v2343_v36, 5 }
 0x28b   :  { %2311 = vst [vmem:[#allocation4 + $0x54] sm:$0xff] %v11095_v51  ;;  %v2383_v27 = vshll.u32 %v11095_v51, 16  ;;  %v2401_v32 = vshrl.u32 %v11095_v51, 16 }
 0x28c   :  { %2276 = vst [vmem:[#allocation3 + $0x18] sm:$0x11] %v2275_v10 }
 0x28d   :  { %2312 = vst.msk [vmem:[#allocation4 + $0x5c] sm:$0xf] %vm2305_vm10, %v2303_v41  ;;  %v2385_v17 = vrot.slane %v2383_v27, 5  ;;  %v2403_v23 = vrot.slane %v2401_v32, 4  ;;  %v2504_v41 = vrot.slane %v2498_v58, 4 }
 0x28e   :  { %v2224_v38 = vpop.permute.xlu1 %2223  ;;  %v2322_v27 = vld [vmem:[#allocation3 + $0x38] sm:$0xf] }
 0x28f   :  { %v2232_v53 = vrot.slane %v2224_v38, 4  ;;  %v2404_v10 = vor.u32 %v2403_v23, %v2385_v17  ;;  %v2397_v40 = vshll.u32 %v2322_v27, 16  ;;  %v2411_v36 = vshrl.u32 %v2322_v27, 16  ;;  %v7562_v32 = vld [vmem:[%s13180_s3 + $0x3c0] sm:$0xf] }
 0x291   :  { %v2239_v45 = vsel %vm2235_vm8, %v2232_v53, %v2224_v38  ;;  %v2286_v26 = vsel %vm11028_vm12, %v2232_v53, %v2285_v52  ;;  %vm2493_vm12 = vcmask 1042432   ;;  %v2318_v63 = vld [vmem:[#allocation3 + $0x20] sm:$0x1]  ;;  %v2366_v52 = vor.u32 %v2365_v34, %v11143_v25 }
 0x292   :  { %v2283_v46 = vsel %vm2258_vm0, %v2239_v45, %v2282_v59  ;;  %2287 = vst [vmem:[#allocation3 + $0x2c] sm:$0xf] %v2286_v26  ;;  %v8714_v15 = vld [vmem:[#allocation4 + $0x50] sm:$0xf0]  ;;  %v7056_v61 = vld [vmem:[#allocation4 + $0x54] sm:$0xf0]  ;;  %vm11136_vm4 = vmor %vm2493_vm12, %vm2494_vm13  ;;  %v2346_v53 = vor.u32 %v2345_v28, %v2342_v14 }
 0x293   :  { %2284 = vst [vmem:[#allocation3 + $0x24] sm:$0xff] %v2283_v46  ;;  %v2317_v24 = vld [vmem:[#allocation3 + $0x18] sm:$0x11]  ;;  %v2374_v35 = vshrl.u32 %v2283_v46, 16  ;;  %v2377_v55 = vshll.u32 %v2283_v46, 16  ;;  %v2499_v16 = vsel %vm11136_vm4, %v7020_v56, %v2498_v58  ;;  %v2369_v1 = vshll.u32 %v2318_v63, 16 }
 0x294   :  { %v2359_v57 = vshll.u32 %v2317_v24, 16  ;;  %2309 = vst [vmem:[#allocation4 + $0x38] sm:$0xff] %v2283_v46  ;;  %v2473_v37 = vld [vmem:[#allocation3 + $0x18] sm:$0x11]  ;;  %v2470_v45 = vld [vmem:[#allocation3 + $0x8] sm:$0xe] }
 0x295   :  { %v2376_v6 = vrot.slane %v2374_v35, 4  ;;  %v2379_v29 = vrot.slane %v2377_v55, 5  ;;  %v2505_v5 = vrot.slane %v2473_v37, 5  ;;  %v2371_v26 = vrot.slane %v2369_v1, 5  ;;  %v11152_v46 = vld [vmem:[#allocation3 + $0x14] sm:$0xf] }
 0x296   :  { %v2228_v7 = vpop.permute.xlu0 %2227  ;;  %v2361_v62 = vrot.slane %v2359_v57, 5  ;;  %v2405_v11 = vrot.slane %v2404_v10, 4  ;;  %v2367_v35 = vrot.slane %v2366_v52, 4  ;;  %v7021_v55 = vrot.slane %v2470_v45, 9  ;;  %v7530_v10 = vld [vmem:[%s13180_s3 + $0x380] sm:$0xf] }
 0x297   :  { %v2234_v4 = vrot.slane %v2228_v7, 4  ;;  %v2380_v9 = vor.u32 %v2379_v29, %v2376_v6  ;;  %v2506_v59 = vsel %vm11136_vm4, %v2504_v41, %v2505_v5  ;;  %v2347_v6 = vrot.slane %v2346_v53, 4  ;;  %v8832_v41 = vld [vmem:[%s13180_s3 + $0x38c] sm:$0xf0] }
 0x298   :  { %v2362_v42 = vsel %vm9206_vm2, %v2357_v12, %v2361_v62  ;;  %v2502_v29 = vrot.slane %v11152_v46, 5  ;;  %v2372_v31 = vsel %vm9206_vm2, %v2367_v35, %v2371_v26  ;;  %v7578_v12 = vld [vmem:[%s13180_s3 + $0x3e0] sm:$0xf]  ;;  %v2399_v58 = vrot.slane %v2397_v40, 5 }
 0x299   :  { %v2241_v44 = vsel %vm2235_vm8, %v2234_v4, %v2228_v7  ;;  %v2294_v3 = vsel %vm11084_vm11, %v2234_v4, %v2293_v47  ;;  %2425 = vrot.lane.b32.xlu2 %v2362_v42, %s9108_s11  ;;  %v2381_v19 = vrot.slane %v2380_v9, 4  ;;  %v2301_v0 = vld [vmem:[#allocation3 + $0x2c] sm:$0xf]  ;;  %v7450_v47 = vld [vmem:[%s13180_s3 + $0x2e0] sm:$0xf]  ;;  %v2413_v37 = vrot.slane %v2411_v36, 4 }
 0x29a   :  { %v2291_v18 = vsel %vm2273_vm6, %v2241_v44, %v2290_v49  ;;  %2295 = vst [vmem:[#allocation3 + $0x44] sm:$0x1] %v2294_v3  ;;  %v2475_v54 = vld [vmem:[#allocation3 + $0x24] sm:$0xee]  ;;  %v7434_v4 = vld [vmem:[%s13180_s3 + $0x2c0] sm:$0xf]  ;;  %v2503_v3 = vsel %vm11136_vm4, %v7021_v55, %v2502_v29  ;;  %vm13248_vm6 = vmmov %vm13247_vm9 }
 0x29b   :  { %2292 = vst [vmem:[#allocation3 + $0x3c] sm:$0x11] %v2291_v18  ;;  %v2386_v39 = vsel %vm9206_vm2, %v2381_v19, %v2385_v17  ;;  %v7054_v60 = vld [vmem:[#allocation4 + $0x38] sm:$0xf]  ;;  %v8711_v22 = vld [vmem:[#allocation4 + $0x3c] sm:$0xf]  ;;  %v7563_v18 = vor.u32 %v8840_v33, %v7562_v32  ;;  %v2414_v52 = vor.u32 %v2413_v37, %v2399_v58  ;;  %vm13249_vm12 = vmmov %vm13248_vm6 }
 0x29c   :  { %2429 = vrot.lane.b32.xlu0 %v2386_v39, %s9108_s11  ;;  %v11130_v20 = vor.u32 %v8714_v15, %v7054_v60  ;;  %v11132_v50 = vor.u32 %v8711_v22, %v7056_v61  ;;  %2310 = vst.msk [vmem:[#allocation4 + $0x40] sm:$0xf] %vm2305_vm10, %v2301_v0  ;;  %v8812_v7 = vld [vmem:[%s13180_s3 + $0x2ec] sm:$0xf0]  ;;  %v7022_v30 = vrot.slane %v2475_v54, 9  ;;  %v2512_v44 = vrot.slane %v11095_v51, 5  ;;  %vm13250_vm13 = vmmov %vm13248_vm6 }
 0x29d   :  { %v7451_v62 = vor.u32 %v8812_v7, %v7450_v47  ;;  %v8844_v49 = vld [vmem:[%s13180_s3 + $0x3ec] sm:$0xf0]  ;;  %v2320_v2 = vld [vmem:[#allocation3 + $0x2c] sm:$0xf]  ;;  %v7418_v15 = vld [vmem:[%s13180_s3 + $0x2a0] sm:$0xf]  ;;  %v2352_v22 = vsel %vm9206_vm2, %v2347_v6, %v11143_v25 }
 0x29e   :  { %3984 = vmatmul.bf16.gmra.mxu3 %v11130_v20  ;;  %4003 = vmatmul.bf16.gmra.mxu0 %v11132_v50  ;;  %v8808_v9 = vld [vmem:[%s13180_s3 + $0x2cc] sm:$0xf0]  ;;  %v7579_v42 = vor.u32 %v8844_v49, %v7578_v12  ;;  %v7546_v39 = vld [vmem:[%s13180_s3 + $0x3a0] sm:$0xf]  ;;  %v2474_v0 = vld [vmem:[#allocation3 + $0x20] sm:$0x1]  ;;  %v2513_v5 = vsel %vm11136_vm4, %v7022_v30, %v2512_v44 }
 0x29f   :  { %4009 = vmatpush.bf16.msra.mxu1 %v7451_v62  ;;  %v7435_v19 = vor.u32 %v8808_v9, %v7434_v4  ;;  %v8804_v51 = vld [vmem:[%s13180_s3 + $0x2ac] sm:$0xf0]  ;;  %v2388_v23 = vshrl.u32 %v2320_v2, 16  ;;  %v2391_v56 = vshll.u32 %v2320_v2, 16  ;;  %v7402_v25 = vld [vmem:[%s13180_s3 + $0x280] sm:$0xf] }
 0x2a0   :  { %4028 = vmatpush.bf16.msra.mxu2 %v7579_v42  ;;  %v8836_v60 = vld [vmem:[%s13180_s3 + $0x3ac] sm:$0xf0]  ;;  %v7419_v34 = vor.u32 %v8804_v51, %v7418_v15  ;;  %v2518_v1 = vrot.slane %v2512_v44, 4  ;;  %v2476_v45 = vld [vmem:[#allocation3 + $0x2c] sm:$0xe]  ;;  %v2415_v27 = vrot.slane %v2414_v52, 4 }
 0x2a1   :  { %2524 = vrot.lane.b32.xlu2 %v2499_v16, %s9109_s25  ;;  %v2324_v61 = vld [vmem:[#allocation3 + $0x44] sm:$0x1]  ;;  %v7547_v28 = vor.u32 %v8836_v60, %v7546_v39  ;;  %v8800_v16 = vld [vmem:[%s13180_s3 + $0x28c] sm:$0xf0]  ;;  %v2393_v53 = vrot.slane %v2391_v56, 5  ;;  %v7023_v12 = vrot.slane %v2476_v45, 9 }
 0x2a2   :  { %v2323_v38 = vld [vmem:[#allocation3 + $0x3c] sm:$0x11]  ;;  %v2417_v14 = vshll.u32 %v2324_v61, 16  ;;  %v7403_v26 = vor.u32 %v8800_v16, %v7402_v25  ;;  %v7386_v35 = vld [vmem:[%s13180_s3 + $0x260] sm:$0xf]  ;;  %vm2561_vm8 = vcmask 1043968  }
 0x2a3   :  { %v2407_v48 = vshll.u32 %v2323_v38, 16  ;;  %v2479_v17 = vld [vmem:[#allocation3 + $0x3c] sm:$0x11]  ;;  %4010 = vmatpush.bf16.msra.mxu1 %v7435_v19  ;;  %v2508_v38 = vrot.slane %v2474_v0, 5  ;;  %v8796_v55 = vld [vmem:[%s13180_s3 + $0x26c] sm:$0xf0]  ;;  %vm11541_vm14 = vmor %vm128_vm7, %vm2561_vm8 }
 0x2a4   :  { %2528 = vrot.lane.b32.xlu0 %v2506_v59, %s9109_s25  ;;  %v2519_v63 = vrot.slane %v2479_v17, 5  ;;  %4029 = vmatpush.bf16.msra.mxu2 %v7563_v18  ;;  %v2390_v59 = vrot.slane %v2388_v23, 4  ;;  %v7514_v54 = vld [vmem:[%s13180_s3 + $0x360] sm:$0xf]  ;;  %v8828_v6 = vld [vmem:[%s13180_s3 + $0x36c] sm:$0xf0]  ;;  %v7387_v62 = vor.u32 %v8796_v55, %v7386_v35  ;;  %v7499_v17 = vor.u32 %v8824_v43, %v7498_v21 }
 0x2a5   :  { %v2409_v24 = vrot.slane %v2407_v48, 5  ;;  %v2480_v36 = vld [vmem:[#allocation3 + $0x44] sm:$0x1]  ;;  %v7370_v30 = vld [vmem:[%s13180_s3 + $0x240] sm:$0xf]  ;;  %vm2544_vm10 = vcmask 523264  }
 0x2a6   :  { %v2520_v48 = vsel %vm11136_vm4, %v2518_v1, %v2519_v63  ;;  %v2394_v7 = vor.u32 %v2393_v53, %v2390_v59  ;;  %v2522_v42 = vrot.slane %v2480_v36, 5  ;;  %v8792_v44 = vld [vmem:[%s13180_s3 + $0x24c] sm:$0xf0]  ;;  %v7354_v2 = vld [vmem:[%s13180_s3 + $0x220] sm:$0xf]  ;;  %vm4568_vm11 = vcmask 1041409  }
 0x2a7   :  { %v2410_v57 = vsel %vm9206_vm2, %v2405_v11, %v2409_v24  ;;  %4011 = vmatpush.bf16.msra.mxu1 %v7419_v34  ;;  %v2419_v11 = vrot.slane %v2417_v14, 5  ;;  %v7531_v24 = vor.u32 %v8832_v41, %v7530_v10  ;;  %v8788_v19 = vld [vmem:[%s13180_s3 + $0x22c] sm:$0xf0]  ;;  %v7482_v18 = vld [vmem:[%s13180_s3 + $0x320] sm:$0xf] }
 0x2a8   :  { %2433 = vrot.lane.b32.xlu1 %v2410_v57, %s9108_s11  ;;  %4030 = vmatpush.bf16.msra.mxu2 %v7547_v28  ;;  %v2507_v57 = vrot.slane %v2502_v29, 4  ;;  %v7515_v29 = vor.u32 %v8828_v6, %v7514_v54  ;;  %v2395_v4 = vrot.slane %v2394_v7, 4  ;;  %v8820_v15 = vld [vmem:[%s13180_s3 + $0x32c] sm:$0xf0]  ;;  %v7355_v51 = vor.u32 %v8788_v19, %v7354_v2  ;;  %v7338_v39 = vld [vmem:[%s13180_s3 + $0x200] sm:$0xf] }
 0x2a9   :  { %2427 = vrot.lane.b32.xlu2 %v2372_v31, %s9108_s11  ;;  %v2478_v31 = vld [vmem:[#allocation3 + $0x38] sm:$0xf]  ;;  %v2420_v46 = vsel %vm9206_vm2, %v2415_v27, %v2419_v11  ;;  %v7483_v61 = vor.u32 %v8820_v15, %v7482_v18  ;;  %v8784_v60 = vld [vmem:[%s13180_s3 + $0x20c] sm:$0xf0]  ;;  %v7196_v54 = vld [vmem:[%s13180_s3 + $0xf0] sm:$0xf0] }
 0x2aa   :  { %v2509_v47 = vsel %vm11136_vm4, %v2507_v57, %v2508_v38  ;;  %v2516_v49 = vrot.slane %v2478_v31, 5  ;;  %v2400_v40 = vsel %vm9206_vm2, %v2395_v4, %v2399_v58  ;;  %v7339_v58 = vor.u32 %v8784_v60, %v7338_v39  ;;  %v8816_v37 = vld [vmem:[%s13180_s3 + $0x30c] sm:$0xf0]  ;;  %v7706_v63 = vld [vmem:[%s13180_s3 + $0x4e0] sm:$0xf] }
 0x2ab   :  { %4012 = vmatpush.bf16.msra.mxu1 %v7403_v26  ;;  %vm2458_vm2 = vcmask 1043712   ;;  %v8876_v23 = vld [vmem:[%s13180_s3 + $0x4ec] sm:$0xf0]  ;;  %v7834_v56 = vld [vmem:[%s13180_s3 + $0x5e0] sm:$0xf] }
 0x2ac   :  { %2526 = vrot.lane.b32.xlu0 %v2503_v3, %s9109_s25  ;;  %4031 = vmatpush.bf16.msra.mxu2 %v7531_v24  ;;  %v2517_v9 = vsel %vm11136_vm4, %v7023_v12, %v2516_v49  ;;  %v2521_v32 = vrot.slane %v2516_v49, 4  ;;  %v7371_v3 = vor.u32 %v8792_v44, %v7370_v30  ;;  %v8908_v14 = vld [vmem:[%s13180_s3 + $0x5ec] sm:$0xf0]  ;;  %vm11305_vm0 = vmor %vm128_vm7, %vm2458_vm2  ;;  %v7690_v10 = vld [vmem:[%s13180_s3 + $0x4c0] sm:$0xf]  ;;  %vm2564_vm7 = vcmask 781312  }
 0x2ad   :  { %v7835_v1 = vor.u32 %v8908_v14, %v7834_v56  ;;  %v8872_v41 = vld [vmem:[%s13180_s3 + $0x4cc] sm:$0xf0]  ;;  %v7674_v26 = vld [vmem:[%s13180_s3 + $0x4a0] sm:$0xf]  ;;  %v8746_v57 = vld [vmem:[%s13180_s3 + $0xe4] sm:$0xf] }
 0x2ae   :  { %v2523_v33 = vsel %vm11136_vm4, %v2521_v32, %v2522_v42  ;;  %v7691_v38 = vor.u32 %v8872_v41, %v7690_v10  ;;  %v8904_v59 = vld [vmem:[%s13180_s3 + $0x5cc] sm:$0xf0]  ;;  %v7802_v24 = vld [vmem:[%s13180_s3 + $0x5a0] sm:$0xf]  ;;  %v7199_v27 = vor.u32 %v8746_v57, %v7196_v54  ;;  %v8742_v32 = vld [vmem:[%s13180_s3 + $0xc4] sm:$0xf] }
 0x2af   :  { %4013 = vmatpush.bf16.msra.mxu1 %v7387_v62  ;;  %4066 = vmatpush.bf16.msrb.mxu0 %v7835_v1  ;;  %v8868_v11 = vld [vmem:[%s13180_s3 + $0x4ac] sm:$0xf0]  ;;  %v7658_v62 = vld [vmem:[%s13180_s3 + $0x480] sm:$0xf]  ;;  %v7180_v44 = vld [vmem:[%s13180_s3 + $0xd0] sm:$0xf0] }
 0x2b0   :  { %2423 = vrot.lane.b32.xlu1 %v2352_v22, %s9108_s11  ;;  %4032 = vmatpush.bf16.msra.mxu2 %v7515_v29  ;;  %v7466_v22 = vld [vmem:[%s13180_s3 + $0x300] sm:$0xf]  ;;  %v8900_v55 = vld [vmem:[%s13180_s3 + $0x5ac] sm:$0xf0]  ;;  %v7675_v6 = vor.u32 %v8868_v11, %v7674_v26  ;;  %v8734_v41 = vld [vmem:[%s13180_s3 + $0x84] sm:$0xf] }
 0x2b1   :  { %2532 = vrot.lane.b32.xlu2 %v2513_v5, %s9109_s25  ;;  %v7467_v0 = vor.u32 %v8816_v37, %v7466_v22  ;;  %v7707_v5 = vor.u32 %v8876_v23, %v7706_v63  ;;  %v7803_v31 = vor.u32 %v8900_v55, %v7802_v24  ;;  %v8864_v49 = vld [vmem:[%s13180_s3 + $0x48c] sm:$0xf0]  ;;  %v7786_v36 = vld [vmem:[%s13180_s3 + $0x580] sm:$0xf]  ;;  %v7164_v22 = vld [vmem:[%s13180_s3 + $0xb0] sm:$0xf0] }
 0x2b2   :  { %v8896_v42 = vld [vmem:[%s13180_s3 + $0x58c] sm:$0xf0]  ;;  %v7642_v21 = vld [vmem:[%s13180_s3 + $0x460] sm:$0xf]  ;;  %vm13251_vm4 = vmmov %vm13248_vm6 }
 0x2b3   :  { %4014 = vmatpush.bf16.msra.mxu1 %v7371_v3  ;;  %4047 = vmatpush.bf16.msrb.mxu3 %v7707_v5  ;;  %v7787_v30 = vor.u32 %v8896_v42, %v7786_v36  ;;  %v7183_v3 = vor.u32 %v8742_v32, %v7180_v44  ;;  %v8860_v43 = vld [vmem:[%s13180_s3 + $0x46c] sm:$0xf0]  ;;  %v7770_v2 = vld [vmem:[%s13180_s3 + $0x560] sm:$0xf]  ;;  %v8726_v44 = vld [vmem:[%s13180_s3 + $0x44] sm:$0xf] }
 0x2b4   :  { %2536 = vrot.lane.b32.xlu0 %v2520_v48, %s9109_s25  ;;  %4033 = vmatpush.bf16.msra.mxu2 %v7499_v17  ;;  %v7818_v48 = vld [vmem:[%s13180_s3 + $0x5c0] sm:$0xf]  ;;  %v8892_v19 = vld [vmem:[%s13180_s3 + $0x56c] sm:$0xf0]  ;;  %v7643_v17 = vor.u32 %v8860_v43, %v7642_v21  ;;  %v7116_v21 = vld [vmem:[%s13180_s3 + $0x50] sm:$0xf0] }
 0x2b5   :  { %v7819_v45 = vor.u32 %v8904_v59, %v7818_v48  ;;  %v7771_v18 = vor.u32 %v8892_v19, %v7770_v2  ;;  %v7930_v15 = vld [vmem:[%s13180_s3 + $0x6a0] sm:$0xf]  ;;  %v8856_v23 = vld [vmem:[%s13180_s3 + $0x44c] sm:$0xf0]  ;;  %v7119_v2 = vor.u32 %v8726_v44, %v7116_v21  ;;  %v8778_v19 = vld [vmem:[%s13180_s3 + $0x1e4] sm:$0xf] }
 0x2b6   :  { %v7626_v63 = vld [vmem:[%s13180_s3 + $0x440] sm:$0xf]  ;;  %v8888_v14 = vld [vmem:[%s13180_s3 + $0x54c] sm:$0xf0]  ;;  %vm13252_vm2 = vmmov %vm13251_vm4 }
 0x2b7   :  { %4015 = vmatpush.bf16.msra.mxu1 %v7355_v51  ;;  %4048 = vmatpush.bf16.msrb.mxu3 %v7691_v38  ;;  %v8932_v51 = vld [vmem:[%s13180_s3 + $0x6ac] sm:$0xf0]  ;;  %v7627_v56 = vor.u32 %v8856_v23, %v7626_v63  ;;  %v7754_v5 = vld [vmem:[%s13180_s3 + $0x540] sm:$0xf] }
 0x2b8   :  { %2530 = vrot.lane.b32.xlu1 %v2509_v47, %s9109_s25  ;;  %4034 = vmatpush.bf16.msra.mxu2 %v7483_v61  ;;  %v8738_v61 = vld [vmem:[%s13180_s3 + $0xa4] sm:$0xf]  ;;  %v7931_v60 = vor.u32 %v8932_v51, %v7930_v15  ;;  %v7755_v1 = vor.u32 %v8888_v14, %v7754_v5  ;;  %v8928_v10 = vld [vmem:[%s13180_s3 + $0x68c] sm:$0xf0]  ;;  %v7738_v26 = vld [vmem:[%s13180_s3 + $0x520] sm:$0xf] }
 0x2b9   :  { %2435 = vrot.lane.b32.xlu2 %v2420_v46, %s9108_s11  ;;  %4067 = vmatpush.bf16.msrb.mxu0 %v7819_v45  ;;  %v8852_v45 = vld [vmem:[%s13180_s3 + $0x42c] sm:$0xf0]  ;;  %v7882_v36 = vld [vmem:[%s13180_s3 + $0x640] sm:$0xf]  ;;  %v8810_v15 = vld [vmem:[%s13180_s3 + $0x2e4] sm:$0xf] }
 0x2ba   :  { %v8884_v24 = vld [vmem:[%s13180_s3 + $0x52c] sm:$0xf0]  ;;  %v7452_v51 = vld [vmem:[%s13180_s3 + $0x2f0] sm:$0xf0]  ;;  %v8774_v5 = vld [vmem:[%s13180_s3 + $0x1c4] sm:$0xf] }
 0x2bb   :  { %4016 = vmatpush.bf16.msra.mxu1 %v7339_v58  ;;  %4049 = vmatpush.bf16.msrb.mxu3 %v7675_v6  ;;  %v8924_v55 = vld [vmem:[%s13180_s3 + $0x66c] sm:$0xf0]  ;;  %v7739_v6 = vor.u32 %v8884_v24, %v7738_v26  ;;  %v7308_v14 = vld [vmem:[%s13180_s3 + $0x1d0] sm:$0xf0]  ;;  %v8718_v26 = vld [vmem:[%s13180_s3 + $0x4] sm:$0xf] }
 0x2bc   :  { %2534 = vrot.lane.b32.xlu0 %v2517_v9, %s9109_s25  ;;  %4035 = vmatpush.bf16.msra.mxu2 %v7467_v0  ;;  %v7167_v0 = vor.u32 %v8738_v61, %v7164_v22  ;;  %v7866_v61 = vld [vmem:[%s13180_s3 + $0x620] sm:$0xf]  ;;  %v8916_v22 = vld [vmem:[%s13180_s3 + $0x62c] sm:$0xf0] }
 0x2bd   :  { %4068 = vmatpush.bf16.msrb.mxu0 %v7803_v31  ;;  %v7132_v31 = vld [vmem:[%s13180_s3 + $0x70] sm:$0xf0]  ;;  %v7867_v23 = vor.u32 %v8916_v22, %v7866_v61  ;;  %v8838_v61 = vld [vmem:[%s13180_s3 + $0x3c4] sm:$0xf] }
 0x2bf   :  { %4087 = vmatpush.bf16.msrb.mxu1 %v7931_v60  ;;  %v7455_v60 = vor.u32 %v8810_v15, %v7452_v51  ;;  %v7404_v51 = vld [vmem:[%s13180_s3 + $0x290] sm:$0xf0] }
 0x2c0   :  { %2431 = vrot.lane.b32.xlu1 %v2400_v40, %s9108_s11  ;;  %4104 = vmatpush.bf16.msrb.mxu2 %v7199_v27  ;;  %v7659_v40 = vor.u32 %v8864_v49, %v7658_v62  ;;  %v8730_v27 = vld [vmem:[%s13180_s3 + $0x64] sm:$0xf]  ;;  %v7722_v49 = vld [vmem:[%s13180_s3 + $0x500] sm:$0xf] }
 0x2c1   :  { %4069 = vmatpush.bf16.msrb.mxu0 %v7787_v30  ;;  %v8920_v30 = vld [vmem:[%s13180_s3 + $0x64c] sm:$0xf0] }
 0x2c2   :  { %4050 = vmatpush.bf16.msrb.mxu3 %v7659_v40  ;;  %v8880_v40 = vld [vmem:[%s13180_s3 + $0x50c] sm:$0xf0]  ;;  %v7883_v43 = vor.u32 %v8920_v30, %v7882_v36  ;;  %v7708_v30 = vld [vmem:[%s13180_s3 + $0x4f0] sm:$0xf0] }
 0x2c4   :  { %4105 = vmatpush.bf16.msrb.mxu2 %v7183_v3 }
 0x2c5   :  { %4070 = vmatpush.bf16.msrb.mxu0 %v7771_v18 }
 0x2c6   :  { %4051 = vmatpush.bf16.msrb.mxu3 %v7643_v17  ;;  %v7324_v17 = vld [vmem:[%s13180_s3 + $0x1f0] sm:$0xf0] }
 0x2c7   :  { %v7327_v18 = vor.u32 %v8778_v19, %v7324_v17  ;;  %v8798_v19 = vld [vmem:[%s13180_s3 + $0x284] sm:$0xf] }
 0x2c8   :  { %2538 = vrot.lane.b32.xlu1 %v2523_v33, %s9109_s25  ;;  %v2804_v33 = vld [vmem:[%s13181_s4] sm:$0xf]  ;;  %4106 = vmatpush.bf16.msrb.mxu2 %v7167_v0  ;;  %v7100_v0 = vld [vmem:[%s13180_s3 + $0x30] sm:$0xf0]  ;;  %v7407_v22 = vor.u32 %v8798_v19, %v7404_v51  ;;  %v8862_v19 = vld [vmem:[%s13180_s3 + $0x484] sm:$0xf] }
 0x2c9   :  { %v11407_v37 = vperm.slane %v2804_v33, 0  ;;  %4071 = vmatpush.bf16.msrb.mxu0 %v7755_v1  ;;  %v7723_v33 = vor.u32 %v8880_v40, %v7722_v49  ;;  %v7580_v49 = vld [vmem:[%s13180_s3 + $0x3f0] sm:$0xf0] }
 0x2ca   :  { %4052 = vmatpush.bf16.msrb.mxu3 %v7627_v56 }
 0x2cd   :  { %4072 = vmatpush.bf16.msrb.mxu0 %v7739_v6 }
 0x2d1   :  { %4073 = vmatpush.bf16.msrb.mxu0 %v7723_v33  ;;  %v8874_v33 = vld [vmem:[%s13180_s3 + $0x4e4] sm:$0xf] }
 0x2d2   :  { %v7711_v21 = vor.u32 %v8874_v33, %v7708_v30 }
 0x2d5   :  { %4142 = vmatpush.bf16.msra.mxu0 %v7455_v60 }
 0x2f2   :  { %v11299_v34 = vpop.permute.xlu1 %2421 }
 0x2f3   :  { %v2437_v25 = vrot.slane %v11299_v34, 4  ;;  %v11310_v16 = vpop.permute.xlu2 %2425 }
 0x2f4   :  { %v2438_v52 = vrot.slane %v11310_v16, 4 }
 0x2f5   :  { %v2442_v53 = vsel %vm2441_vm5, %v2437_v25, %v11299_v34 }
 0x2f6   :  { %2460 = vst.msk [vmem:[#allocation4 + $0x8] sm:$0xff] %vm11305_vm0, %v2442_v53  ;;  %v2444_v35 = vsel %vm2441_vm5, %v2438_v52, %v11310_v16  ;;  %v7914_v16 = vld [vmem:[%s13180_s3 + $0x680] sm:$0xf] }
 0x2f7   :  { %2463 = vst.msk [vmem:[#allocation4 + $0x24] sm:$0xff] %vm11305_vm0, %v2444_v35  ;;  %v7915_v48 = vor.u32 %v8928_v10, %v7914_v16  ;;  %v7610_v53 = vld [vmem:[%s13180_s3 + $0x420] sm:$0xf]  ;;  %v8806_v16 = vld [vmem:[%s13180_s3 + $0x2c4] sm:$0xf]  ;;  %v7311_v10 = vor.u32 %v8774_v5, %v7308_v14 }
 0x2f8   :  { %v7898_v35 = vld [vmem:[%s13180_s3 + $0x660] sm:$0xf]  ;;  %v7611_v54 = vor.u32 %v8852_v45, %v7610_v53  ;;  %v8762_v5 = vld [vmem:[%s13180_s3 + $0x164] sm:$0xf]  ;;  %v7260_v14 = vld [vmem:[%s13180_s3 + $0x170] sm:$0xf0] }
 0x2f9   :  { %4088 = vmatpush.bf16.msrb.mxu1 %v7915_v48  ;;  %v7804_v48 = vld [vmem:[%s13180_s3 + $0x5b0] sm:$0xf0] }
 0x2fa   :  { %4053 = vmatpush.bf16.msrb.mxu3 %v7611_v54 }
 0x2fb   :  { %v11353_v47 = vpop.permute.xlu2 %2524 }
 0x2fd   :  { %v7034_v7 = vld [vmem:[#allocation4 + $0x8] sm:$0xf]  ;;  %v8705_v12 = vld [vmem:[#allocation4 + $0xc] sm:$0xf] }
 0x2fe   :  { %v8708_v46 = vld [vmem:[#allocation4 + $0x20] sm:$0xf0]  ;;  %v7036_v29 = vld [vmem:[#allocation4 + $0x24] sm:$0xf0] }
 0x2ff   :  { %v11361_v4 = vor.u32 %v8708_v46, %v7034_v7  ;;  %v11363_v9 = vor.u32 %v8705_v12, %v7036_v29  ;;  %v7899_v7 = vor.u32 %v8924_v55, %v7898_v35  ;;  %v7135_v12 = vor.u32 %v8730_v27, %v7132_v31  ;;  %v7594_v46 = vld [vmem:[%s13180_s3 + $0x400] sm:$0xf]  ;;  %v8848_v29 = vld [vmem:[%s13180_s3 + $0x40c] sm:$0xf0]  ;;  %v8770_v35 = vld [vmem:[%s13180_s3 + $0x1a4] sm:$0xf] }
 0x300   :  { %v7595_v32 = vor.u32 %v8848_v29, %v7594_v46  ;;  %v7292_v55 = vld [vmem:[%s13180_s3 + $0x1b0] sm:$0xf0]  ;;  %v8842_v29 = vld [vmem:[%s13180_s3 + $0x3e4] sm:$0xf] }
 0x301   :  { %4017 = vmatmul.bf16.vlgmr.msra.gmra.mxu1 %v11361_v4  ;;  %4036 = vmatmul.bf16.vlgmr.msra.gmra.mxu2 %v11363_v9  ;;  %v7295_v27 = vor.u32 %v8770_v35, %v7292_v55  ;;  %v7420_v31 = vld [vmem:[%s13180_s3 + $0x2b0] sm:$0xf0] }
 0x302   :  { %v3999_v57 = vpop.f32.mrf.mxu0  ;;  %4089 = vmatpush.bf16.msrb.mxu1 %v7899_v7  ;;  %4054 = vmatpush.bf16.msrb.mxu3 %v7595_v32  ;;  %v2540_v7 = vrot.slane %v11353_v47, 4  ;;  %v7583_v32 = vor.u32 %v8842_v29, %v7580_v49  ;;  %v7676_v35 = vld [vmem:[%s13180_s3 + $0x4b0] sm:$0xf0]  ;;  %v8790_v49 = vld [vmem:[%s13180_s3 + $0x244] sm:$0xf] }
 0x303   :  { %v2428_v39 = vpop.permute.xlu2 %2427  ;;  %v7244_v29 = vld [vmem:[%s13180_s3 + $0x150] sm:$0xf0] }
 0x304   :  { %v2445_v58 = vsel %vm2441_vm5, %v2438_v52, %v2428_v39  ;;  %v7148_v52 = vld [vmem:[%s13180_s3 + $0x90] sm:$0xf0]  ;;  %v2545_v34 = vsel %vm2544_vm10, %v2540_v7, %v11353_v47 }
 0x305   :  { %2464 = vst.msk [vmem:[#allocation4 + $0x2c] sm:$0xf] %vm2461_vm3, %v2445_v58  ;;  %v7151_v59 = vor.u32 %v8734_v41, %v7148_v52  ;;  %v8722_v58 = vld [vmem:[%s13180_s3 + $0x24] sm:$0xf]  ;;  %v7436_v41 = vld [vmem:[%s13180_s3 + $0x2d0] sm:$0xf0] }
 0x306   :  { %4090 = vmatpush.bf16.msrb.mxu1 %v7883_v43  ;;  %v7103_v56 = vor.u32 %v8722_v58, %v7100_v0  ;;  %4123 = vmatpush.bf16.msra.mxu3 %v7327_v18  ;;  %v7850_v52 = vld [vmem:[%s13180_s3 + $0x600] sm:$0xf]  ;;  %v7439_v53 = vor.u32 %v8806_v16, %v7436_v41  ;;  %v8766_v43 = vld [vmem:[%s13180_s3 + $0x184] sm:$0xf]  ;;  %v7263_v16 = vor.u32 %v8762_v5, %v7260_v14  ;;  %v7388_v41 = vld [vmem:[%s13180_s3 + $0x270] sm:$0xf0] }
 0x307   :  { %4107 = vmatpush.bf16.msrb.mxu2 %v7151_v59  ;;  %v8870_v0 = vld [vmem:[%s13180_s3 + $0x4c4] sm:$0xf] }
 0x308   :  { %v3980_v38 = vpop.f32.mrf.mxu3  ;;  %4143 = vmatpush.bf16.msra.mxu0 %v7439_v53  ;;  %v8834_v53 = vld [vmem:[%s13180_s3 + $0x3a4] sm:$0xf] }
 0x309   :  { %v3981_v11 = vadd.f32 %v3980_v38, %v11407_v37  ;;  %v8912_v38 = vld [vmem:[%s13180_s3 + $0x60c] sm:$0xf0] }
 0x30a   :  { %4091 = vmatpush.bf16.msrb.mxu1 %v7867_v23  ;;  %v7851_v45 = vor.u32 %v8912_v38, %v7850_v52  ;;  %4124 = vmatpush.bf16.msra.mxu3 %v7311_v10  ;;  %v11579_v40 = vpop.f32.mrf.mxu0  ;;  %v7692_v23 = vld [vmem:[%s13180_s3 + $0x4d0] sm:$0xf0]  ;;  %v8794_v10 = vld [vmem:[%s13180_s3 + $0x264] sm:$0xf] }
 0x30b   :  { %v11459_v62 = vadd.f32 %v3999_v57, %v3981_v11  ;;  %4108 = vmatpush.bf16.msrb.mxu2 %v7135_v12  ;;  %v11516_v63 = vpop.permute.xlu2 %2532  ;;  %v7084_v11 = vld [vmem:[%s13180_s3 + $0x10] sm:$0xf0]  ;;  %v8802_v57 = vld [vmem:[%s13180_s3 + $0x2a4] sm:$0xf]  ;;  %v7695_v28 = vor.u32 %v8870_v0, %v7692_v23  ;;  %v7391_v38 = vor.u32 %v8794_v10, %v7388_v41 }
 0x30c   :  { %v7087_v24 = vor.u32 %v8718_v26, %v7084_v11  ;;  %v7423_v46 = vor.u32 %v8802_v57, %v7420_v31  ;;  %v7548_v11 = vld [vmem:[%s13180_s3 + $0x3b0] sm:$0xf0]  ;;  %v8826_v23 = vld [vmem:[%s13180_s3 + $0x364] sm:$0xf] }
 0x30d   :  { %v7551_v31 = vor.u32 %v8834_v53, %v7548_v11  ;;  %v7356_v0 = vld [vmem:[%s13180_s3 + $0x230] sm:$0xf0] }
 0x30e   :  { %v11476_v42 = vpop.permute.xlu0 %2429  ;;  %4092 = vmatpush.bf16.msrb.mxu1 %v7851_v45  ;;  %4125 = vmatpush.bf16.msra.mxu3 %v7295_v27  ;;  %v7212_v11 = vld [vmem:[%s13180_s3 + $0x110] sm:$0xf0] }
 0x30f   :  { %v2439_v3 = vrot.slane %v11476_v42, 4  ;;  %4109 = vmatpush.bf16.msrb.mxu2 %v7119_v2  ;;  %v7276_v2 = vld [vmem:[%s13180_s3 + $0x190] sm:$0xf0]  ;;  %4144 = vmatpush.bf16.msra.mxu0 %v7423_v46  ;;  %v8758_v46 = vld [vmem:[%s13180_s3 + $0x144] sm:$0xf] }
 0x310   :  { %v11561_v54 = vpop.f32.mrf.mxu3  ;;  %v7279_v15 = vor.u32 %v8766_v43, %v7276_v2  ;;  %v7247_v47 = vor.u32 %v8758_v46, %v7244_v29  ;;  %v7532_v2 = vld [vmem:[%s13180_s3 + $0x390] sm:$0xf0] }
 0x311   :  { %v2446_v39 = vsel %vm2441_vm5, %v2439_v3, %v11476_v42  ;;  %v7596_v42 = vld [vmem:[%s13180_s3 + $0x410] sm:$0xf0] }
 0x312   :  { %2465 = vst.msk [vmem:[#allocation4 + $0x40] sm:$0xff] %vm11305_vm0, %v2446_v39  ;;  %4161 = vmatpush.bf16.msra.mxu1 %v7583_v32  ;;  %v7564_v39 = vld [vmem:[%s13180_s3 + $0x3d0] sm:$0xf0]  ;;  %4126 = vmatpush.bf16.msra.mxu3 %v7279_v15 }
 0x313   :  { %4110 = vmatpush.bf16.msrb.mxu2 %v7103_v56  ;;  %v2436_v44 = vpop.permute.xlu2 %2435  ;;  %v7567_v58 = vor.u32 %v8838_v61, %v7564_v39  ;;  %4145 = vmatpush.bf16.msra.mxu0 %v7407_v22  ;;  %v8754_v61 = vld [vmem:[%s13180_s3 + $0x124] sm:$0xf]  ;;  %v7228_v39 = vld [vmem:[%s13180_s3 + $0x130] sm:$0xf0] }
 0x316   :  { %v11529_v1 = vpop.permute.xlu0 %2528  ;;  %4162 = vmatpush.bf16.msra.mxu1 %v7567_v58  ;;  %4127 = vmatpush.bf16.msra.mxu3 %v7263_v16  ;;  %v7231_v58 = vor.u32 %v8754_v61, %v7228_v39  ;;  %v8902_v39 = vld [vmem:[%s13180_s3 + $0x5c4] sm:$0xf] }
 0x317   :  { %v2541_v59 = vrot.slane %v11529_v1, 4  ;;  %4111 = vmatpush.bf16.msrb.mxu2 %v7087_v24  ;;  %v8866_v24 = vld [vmem:[%s13180_s3 + $0x4a4] sm:$0xf]  ;;  %4146 = vmatpush.bf16.msra.mxu0 %v7391_v38  ;;  %v7644_v38 = vld [vmem:[%s13180_s3 + $0x470] sm:$0xf0] }
 0x319   :  { %v2547_v6 = vsel %vm2544_vm10, %v2541_v59, %v11529_v1  ;;  %v8712_v27 = vld [vmem:[#allocation4 + $0x44] sm:$0xf] }
 0x31a   :  { %v2434_v12 = vpop.permute.xlu1 %2433  ;;  %2566 = vst.msk [vmem:[#allocation4 + $0x2c] sm:$0xff] %vm11541_vm14, %v2547_v6  ;;  %v7062_v6 = vld [vmem:[#allocation4 + $0x40] sm:$0xf]  ;;  %4163 = vmatpush.bf16.msra.mxu1 %v7551_v31  ;;  %4128 = vmatpush.bf16.msra.mxu3 %v7247_v47  ;;  %v7500_v31 = vld [vmem:[%s13180_s3 + $0x350] sm:$0xf0] }
 0x31b   :  { %v2440_v36 = vrot.slane %v2434_v12, 4  ;;  %4180 = vmatpush.bf16.msra.mxu2 %v7711_v21  ;;  %v4004_v57 = vpop.f32.mrf.mxu0  ;;  %v8818_v47 = vld [vmem:[%s13180_s3 + $0x324] sm:$0xf] }
 0x31d   :  { %v2448_v17 = vsel %vm2441_vm5, %v2440_v36, %v2434_v12  ;;  %v2449_v18 = vsel %vm2441_vm5, %v2440_v36, %v2436_v44  ;;  %v7679_v12 = vor.u32 %v8866_v24, %v7676_v35  ;;  %v8830_v36 = vld [vmem:[%s13180_s3 + $0x384] sm:$0xf] }
 0x31e   :  { %2467 = vst.msk [vmem:[#allocation4 + $0x5c] sm:$0xff] %vm11305_vm0, %v2448_v17  ;;  %v2527_v60 = vpop.permute.xlu0 %2526  ;;  %v7660_v17 = vld [vmem:[%s13180_s3 + $0x490] sm:$0xf0]  ;;  %v7535_v15 = vor.u32 %v8830_v36, %v7532_v2  ;;  %v8782_v24 = vld [vmem:[%s13180_s3 + $0x204] sm:$0xf]  ;;  %4129 = vmatpush.bf16.msra.mxu3 %v7231_v58  ;;  %vm13254_vm0 = vmmov %vm13252_vm2 }
 0x31f   :  { %2468 = vst.msk [vmem:[#allocation4 + $0x64] sm:$0xf] %vm2461_vm3, %v2449_v18  ;;  %v2546_v56 = vsel %vm2544_vm10, %v2540_v7, %v2527_v60  ;;  %4181 = vmatpush.bf16.msra.mxu2 %v7695_v28  ;;  %v7663_v51 = vor.u32 %v8862_v19, %v7660_v17  ;;  %v8786_v60 = vld [vmem:[%s13180_s3 + $0x224] sm:$0xf]  ;;  %v2542_v28 = vrot.slane %v11516_v63, 4  ;;  %vm13256_vm8 = vmmov %vm13254_vm0 }
 0x320   :  { %2565 = vst.msk [vmem:[#allocation4 + $0x18] sm:$0xf] %vm2564_vm7, %v2546_v56  ;;  %v7516_v56 = vld [vmem:[%s13180_s3 + $0x370] sm:$0xf0]  ;;  %4164 = vmatpush.bf16.msra.mxu1 %v7535_v15  ;;  %v7359_v10 = vor.u32 %v8786_v60, %v7356_v0  ;;  %v8850_v19 = vld [vmem:[%s13180_s3 + $0x424] sm:$0xf] }
 0x321   :  { %v3985_v52 = vpop.f32.mrf.mxu3  ;;  %v8709_v14 = vld [vmem:[#allocation4 + $0x28] sm:$0xf0]  ;;  %v7044_v16 = vld [vmem:[#allocation4 + $0x2c] sm:$0xf0]  ;;  %v7519_v41 = vor.u32 %v8826_v23, %v7516_v56  ;;  %v7484_v2 = vld [vmem:[%s13180_s3 + $0x330] sm:$0xf0] }
 0x322   :  { %v2424_v45 = vpop.permute.xlu1 %2423  ;;  %v3986_v26 = vadd.f32 %v3985_v52, %v11407_v37  ;;  %v8858_v52 = vld [vmem:[%s13180_s3 + $0x464] sm:$0xf]  ;;  %v7612_v17 = vld [vmem:[%s13180_s3 + $0x430] sm:$0xf0] }
 0x323   :  { %v2443_v55 = vsel %vm2441_vm5, %v2437_v25, %v2424_v45  ;;  %v7372_v25 = vld [vmem:[%s13180_s3 + $0x250] sm:$0xf0]  ;;  %4182 = vmatpush.bf16.msra.mxu2 %v7679_v12  ;;  %v7647_v45 = vor.u32 %v8858_v52, %v7644_v38  ;;  %v7615_v61 = vor.u32 %v8850_v19, %v7612_v17  ;;  %v8777_v19 = vld [vmem:[%s13180_s3 + $0x1d4] sm:$0xf0] }
 0x324   :  { %2462 = vst.msk [vmem:[#allocation4 + $0x10] sm:$0xf] %vm2461_vm3, %v2443_v55  ;;  %v11668_v32 = vadd.f32 %v4004_v57, %v3986_v26  ;;  %v7375_v7 = vor.u32 %v8790_v49, %v7372_v25  ;;  %v8750_v26 = vld [vmem:[%s13180_s3 + $0x104] sm:$0xf]  ;;  %4165 = vmatpush.bf16.msra.mxu1 %v7519_v41  ;;  %v7820_v60 = vld [vmem:[%s13180_s3 + $0x5d0] sm:$0xf0] }
 0x325   :  { %2563 = vst.msk [vmem:[#allocation4 + $0x10] sm:$0xff] %vm11541_vm14, %v2545_v34  ;;  %v8715_v33 = vld [vmem:[#allocation4 + $0x58] sm:$0xf0]  ;;  %v7064_v30 = vld [vmem:[#allocation4 + $0x5c] sm:$0xf0]  ;;  %v7215_v57 = vor.u32 %v8750_v26, %v7212_v11  ;;  %v7823_v23 = vor.u32 %v8902_v39, %v7820_v60 }
 0x326   :  { %v11672_v44 = vor.u32 %v8715_v33, %v7062_v6  ;;  %v11674_v21 = vor.u32 %v8712_v27, %v7064_v30  ;;  %v11676_v43 = vpop.permute.xlu0 %2536  ;;  %4147 = vmatpush.bf16.msra.mxu0 %v7375_v7  ;;  %v7340_v6 = vld [vmem:[%s13180_s3 + $0x210] sm:$0xf0]  ;;  %v8822_v27 = vld [vmem:[%s13180_s3 + $0x344] sm:$0xf] }
 0x327   :  { %v2543_v18 = vrot.slane %v11676_v43, 4  ;;  %4183 = vmatpush.bf16.msra.mxu2 %v7663_v51  ;;  %v7343_v46 = vor.u32 %v8782_v24, %v7340_v6  ;;  %v7503_v29 = vor.u32 %v8822_v27, %v7500_v31  ;;  %v8854_v49 = vld [vmem:[%s13180_s3 + $0x444] sm:$0xf]  ;;  %v7628_v34 = vld [vmem:[%s13180_s3 + $0x450] sm:$0xf0]  ;;  %4130 = vmatpush.bf16.msra.mxu3 %v7215_v57  ;;  %v7487_v51 = vor.u32 %v8818_v47, %v7484_v2 }
 0x328   :  { %4022 = vmatmul.bf16.gmra.mxu1 %v11672_v44  ;;  %4041 = vmatmul.bf16.gmra.mxu2 %v11674_v21  ;;  %v7631_v36 = vor.u32 %v8854_v49, %v7628_v34  ;;  %v8906_v33 = vld [vmem:[%s13180_s3 + $0x5e4] sm:$0xf]  ;;  %v7836_v30 = vld [vmem:[%s13180_s3 + $0x5f0] sm:$0xf0]  ;;  %v7330_v57 = vld [vmem:[%s13180_s3 + $0x1e8] sm:$0xf] }
 0x329   :  { %v2551_v22 = vsel %vm2544_vm10, %v2543_v18, %v11676_v43  ;;  %v7839_v7 = vor.u32 %v8906_v33, %v7836_v30  ;;  %4166 = vmatpush.bf16.msra.mxu1 %v7503_v29  ;;  %v7468_v56 = vld [vmem:[%s13180_s3 + $0x310] sm:$0xf0]  ;;  %v8781_v6 = vld [vmem:[%s13180_s3 + $0x1f4] sm:$0xf0]  ;;  %v8894_v27 = vld [vmem:[%s13180_s3 + $0x584] sm:$0xf] }
 0x32a   :  { %v2531_v5 = vpop.permute.xlu1 %2530  ;;  %2570 = vst.msk [vmem:[#allocation4 + $0x64] sm:$0xff] %vm11541_vm14, %v2551_v22  ;;  %4148 = vmatpush.bf16.msra.mxu0 %v7359_v10  ;;  %v8814_v22 = vld [vmem:[%s13180_s3 + $0x304] sm:$0xf]  ;;  %v7932_v38 = vld [vmem:[%s13180_s3 + $0x6b0] sm:$0xf0] }
 0x32b   :  { %v2548_v53 = vsel %vm2544_vm10, %v2541_v59, %v2531_v5  ;;  %4184 = vmatpush.bf16.msra.mxu2 %v7647_v45  ;;  %v8846_v5 = vld [vmem:[%s13180_s3 + $0x404] sm:$0xf]  ;;  %v7471_v10 = vor.u32 %v8814_v22, %v7468_v56  ;;  %v8749_v45 = vld [vmem:[%s13180_s3 + $0xf4] sm:$0xf0]  ;;  %v7916_v49 = vld [vmem:[%s13180_s3 + $0x690] sm:$0xf0] }
 0x32c   :  { %2567 = vst.msk [vmem:[#allocation4 + $0x34] sm:$0xf] %vm2564_vm7, %v2548_v53  ;;  %v7042_v35 = vld [vmem:[#allocation4 + $0x10] sm:$0xf]  ;;  %v8706_v55 = vld [vmem:[#allocation4 + $0x14] sm:$0xf]  ;;  %v7599_v41 = vor.u32 %v8846_v5, %v7596_v42 }
 0x32d   :  { %v11734_v1 = vor.u32 %v8709_v14, %v7042_v35  ;;  %v11736_v59 = vor.u32 %v8706_v55, %v7044_v16  ;;  %v2549_v14 = vsel %vm2544_vm10, %v2542_v28, %v11516_v63  ;;  %4167 = vmatpush.bf16.msra.mxu1 %v7487_v51  ;;  %v8898_v63 = vld [vmem:[%s13180_s3 + $0x5a4] sm:$0xf]  ;;  %v7202_v53 = vld [vmem:[%s13180_s3 + $0xe8] sm:$0xf]  ;;  %v8745_v47 = vld [vmem:[%s13180_s3 + $0xd4] sm:$0xf0] }
 0x32e   :  { %v2535_v12 = vpop.permute.xlu0 %2534  ;;  %4149 = vmatpush.bf16.msra.mxu0 %v7343_v46  ;;  %v7807_v52 = vor.u32 %v8898_v63, %v7804_v48  ;;  %v7203_v55 = vor.u32 %v8749_v45, %v7202_v53  ;;  %v7788_v46 = vld [vmem:[%s13180_s3 + $0x590] sm:$0xf0]  ;;  %v8926_v29 = vld [vmem:[%s13180_s3 + $0x684] sm:$0xf]  ;;  %v7186_v30 = vld [vmem:[%s13180_s3 + $0xc8] sm:$0xf] }
 0x32f   :  { %4055 = vmatmul.bf16.vlgmr.msrb.gmra.mxu3 %v11734_v1  ;;  %4074 = vmatmul.bf16.vlgmr.msrb.gmra.mxu0 %v11736_v59  ;;  %v2550_v25 = vsel %vm2544_vm10, %v2542_v28, %v2535_v12  ;;  %v8930_v28 = vld [vmem:[%s13180_s3 + $0x6a4] sm:$0xf]  ;;  %v7331_v12 = vor.u32 %v8781_v6, %v7330_v57  ;;  %v7187_v2 = vor.u32 %v8745_v47, %v7186_v30  ;;  %v7772_v51 = vld [vmem:[%s13180_s3 + $0x570] sm:$0xf0]  ;;  %v7170_v22 = vld [vmem:[%s13180_s3 + $0xa8] sm:$0xf] }
 0x330   :  { %2569 = vst.msk [vmem:[#allocation4 + $0x50] sm:$0xf] %vm2564_vm7, %v2550_v25  ;;  %4185 = vmatpush.bf16.msra.mxu2 %v7631_v36  ;;  %4199 = vmatpush.bf16.msrb.mxu3 %v7839_v7  ;;  %v7935_v35 = vor.u32 %v8930_v28, %v7932_v38  ;;  %v7919_v25 = vor.u32 %v8926_v29, %v7916_v49  ;;  %v7314_v7 = vld [vmem:[%s13180_s3 + $0x1c8] sm:$0xf]  ;;  %v7900_v60 = vld [vmem:[%s13180_s3 + $0x670] sm:$0xf0] }
 0x331   :  { %v8716_v11 = vld [vmem:[#allocation4 + $0x60] sm:$0xf0]  ;;  %v7072_v24 = vld [vmem:[#allocation4 + $0x64] sm:$0xf0]  ;;  %4168 = vmatpush.bf16.msra.mxu1 %v7471_v10  ;;  %v7315_v17 = vor.u32 %v8777_v19, %v7314_v7  ;;  %v7298_v56 = vld [vmem:[%s13180_s3 + $0x1a8] sm:$0xf] }
 0x332   :  { %v2432_v15 = vpop.permute.xlu1 %2431  ;;  %4220 = vmatpush.bf16.msrb.mxu0 %v7935_v35  ;;  %v8773_v5 = vld [vmem:[%s13180_s3 + $0x1b4] sm:$0xf0]  ;;  %v8918_v10 = vld [vmem:[%s13180_s3 + $0x644] sm:$0xf]  ;;  %v7154_v48 = vld [vmem:[%s13180_s3 + $0x88] sm:$0xf] }
 0x333   :  { %v2447_v58 = vsel %vm2441_vm5, %v2439_v3, %v2432_v15  ;;  %v8710_v0 = vld [vmem:[#allocation4 + $0x30] sm:$0xf0]  ;;  %v7050_v3 = vld [vmem:[#allocation4 + $0x18] sm:$0xf]  ;;  %v7299_v42 = vor.u32 %v8773_v5, %v7298_v56  ;;  %v8737_v28 = vld [vmem:[%s13180_s3 + $0x94] sm:$0xf0] }
 0x334   :  { %2466 = vst.msk [vmem:[#allocation4 + $0x48] sm:$0xf] %vm2461_vm3, %v2447_v58  ;;  %v11805_v16 = vor.u32 %v8710_v0, %v7050_v3  ;;  %4186 = vmatpush.bf16.msra.mxu2 %v7615_v61  ;;  %4200 = vmatpush.bf16.msrb.mxu3 %v7823_v23  ;;  %v8890_v15 = vld [vmem:[%s13180_s3 + $0x564] sm:$0xf]  ;;  %v8741_v58 = vld [vmem:[%s13180_s3 + $0xb4] sm:$0xf0]  ;;  %vm13253_vm5 = vmmov %vm13252_vm2 }
 0x335   :  { %2568 = vst.msk [vmem:[#allocation4 + $0x48] sm:$0xff] %vm11541_vm14, %v2549_v14  ;;  %v8922_v61 = vld [vmem:[%s13180_s3 + $0x664] sm:$0xf]  ;;  %v7775_v39 = vor.u32 %v8890_v15, %v7772_v51  ;;  %v7171_v23 = vor.u32 %v8741_v58, %v7170_v22  ;;  %v7756_v3 = vld [vmem:[%s13180_s3 + $0x550] sm:$0xf0]  ;;  %vm13255_vm3 = vmmov %vm13254_vm0  ;;  %vm6154_vm14 = vcmask 74752  }
 0x336   :  { %4221 = vmatpush.bf16.msrb.mxu0 %v7919_v25  ;;  %v7903_v0 = vor.u32 %v8922_v61, %v7900_v60  ;;  %v8886_v14 = vld [vmem:[%s13180_s3 + $0x544] sm:$0xf]  ;;  %v8769_v38 = vld [vmem:[%s13180_s3 + $0x194] sm:$0xf0]  ;;  %v7740_v57 = vld [vmem:[%s13180_s3 + $0x530] sm:$0xf0] }
 0x337   :  { %v7078_v53 = vld [vmem:[#allocation4 + $0x50] sm:$0xf]  ;;  %v7759_v45 = vor.u32 %v8886_v14, %v7756_v3  ;;  %v8914_v6 = vld [vmem:[%s13180_s3 + $0x624] sm:$0xf]  ;;  %v7724_v30 = vld [vmem:[%s13180_s3 + $0x510] sm:$0xf0] }
 0x338   :  { %7944 = vmatmul.msk.bf16.vlgmr.msrb.gmra.mxu1 %vm3964_vm1, %v11805_v16  ;;  %4112 = vmatmul.bf16.vlgmr.msrb.gmra.mxu2 %v11071_v8  ;;  %v8910_v47 = vld [vmem:[%s13180_s3 + $0x604] sm:$0xf]  ;;  %v7852_v7 = vld [vmem:[%s13180_s3 + $0x610] sm:$0xf0]  ;;  %v8729_v19 = vld [vmem:[%s13180_s3 + $0x54] sm:$0xf0] }
 0x339   :  { %4187 = vmatpush.bf16.msra.mxu2 %v7599_v41  ;;  %4201 = vmatpush.bf16.msrb.mxu3 %v7807_v52  ;;  %v7884_v41 = vld [vmem:[%s13180_s3 + $0x650] sm:$0xf0]  ;;  %v7282_v52 = vld [vmem:[%s13180_s3 + $0x188] sm:$0xf]  ;;  %v7855_v51 = vor.u32 %v8910_v47, %v7852_v7  ;;  %v8761_v61 = vld [vmem:[%s13180_s3 + $0x154] sm:$0xf0] }
 0x33a   :  { %v2539_v26 = vpop.permute.xlu1 %2538  ;;  %4237 = vmatpush.bf16.msrb.mxu1 %v7203_v55  ;;  %4222 = vmatpush.bf16.msrb.mxu0 %v7903_v0  ;;  %v7283_v35 = vor.u32 %v8769_v38, %v7282_v52  ;;  %v8882_v55 = vld [vmem:[%s13180_s3 + $0x524] sm:$0xf]  ;;  %v7458_v22 = vld [vmem:[%s13180_s3 + $0x2e8] sm:$0xf]  ;;  %v8813_v58 = vld [vmem:[%s13180_s3 + $0x2f4] sm:$0xf0] }
 0x33b   :  { %v2552_v31 = vsel %vm2544_vm10, %v2543_v18, %v2539_v26  ;;  %v7791_v18 = vor.u32 %v8894_v27, %v7788_v46  ;;  %v7887_v26 = vor.u32 %v8918_v10, %v7884_v41  ;;  %v7743_v27 = vor.u32 %v8882_v55, %v7740_v57  ;;  %v8733_v46 = vld [vmem:[%s13180_s3 + $0x74] sm:$0xf0]  ;;  %v7586_v0 = vld [vmem:[%s13180_s3 + $0x3e8] sm:$0xf]  ;;  %vm13257_vm10 = vmmov %vm13254_vm0 }
 0x33c   :  { %2571 = vst.msk [vmem:[#allocation4 + $0x6c] sm:$0xf] %vm2564_vm7, %v2552_v31  ;;  %v7070_v34 = vld [vmem:[#allocation4 + $0x48] sm:$0xf]  ;;  %v8713_v43 = vld [vmem:[#allocation4 + $0x4c] sm:$0xf] }
 0x33d   :  { %v11850_v36 = vor.u32 %v8716_v11, %v7070_v34  ;;  %v11852_v33 = vor.u32 %v8713_v43, %v7072_v24  ;;  %4256 = vmatpush.bf16.msrb.mxu2 %v7331_v12  ;;  %4202 = vmatpush.bf16.msrb.mxu3 %v7791_v18  ;;  %v7155_v24 = vor.u32 %v8737_v28, %v7154_v48  ;;  %v7868_v31 = vld [vmem:[%s13180_s3 + $0x630] sm:$0xf0]  ;;  %v7138_v12 = vld [vmem:[%s13180_s3 + $0x68] sm:$0xf]  ;;  %v8765_v43 = vld [vmem:[%s13180_s3 + $0x174] sm:$0xf0] }
 0x33e   :  { %4238 = vmatpush.bf16.msrb.mxu1 %v7187_v2  ;;  %4223 = vmatpush.bf16.msrb.mxu0 %v7887_v26  ;;  %v7871_v29 = vor.u32 %v8914_v6, %v7868_v31  ;;  %v7139_v49 = vor.u32 %v8733_v46, %v7138_v12  ;;  %v7266_v34 = vld [vmem:[%s13180_s3 + $0x168] sm:$0xf]  ;;  %v8878_v18 = vld [vmem:[%s13180_s3 + $0x504] sm:$0xf]  ;;  %v8845_v56 = vld [vmem:[%s13180_s3 + $0x3f4] sm:$0xf0] }
 0x33f   :  { %4060 = vmatmul.bf16.gmra.mxu3 %v11850_v36  ;;  %4079 = vmatmul.bf16.gmra.mxu0 %v11852_v33  ;;  %v7267_v25 = vor.u32 %v8765_v43, %v7266_v34  ;;  %v7122_v2 = vld [vmem:[%s13180_s3 + $0x48] sm:$0xf]  ;;  %v7727_v15 = vor.u32 %v8878_v18, %v7724_v30  ;;  %v8725_v14 = vld [vmem:[%s13180_s3 + $0x34] sm:$0xf0] }
 0x340   :  { %v7106_v5 = vld [vmem:[%s13180_s3 + $0x28] sm:$0xf]  ;;  %v8757_v10 = vld [vmem:[%s13180_s3 + $0x134] sm:$0xf0] }
 0x341   :  { %4257 = vmatpush.bf16.msrb.mxu2 %v7315_v17  ;;  %4203 = vmatpush.bf16.msrb.mxu3 %v7775_v39  ;;  %v7250_v17 = vld [vmem:[%s13180_s3 + $0x148] sm:$0xf]  ;;  %v7123_v39 = vor.u32 %v8729_v19, %v7122_v2  ;;  %v8809_v28 = vld [vmem:[%s13180_s3 + $0x2d4] sm:$0xf0] }
 0x342   :  { %4239 = vmatpush.bf16.msrb.mxu1 %v7171_v23  ;;  %4224 = vmatpush.bf16.msrb.mxu0 %v7871_v29  ;;  %v7251_v60 = vor.u32 %v8761_v61, %v7250_v17  ;;  %v7459_v23 = vor.u32 %v8813_v58, %v7458_v22  ;;  %v7234_v3 = vld [vmem:[%s13180_s3 + $0x128] sm:$0xf]  ;;  %v8841_v38 = vld [vmem:[%s13180_s3 + $0x3d4] sm:$0xf0] }
 0x343   :  { %v8717_v63 = vld [vmem:[#allocation4 + $0x68] sm:$0xf0]  ;;  %v7442_v41 = vld [vmem:[%s13180_s3 + $0x2c8] sm:$0xf]  ;;  %v7235_v48 = vor.u32 %v8757_v10, %v7234_v3  ;;  %v8753_v55 = vld [vmem:[%s13180_s3 + $0x114] sm:$0xf0] }
 0x344   :  { %v11916_v11 = vor.u32 %v8717_v63, %v7078_v53  ;;  %v7107_v63 = vor.u32 %v8725_v14, %v7106_v5  ;;  %v7570_v52 = vld [vmem:[%s13180_s3 + $0x3c8] sm:$0xf]  ;;  %v7443_v53 = vor.u32 %v8809_v28, %v7442_v41  ;;  %v8805_v31 = vld [vmem:[%s13180_s3 + $0x2b4] sm:$0xf0] }
 0x345   :  { %4258 = vmatpush.bf16.msrb.mxu2 %v7299_v42  ;;  %4204 = vmatpush.bf16.msrb.mxu3 %v7759_v45  ;;  %v7587_v42 = vor.u32 %v8845_v56, %v7586_v0  ;;  %v7571_v45 = vor.u32 %v8841_v38, %v7570_v52  ;;  %v7090_v26 = vld [vmem:[%s13180_s3 + $0x8] sm:$0xf]  ;;  %v8837_v29 = vld [vmem:[%s13180_s3 + $0x3b4] sm:$0xf0] }
 0x346   :  { %4240 = vmatpush.bf16.msrb.mxu1 %v7155_v24  ;;  %4225 = vmatpush.bf16.msrb.mxu0 %v7855_v51  ;;  %v8721_v24 = vld [vmem:[%s13180_s3 + $0x14] sm:$0xf0]  ;;  %v7554_v12 = vld [vmem:[%s13180_s3 + $0x3a8] sm:$0xf] }
 0x347   :  { %v7091_v57 = vor.u32 %v8721_v24, %v7090_v26  ;;  %v8877_v34 = vld [vmem:[%s13180_s3 + $0x4f4] sm:$0xf0]  ;;  %v7555_v43 = vor.u32 %v8837_v29, %v7554_v12  ;;  %v7410_v47 = vld [vmem:[%s13180_s3 + $0x288] sm:$0xf] }
 0x348   :  { %7945 = vmatmul.msk.bf16.gmra.mxu1 %vm3964_vm1, %v11916_v11  ;;  %4117 = vmatmul.bf16.gmra.mxu2 %v11130_v20  ;;  %v8909_v30 = vld [vmem:[%s13180_s3 + $0x5f4] sm:$0xf0]  ;;  %v7538_v19 = vld [vmem:[%s13180_s3 + $0x388] sm:$0xf] }
 0x349   :  { %4259 = vmatpush.bf16.msrb.mxu2 %v7283_v35  ;;  %4205 = vmatpush.bf16.msrb.mxu3 %v7743_v27  ;;  %v7218_v35 = vld [vmem:[%s13180_s3 + $0x108] sm:$0xf]  ;;  %v8801_v2 = vld [vmem:[%s13180_s3 + $0x294] sm:$0xf0] }
 0x34a   :  { %4241 = vmatpush.bf16.msrb.mxu1 %v7139_v49  ;;  %v7219_v6 = vor.u32 %v8753_v55, %v7218_v35  ;;  %v7426_v27 = vld [vmem:[%s13180_s3 + $0x2a8] sm:$0xf]  ;;  %v8833_v17 = vld [vmem:[%s13180_s3 + $0x394] sm:$0xf0] }
 0x34b   :  { %v7427_v46 = vor.u32 %v8805_v31, %v7426_v27  ;;  %v7714_v49 = vld [vmem:[%s13180_s3 + $0x4e8] sm:$0xf]  ;;  %v7539_v51 = vor.u32 %v8833_v17, %v7538_v19  ;;  %v8905_v58 = vld [vmem:[%s13180_s3 + $0x5d4] sm:$0xf0] }
 0x34c   :  { %v7715_v18 = vor.u32 %v8877_v34, %v7714_v49  ;;  %v7698_v61 = vld [vmem:[%s13180_s3 + $0x4c8] sm:$0xf]  ;;  %v8869_v41 = vld [vmem:[%s13180_s3 + $0x4b4] sm:$0xf0] }
 0x34d   :  { %4260 = vmatpush.bf16.msrb.mxu2 %v7267_v25  ;;  %4206 = vmatpush.bf16.msrb.mxu3 %v7727_v15  ;;  %v7842_v25 = vld [vmem:[%s13180_s3 + $0x5e8] sm:$0xf]  ;;  %v7411_v15 = vor.u32 %v8801_v2, %v7410_v47  ;;  %v8825_v24 = vld [vmem:[%s13180_s3 + $0x354] sm:$0xf0] }
 0x34e   :  { %4242 = vmatpush.bf16.msrb.mxu1 %v7123_v39  ;;  %v7843_v7 = vor.u32 %v8909_v30, %v7842_v25  ;;  %v8873_v39 = vld [vmem:[%s13180_s3 + $0x4d4] sm:$0xf0]  ;;  %v7394_v0 = vld [vmem:[%s13180_s3 + $0x268] sm:$0xf] }
 0x34f   :  { %4131 = vmatmul.bf16.vlgmr.msra.gmra.mxu3 %v11073_v13  ;;  %4150 = vmatmul.bf16.vlgmr.msra.gmra.mxu0 %v11361_v4  ;;  %v7699_v22 = vor.u32 %v8873_v39, %v7698_v61  ;;  %v7522_v14 = vld [vmem:[%s13180_s3 + $0x368] sm:$0xf]  ;;  %v8865_v55 = vld [vmem:[%s13180_s3 + $0x494] sm:$0xf0] }
 0x350   :  { %4294 = vmatpush.bf16.msra.mxu0 %v7587_v42  ;;  %v8829_v42 = vld [vmem:[%s13180_s3 + $0x374] sm:$0xf0]  ;;  %v7682_v3 = vld [vmem:[%s13180_s3 + $0x4a8] sm:$0xf] }
 0x351   :  { %4261 = vmatpush.bf16.msrb.mxu2 %v7251_v60  ;;  %4275 = vmatpush.bf16.msra.mxu3 %v7459_v23  ;;  %v7826_v60 = vld [vmem:[%s13180_s3 + $0x5c8] sm:$0xf]  ;;  %v8797_v23 = vld [vmem:[%s13180_s3 + $0x274] sm:$0xf0]  ;;  %v7523_v10 = vor.u32 %v8829_v42, %v7522_v14  ;;  %v7683_v28 = vor.u32 %v8869_v41, %v7682_v3  ;;  %v7204_v42 = vld [vmem:[%s13180_s3 + $0xf8] sm:$0xf0] }
 0x352   :  { %4243 = vmatpush.bf16.msrb.mxu1 %v7107_v63  ;;  %v7827_v56 = vor.u32 %v8905_v58, %v7826_v60  ;;  %v7395_v5 = vor.u32 %v8797_v23, %v7394_v0  ;;  %v7810_v63 = vld [vmem:[%s13180_s3 + $0x5a8] sm:$0xf]  ;;  %v8897_v31 = vld [vmem:[%s13180_s3 + $0x594] sm:$0xf0] }
 0x353   :  { %v7378_v38 = vld [vmem:[%s13180_s3 + $0x248] sm:$0xf]  ;;  %v8789_v29 = vld [vmem:[%s13180_s3 + $0x234] sm:$0xf0] }
 0x354   :  { %4295 = vmatpush.bf16.msra.mxu0 %v7571_v45  ;;  %v7506_v45 = vld [vmem:[%s13180_s3 + $0x348] sm:$0xf]  ;;  %v8861_v25 = vld [vmem:[%s13180_s3 + $0x474] sm:$0xf0] }
 0x355   :  { %4262 = vmatpush.bf16.msrb.mxu2 %v7235_v48  ;;  %4276 = vmatpush.bf16.msra.mxu3 %v7443_v53  ;;  %v8901_v48 = vld [vmem:[%s13180_s3 + $0x5b4] sm:$0xf0]  ;;  %v7666_v35 = vld [vmem:[%s13180_s3 + $0x488] sm:$0xf] }
 0x356   :  { %4244 = vmatpush.bf16.msrb.mxu1 %v7091_v57  ;;  %v7811_v52 = vor.u32 %v8901_v48, %v7810_v63  ;;  %v8793_v53 = vld [vmem:[%s13180_s3 + $0x254] sm:$0xf0]  ;;  %v7507_v57 = vor.u32 %v8825_v24, %v7506_v45  ;;  %v7794_v27 = vld [vmem:[%s13180_s3 + $0x588] sm:$0xf] }
 0x357   :  { %v7379_v26 = vor.u32 %v8793_v53, %v7378_v38  ;;  %v7795_v12 = vor.u32 %v8897_v31, %v7794_v27  ;;  %v7490_v49 = vld [vmem:[%s13180_s3 + $0x328] sm:$0xf]  ;;  %v8893_v2 = vld [vmem:[%s13180_s3 + $0x574] sm:$0xf0]  ;;  %v7188_v53 = vld [vmem:[%s13180_s3 + $0xd8] sm:$0xf0] }
 0x358   :  { %4169 = vmatmul.bf16.vlgmr.msra.gmra.mxu1 %v11363_v9  ;;  %4188 = vmatmul.bf16.vlgmr.msra.gmra.mxu2 %v11734_v1  ;;  %v7346_v17 = vld [vmem:[%s13180_s3 + $0x208] sm:$0xf]  ;;  %v8817_v39 = vld [vmem:[%s13180_s3 + $0x314] sm:$0xf0] }
 0x359   :  { %4263 = vmatpush.bf16.msrb.mxu2 %v7219_v6  ;;  %4277 = vmatpush.bf16.msra.mxu3 %v7427_v46  ;;  %v7667_v6 = vor.u32 %v8865_v55, %v7666_v35  ;;  %v7362_v46 = vld [vmem:[%s13180_s3 + $0x228] sm:$0xf]  ;;  %v8885_v48 = vld [vmem:[%s13180_s3 + $0x534] sm:$0xf0] }
 0x35a   :  { %4296 = vmatpush.bf16.msra.mxu0 %v7555_v43  ;;  %4313 = vmatpush.bf16.msra.mxu1 %v7715_v18  ;;  %v7363_v34 = vor.u32 %v8789_v29, %v7362_v46  ;;  %v8821_v43 = vld [vmem:[%s13180_s3 + $0x334] sm:$0xf0]  ;;  %v7650_v18 = vld [vmem:[%s13180_s3 + $0x468] sm:$0xf]  ;;  %v7172_v29 = vld [vmem:[%s13180_s3 + $0xb8] sm:$0xf0] }
 0x35b   :  { %v7491_v30 = vor.u32 %v8821_v43, %v7490_v49  ;;  %v7651_v47 = vor.u32 %v8861_v25, %v7650_v18  ;;  %v7634_v60 = vld [vmem:[%s13180_s3 + $0x448] sm:$0xf]  ;;  %v8849_v24 = vld [vmem:[%s13180_s3 + $0x414] sm:$0xf0]  ;;  %v8779_v49 = vld [vmem:[%s13180_s3 + $0x1ec] sm:$0xf] }
 0x35c   :  { %v7762_v23 = vld [vmem:[%s13180_s3 + $0x548] sm:$0xf]  ;;  %v8881_v55 = vld [vmem:[%s13180_s3 + $0x514] sm:$0xf0]  ;;  %v8811_v25 = vld [vmem:[%s13180_s3 + $0x2ec] sm:$0xf] }
 0x35d   :  { %4332 = vmatpush.bf16.msra.mxu2 %v7843_v7  ;;  %4278 = vmatpush.bf16.msra.mxu3 %v7411_v15  ;;  %v7778_v7 = vld [vmem:[%s13180_s3 + $0x568] sm:$0xf]  ;;  %v8785_v15 = vld [vmem:[%s13180_s3 + $0x214] sm:$0xf0] }
 0x35e   :  { %4297 = vmatpush.bf16.msra.mxu0 %v7539_v51  ;;  %4314 = vmatpush.bf16.msra.mxu1 %v7699_v22  ;;  %v7779_v19 = vor.u32 %v8893_v2, %v7778_v7  ;;  %v7474_v51 = vld [vmem:[%s13180_s3 + $0x308] sm:$0xf]  ;;  %v7347_v61 = vor.u32 %v8785_v15, %v7346_v17  ;;  %v8857_v22 = vld [vmem:[%s13180_s3 + $0x454] sm:$0xf0]  ;;  %v7156_v17 = vld [vmem:[%s13180_s3 + $0x98] sm:$0xf0] }
 0x35f   :  { %4136 = vmatmul.bf16.gmra.mxu3 %v11132_v50  ;;  %4155 = vmatmul.bf16.gmra.mxu0 %v11672_v44  ;;  %v7475_v58 = vor.u32 %v8817_v39, %v7474_v51  ;;  %v7635_v0 = vor.u32 %v8857_v22, %v7634_v60  ;;  %v7618_v3 = vld [vmem:[%s13180_s3 + $0x428] sm:$0xf]  ;;  %v8933_v31 = vld [vmem:[%s13180_s3 + $0x6b4] sm:$0xf0]  ;;  %v7316_v39 = vld [vmem:[%s13180_s3 + $0x1d8] sm:$0xf0] }
 0x360   :  { %v7746_v63 = vld [vmem:[%s13180_s3 + $0x528] sm:$0xf]  ;;  %v8929_v2 = vld [vmem:[%s13180_s3 + $0x694] sm:$0xf0]  ;;  %v8807_v60 = vld [vmem:[%s13180_s3 + $0x2cc] sm:$0xf] }
 0x361   :  { %4333 = vmatpush.bf16.msra.mxu2 %v7827_v56  ;;  %4279 = vmatpush.bf16.msra.mxu3 %v7395_v5  ;;  %v8889_v56 = vld [vmem:[%s13180_s3 + $0x554] sm:$0xf0]  ;;  %v8747_v5 = vld [vmem:[%s13180_s3 + $0xec] sm:$0xf]  ;;  %v7747_v38 = vor.u32 %v8885_v48, %v7746_v63  ;;  %v7602_v45 = vld [vmem:[%s13180_s3 + $0x408] sm:$0xf] }
 0x362   :  { %4298 = vmatpush.bf16.msra.mxu0 %v7523_v10  ;;  %4315 = vmatpush.bf16.msra.mxu1 %v7683_v28  ;;  %v7763_v14 = vor.u32 %v8889_v56, %v7762_v23  ;;  %v8853_v10 = vld [vmem:[%s13180_s3 + $0x434] sm:$0xf0]  ;;  %v7207_v41 = vor.u32 %v8747_v5, %v7204_v42  ;;  %v8743_v28 = vld [vmem:[%s13180_s3 + $0xcc] sm:$0xf]  ;;  %v7730_v35 = vld [vmem:[%s13180_s3 + $0x508] sm:$0xf] }
 0x363   :  { %v7938_v27 = vld [vmem:[%s13180_s3 + $0x6a8] sm:$0xf]  ;;  %v8731_v42 = vld [vmem:[%s13180_s3 + $0x6c] sm:$0xf] }
 0x364   :  { %v7939_v46 = vor.u32 %v8933_v31, %v7938_v27  ;;  %v7906_v5 = vld [vmem:[%s13180_s3 + $0x668] sm:$0xf]  ;;  %v8767_v27 = vld [vmem:[%s13180_s3 + $0x18c] sm:$0xf]  ;;  %v7284_v31 = vld [vmem:[%s13180_s3 + $0x198] sm:$0xf0] }
 0x365   :  { %4334 = vmatpush.bf16.msra.mxu2 %v7811_v52  ;;  %4280 = vmatpush.bf16.msra.mxu3 %v7379_v26  ;;  %v7619_v52 = vor.u32 %v8853_v10, %v7618_v3  ;;  %v7191_v26 = vor.u32 %v8743_v28, %v7188_v53  ;;  %v7140_v3 = vld [vmem:[%s13180_s3 + $0x78] sm:$0xf0]  ;;  %v8771_v10 = vld [vmem:[%s13180_s3 + $0x1ac] sm:$0xf] }
 0x366   :  { %4299 = vmatpush.bf16.msra.mxu0 %v7507_v57  ;;  %4316 = vmatpush.bf16.msra.mxu1 %v7667_v6  ;;  %v7603_v57 = vor.u32 %v8849_v24, %v7602_v45  ;;  %v7731_v6 = vor.u32 %v8881_v55, %v7730_v35  ;;  %v7143_v63 = vor.u32 %v8731_v42, %v7140_v3  ;;  %v8803_v28 = vld [vmem:[%s13180_s3 + $0x2ac] sm:$0xf]  ;;  %v8921_v45 = vld [vmem:[%s13180_s3 + $0x654] sm:$0xf0]  ;;  %v7124_v24 = vld [vmem:[%s13180_s3 + $0x58] sm:$0xf0] }
 0x367   :  { %v7380_v42 = vld [vmem:[%s13180_s3 + $0x258] sm:$0xf0] }
 0x368   :  { %4174 = vmatmul.bf16.gmra.mxu1 %v11674_v21  ;;  %4193 = vmatmul.bf16.gmra.mxu2 %v11850_v36  ;;  %v7588_v3 = vld [vmem:[%s13180_s3 + $0x3f8] sm:$0xf0] }
 0x369   :  { %4335 = vmatpush.bf16.msra.mxu2 %v7795_v12  ;;  %4281 = vmatpush.bf16.msra.mxu3 %v7363_v34  ;;  %v8739_v12 = vld [vmem:[%s13180_s3 + $0xac] sm:$0xf]  ;;  %v7332_v34 = vld [vmem:[%s13180_s3 + $0x1f8] sm:$0xf0] }
 0x36a   :  { %4300 = vmatpush.bf16.msra.mxu0 %v7491_v30  ;;  %4317 = vmatpush.bf16.msra.mxu1 %v7651_v47  ;;  %v7175_v43 = vor.u32 %v8739_v12, %v7172_v29  ;;  %v7335_v18 = vor.u32 %v8779_v49, %v7332_v34  ;;  %v7460_v30 = vld [vmem:[%s13180_s3 + $0x2f8] sm:$0xf0]  ;;  %v7922_v47 = vld [vmem:[%s13180_s3 + $0x688] sm:$0xf]  ;;  %v8799_v12 = vld [vmem:[%s13180_s3 + $0x28c] sm:$0xf] }
 0x36b   :  { %v7463_v7 = vor.u32 %v8811_v25, %v7460_v30  ;;  %v7923_v15 = vor.u32 %v8929_v2, %v7922_v47  ;;  %v7412_v29 = vld [vmem:[%s13180_s3 + $0x298] sm:$0xf0]  ;;  %v7874_v34 = vld [vmem:[%s13180_s3 + $0x628] sm:$0xf]  ;;  %v8763_v47 = vld [vmem:[%s13180_s3 + $0x16c] sm:$0xf] }
 0x36c   :  { %v7415_v49 = vor.u32 %v8799_v12, %v7412_v29  ;;  %v7108_v30 = vld [vmem:[%s13180_s3 + $0x38] sm:$0xf0] }
 0x36d   :  { %4336 = vmatpush.bf16.msra.mxu2 %v7779_v19  ;;  %4282 = vmatpush.bf16.msra.mxu3 %v7347_v61  ;;  %v8735_v19 = vld [vmem:[%s13180_s3 + $0x8c] sm:$0xf]  ;;  %v7220_v29 = vld [vmem:[%s13180_s3 + $0x118] sm:$0xf0] }
 0x36e   :  { %4301 = vmatpush.bf16.msra.mxu0 %v7475_v58  ;;  %4318 = vmatpush.bf16.msra.mxu1 %v7635_v0  ;;  %v7159_v51 = vor.u32 %v8735_v19, %v7156_v17  ;;  %v8775_v61 = vld [vmem:[%s13180_s3 + $0x1cc] sm:$0xf]  ;;  %v7444_v58 = vld [vmem:[%s13180_s3 + $0x2d8] sm:$0xf0] }
 0x36f   :  { %4207 = vmatmul.bf16.vlgmr.msrb.gmra.mxu3 %v11736_v59  ;;  %7946 = vmatmul.msk.bf16.vlgmr.msrb.gmra.mxu0 %vm3964_vm1, %v11805_v16  ;;  %v7319_v22 = vor.u32 %v8775_v61, %v7316_v39  ;;  %v7447_v23 = vor.u32 %v8807_v60, %v7444_v58  ;;  %v8795_v17 = vld [vmem:[%s13180_s3 + $0x26c] sm:$0xf]  ;;  %v7858_v61 = vld [vmem:[%s13180_s3 + $0x608] sm:$0xf]  ;;  %v8913_v39 = vld [vmem:[%s13180_s3 + $0x614] sm:$0xf0] }
 0x370   :  { %v8719_v60 = vld [vmem:[%s13180_s3 + $0xc] sm:$0xf]  ;;  %v7092_v58 = vld [vmem:[%s13180_s3 + $0x18] sm:$0xf0] }
 0x371   :  { %4337 = vmatpush.bf16.msra.mxu2 %v7763_v14  ;;  %4353 = vmatpush.bf16.msrb.mxu3 %v7939_v46  ;;  %v8925_v14 = vld [vmem:[%s13180_s3 + $0x674] sm:$0xf0]  ;;  %v7287_v46 = vor.u32 %v8767_v27, %v7284_v31  ;;  %v7700_v31 = vld [vmem:[%s13180_s3 + $0x4d8] sm:$0xf0] }
 0x372   :  { %4370 = vmatpush.bf16.msrb.mxu0 %v7207_v41  ;;  %4319 = vmatpush.bf16.msra.mxu1 %v7619_v52  ;;  %v7300_v41 = vld [vmem:[%s13180_s3 + $0x1b8] sm:$0xf0] }
 0x373   :  { %v7303_v48 = vor.u32 %v8771_v10, %v7300_v41  ;;  %v7428_v52 = vld [vmem:[%s13180_s3 + $0x2b8] sm:$0xf0] }
 0x374   :  { %v7431_v53 = vor.u32 %v8803_v28, %v7428_v52  ;;  %v8755_v28 = vld [vmem:[%s13180_s3 + $0x12c] sm:$0xf] }
 0x375   :  { %4338 = vmatpush.bf16.msra.mxu2 %v7747_v38  ;;  %4354 = vmatpush.bf16.msrb.mxu3 %v7923_v15  ;;  %v7890_v38 = vld [vmem:[%s13180_s3 + $0x648] sm:$0xf]  ;;  %v7396_v15 = vld [vmem:[%s13180_s3 + $0x278] sm:$0xf0] }
 0x376   :  { %4371 = vmatpush.bf16.msrb.mxu0 %v7191_v26  ;;  %4320 = vmatpush.bf16.msra.mxu1 %v7603_v57  ;;  %v8727_v26 = vld [vmem:[%s13180_s3 + $0x4c] sm:$0xf]  ;;  %v7891_v57 = vor.u32 %v8921_v45, %v7890_v38  ;;  %v7236_v38 = vld [vmem:[%s13180_s3 + $0x138] sm:$0xf0] }
 0x377   :  { %v7364_v45 = vld [vmem:[%s13180_s3 + $0x238] sm:$0xf0] }
 0x378   :  { %4245 = vmatmul.bf16.vlgmr.msrb.gmra.mxu1 %v11071_v8  ;;  %4264 = vmatmul.bf16.vlgmr.msrb.gmra.mxu2 %v11073_v13 }
 0x379   :  { %4339 = vmatpush.bf16.msra.mxu2 %v7731_v6  ;;  %v7127_v6 = vor.u32 %v8727_v26, %v7124_v24  ;;  %v7239_v26 = vor.u32 %v8755_v28, %v7236_v38 }
 0x37a   :  { %4372 = vmatpush.bf16.msrb.mxu0 %v7175_v43  ;;  %4389 = vmatpush.bf16.msrb.mxu1 %v7335_v18  ;;  %v8917_v43 = vld [vmem:[%s13180_s3 + $0x634] sm:$0xf0]  ;;  %v8723_v18 = vld [vmem:[%s13180_s3 + $0x2c] sm:$0xf] }
 0x37b   :  { %v7875_v25 = vor.u32 %v8917_v43, %v7874_v34  ;;  %v7111_v2 = vor.u32 %v8723_v18, %v7108_v30  ;;  %v7348_v43 = vld [vmem:[%s13180_s3 + $0x218] sm:$0xf0] }
 0x37c   :  { %v7556_v30 = vld [vmem:[%s13180_s3 + $0x3b8] sm:$0xf0] }
 0x37d   :  { %4408 = vmatpush.bf16.msrb.mxu2 %v7463_v7  ;;  %v7268_v7 = vld [vmem:[%s13180_s3 + $0x178] sm:$0xf0] }
 0x37e   :  { %v4018_v0 = vpop.f32.mrf.mxu1  ;;  %4373 = vmatpush.bf16.msrb.mxu0 %v7159_v51  ;;  %4390 = vmatpush.bf16.msrb.mxu1 %v7319_v22  ;;  %v7271_v19 = vor.u32 %v8763_v47, %v7268_v7  ;;  %v7399_v51 = vor.u32 %v8795_v17, %v7396_v15  ;;  %v7859_v22 = vor.u32 %v8913_v39, %v7858_v61  ;;  %v8867_v47 = vld [vmem:[%s13180_s3 + $0x4ac] sm:$0xf]  ;;  %v7844_v17 = vld [vmem:[%s13180_s3 + $0x5f8] sm:$0xf0] }
 0x37f   :  { %v4019_v56 = vadd.f32 %v4018_v0, %v11459_v62  ;;  %4212 = vmatmul.bf16.gmra.mxu3 %v11852_v33  ;;  %7947 = vmatmul.msk.bf16.gmra.mxu0 %vm3964_vm1, %v11916_v11  ;;  %v7907_v62 = vor.u32 %v8925_v14, %v7906_v5  ;;  %v7095_v0 = vor.u32 %v8719_v60, %v7092_v58  ;;  %v8791_v5 = vld [vmem:[%s13180_s3 + $0x24c] sm:$0xf]  ;;  %v7540_v39 = vld [vmem:[%s13180_s3 + $0x398] sm:$0xf0] }
 0x380   :  { %v7383_v10 = vor.u32 %v8791_v5, %v7380_v42  ;;  %v8831_v61 = vld [vmem:[%s13180_s3 + $0x38c] sm:$0xf]  ;;  %v7828_v5 = vld [vmem:[%s13180_s3 + $0x5d8] sm:$0xf0] }
 0x381   :  { %4409 = vmatpush.bf16.msrb.mxu2 %v7447_v23  ;;  %4355 = vmatpush.bf16.msrb.mxu3 %v7907_v62  ;;  %v8759_v23 = vld [vmem:[%s13180_s3 + $0x14c] sm:$0xf]  ;;  %v7543_v58 = vor.u32 %v8831_v61, %v7540_v39  ;;  %v7780_v61 = vld [vmem:[%s13180_s3 + $0x578] sm:$0xf0] }
 0x382   :  { %4374 = vmatpush.bf16.msrb.mxu0 %v7143_v63  ;;  %4391 = vmatpush.bf16.msrb.mxu1 %v7303_v48  ;;  %v8843_v62 = vld [vmem:[%s13180_s3 + $0x3ec] sm:$0xf]  ;;  %v7716_v48 = vld [vmem:[%s13180_s3 + $0x4f8] sm:$0xf0] }
 0x383   :  { %v7591_v41 = vor.u32 %v8843_v62, %v7588_v3  ;;  %v8875_v63 = vld [vmem:[%s13180_s3 + $0x4ec] sm:$0xf]  ;;  %v7524_v62 = vld [vmem:[%s13180_s3 + $0x378] sm:$0xf0] }
 0x384   :  { %v4037_v35 = vpop.f32.mrf.mxu2  ;;  %v7719_v52 = vor.u32 %v8875_v63, %v7716_v48  ;;  %v8863_v60 = vld [vmem:[%s13180_s3 + $0x48c] sm:$0xf]  ;;  %v7812_v48 = vld [vmem:[%s13180_s3 + $0x5b8] sm:$0xf0] }
 0x385   :  { %v12298_v55 = vadd.f32 %v4037_v35, %v4019_v56  ;;  %4410 = vmatpush.bf16.msrb.mxu2 %v7431_v53  ;;  %4356 = vmatpush.bf16.msrb.mxu3 %v7891_v57  ;;  %v7252_v56 = vld [vmem:[%s13180_s3 + $0x158] sm:$0xf0]  ;;  %v8787_v53 = vld [vmem:[%s13180_s3 + $0x22c] sm:$0xf] }
 0x386   :  { %4375 = vmatpush.bf16.msrb.mxu0 %v7127_v6  ;;  %4392 = vmatpush.bf16.msrb.mxu1 %v7287_v46  ;;  %v7255_v14 = vor.u32 %v8759_v23, %v7252_v56  ;;  %v7367_v24 = vor.u32 %v8787_v53, %v7364_v45  ;;  %v8839_v35 = vld [vmem:[%s13180_s3 + $0x3cc] sm:$0xf]  ;;  %v7572_v57 = vld [vmem:[%s13180_s3 + $0x3d8] sm:$0xf0] }
 0x387   :  { %v8871_v6 = vld [vmem:[%s13180_s3 + $0x4cc] sm:$0xf]  ;;  %v7575_v27 = vor.u32 %v8839_v35, %v7572_v57  ;;  %v7940_v45 = vld [vmem:[%s13180_s3 + $0x6b8] sm:$0xf0] }
 0x388   :  { %4250 = vmatmul.bf16.gmra.mxu1 %v11130_v20  ;;  %4269 = vmatmul.bf16.gmra.mxu2 %v11132_v50  ;;  %v7703_v12 = vor.u32 %v8871_v6, %v7700_v31  ;;  %v8751_v46 = vld [vmem:[%s13180_s3 + $0x10c] sm:$0xf]  ;;  %v7508_v57 = vld [vmem:[%s13180_s3 + $0x358] sm:$0xf0] }
 0x389   :  { %4411 = vmatpush.bf16.msrb.mxu2 %v7415_v49  ;;  %4357 = vmatpush.bf16.msrb.mxu3 %v7875_v25  ;;  %v8783_v49 = vld [vmem:[%s13180_s3 + $0x20c] sm:$0xf]  ;;  %v7223_v34 = vor.u32 %v8751_v46, %v7220_v29  ;;  %v7636_v46 = vld [vmem:[%s13180_s3 + $0x458] sm:$0xf0] }
 0x38a   :  { %4376 = vmatpush.bf16.msrb.mxu0 %v7111_v2  ;;  %4393 = vmatpush.bf16.msrb.mxu1 %v7271_v19  ;;  %v7351_v18 = vor.u32 %v8783_v49, %v7348_v43  ;;  %v8835_v25 = vld [vmem:[%s13180_s3 + $0x3ac] sm:$0xf]  ;;  %v7684_v2 = vld [vmem:[%s13180_s3 + $0x4b8] sm:$0xf0] }
 0x38b   :  { %v7559_v7 = vor.u32 %v8835_v25, %v7556_v30  ;;  %v8907_v19 = vld [vmem:[%s13180_s3 + $0x5ec] sm:$0xf]  ;;  %v7687_v15 = vor.u32 %v8867_v47, %v7684_v2  ;;  %v7796_v43 = vld [vmem:[%s13180_s3 + $0x598] sm:$0xf0] }
 0x38c   :  { %v8903_v56 = vld [vmem:[%s13180_s3 + $0x5cc] sm:$0xf]  ;;  %v12472_v28 = vpop.f32.mrf.mxu2  ;;  %v7924_v30 = vld [vmem:[%s13180_s3 + $0x698] sm:$0xf0] }
 0x38d   :  { %4412 = vmatpush.bf16.msrb.mxu2 %v7399_v51  ;;  %4358 = vmatpush.bf16.msrb.mxu3 %v7859_v22  ;;  %v7847_v51 = vor.u32 %v8907_v19, %v7844_v17  ;;  %v12441_v22 = vpop.f32.mrf.mxu1  ;;  %v8827_v42 = vld [vmem:[%s13180_s3 + $0x36c] sm:$0xf]  ;;  %v7492_v2 = vld [vmem:[%s13180_s3 + $0x338] sm:$0xf0] }
 0x38e   :  { %4377 = vmatpush.bf16.msrb.mxu0 %v7095_v0  ;;  %4394 = vmatpush.bf16.msrb.mxu1 %v7255_v14  ;;  %v7668_v0 = vld [vmem:[%s13180_s3 + $0x498] sm:$0xf0]  ;;  %v7831_v14 = vor.u32 %v8903_v56, %v7828_v5  ;;  %v8859_v3 = vld [vmem:[%s13180_s3 + $0x46c] sm:$0xf] }
 0x38f   :  { %4283 = vmatmul.bf16.vlgmr.msra.gmra.mxu3 %v11361_v4  ;;  %4302 = vmatmul.bf16.vlgmr.msra.gmra.mxu0 %v11363_v9  ;;  %v7671_v23 = vor.u32 %v8863_v60, %v7668_v0  ;;  %v8899_v63 = vld [vmem:[%s13180_s3 + $0x5ac] sm:$0xf] }
 0x390   :  { %v7815_v38 = vor.u32 %v8899_v63, %v7812_v48  ;;  %v8931_v53 = vld [vmem:[%s13180_s3 + $0x6ac] sm:$0xf]  ;;  %v7604_v48 = vld [vmem:[%s13180_s3 + $0x418] sm:$0xf0] }
 0x391   :  { %4413 = vmatpush.bf16.msrb.mxu2 %v7383_v10  ;;  %4427 = vmatpush.bf16.msra.mxu3 %v7591_v41  ;;  %v7527_v10 = vor.u32 %v8827_v42, %v7524_v62  ;;  %v7652_v41 = vld [vmem:[%s13180_s3 + $0x478] sm:$0xf0]  ;;  %v8823_v35 = vld [vmem:[%s13180_s3 + $0x34c] sm:$0xf] }
 0x392   :  { %4446 = vmatpush.bf16.msra.mxu0 %v7719_v52  ;;  %4395 = vmatpush.bf16.msrb.mxu1 %v7239_v26  ;;  %v7655_v52 = vor.u32 %v8859_v3, %v7652_v41  ;;  %v4006_v26 = vpop.f32.mrf.mxu0  ;;  %v8855_v6 = vld [vmem:[%s13180_s3 + $0x44c] sm:$0xf]  ;;  %v7476_v3 = vld [vmem:[%s13180_s3 + $0x318] sm:$0xf0] }
 0x393   :  { %v7639_v49 = vor.u32 %v8855_v6, %v7636_v46  ;;  %v8851_v19 = vld [vmem:[%s13180_s3 + $0x42c] sm:$0xf]  ;;  %v7876_v46 = vld [vmem:[%s13180_s3 + $0x638] sm:$0xf0] }
 0x394   :  { %v8923_v0 = vld [vmem:[%s13180_s3 + $0x66c] sm:$0xf] }
 0x395   :  { %4414 = vmatpush.bf16.msrb.mxu2 %v7367_v24  ;;  %4428 = vmatpush.bf16.msra.mxu3 %v7575_v27  ;;  %v7943_v24 = vor.u32 %v8931_v53, %v7940_v45  ;;  %v3987_v27 = vpop.f32.mrf.mxu3  ;;  %v8815_v62 = vld [vmem:[%s13180_s3 + $0x30c] sm:$0xf]  ;;  %v7764_v45 = vld [vmem:[%s13180_s3 + $0x558] sm:$0xf0] }
 0x396   :  { %4447 = vmatpush.bf16.msra.mxu0 %v7703_v12  ;;  %4396 = vmatpush.bf16.msrb.mxu1 %v7223_v34  ;;  %v7511_v12 = vor.u32 %v8823_v35, %v7508_v57  ;;  %v8895_v34 = vld [vmem:[%s13180_s3 + $0x58c] sm:$0xf]  ;;  %v7479_v63 = vor.u32 %v8815_v62, %v7476_v3  ;;  %v7892_v35 = vld [vmem:[%s13180_s3 + $0x658] sm:$0xf0] }
 0x397   :  { %v7799_v25 = vor.u32 %v8895_v34, %v7796_v43  ;;  %v8887_v53 = vld [vmem:[%s13180_s3 + $0x54c] sm:$0xf] }
 0x398   :  { %4321 = vmatmul.bf16.vlgmr.msra.gmra.mxu1 %v11734_v1  ;;  %4340 = vmatmul.bf16.vlgmr.msra.gmra.mxu2 %v11736_v59  ;;  %v8883_v6 = vld [vmem:[%s13180_s3 + $0x52c] sm:$0xf] }
 0x399   :  { %4415 = vmatpush.bf16.msrb.mxu2 %v7351_v18  ;;  %4429 = vmatpush.bf16.msra.mxu3 %v7559_v7  ;;  %v8927_v18 = vld [vmem:[%s13180_s3 + $0x68c] sm:$0xf] }
 0x39a   :  { %4448 = vmatpush.bf16.msra.mxu0 %v7687_v15  ;;  %4465 = vmatpush.bf16.msra.mxu1 %v7847_v51  ;;  %v7927_v47 = vor.u32 %v8927_v18, %v7924_v30  ;;  %v8819_v7 = vld [vmem:[%s13180_s3 + $0x32c] sm:$0xf]  ;;  %v7620_v15 = vld [vmem:[%s13180_s3 + $0x438] sm:$0xf0] }
 0x39b   :  { %v7495_v17 = vor.u32 %v8819_v7, %v7492_v2  ;;  %v8891_v51 = vld [vmem:[%s13180_s3 + $0x56c] sm:$0xf]  ;;  %v7623_v60 = vor.u32 %v8851_v19, %v7620_v15  ;;  %v7860_v19 = vld [vmem:[%s13180_s3 + $0x618] sm:$0xf0] }
 0x39d   :  { %4430 = vmatpush.bf16.msra.mxu3 %v7543_v58  ;;  %4486 = vmatpush.bf16.msra.mxu2 %v7943_v24  ;;  %v7783_v58 = vor.u32 %v8891_v51, %v7780_v61  ;;  %v7767_v24 = vor.u32 %v8887_v53, %v7764_v45 }
 0x39e   :  { %4449 = vmatpush.bf16.msra.mxu0 %v7671_v23  ;;  %4466 = vmatpush.bf16.msra.mxu1 %v7831_v14  ;;  %v7908_v23 = vld [vmem:[%s13180_s3 + $0x678] sm:$0xf0] }
 0x39f   :  { %4288 = vmatmul.bf16.gmra.mxu3 %v11672_v44  ;;  %4307 = vmatmul.bf16.gmra.mxu0 %v11674_v21  ;;  %v7911_v42 = vor.u32 %v8923_v0, %v7908_v23 }
 0x3a1   :  { %4431 = vmatpush.bf16.msra.mxu3 %v7527_v10  ;;  %4487 = vmatpush.bf16.msra.mxu2 %v7927_v47  ;;  %v8847_v10 = vld [vmem:[%s13180_s3 + $0x40c] sm:$0xf]  ;;  %v7732_v47 = vld [vmem:[%s13180_s3 + $0x518] sm:$0xf0] }
 0x3a2   :  { %4450 = vmatpush.bf16.msra.mxu0 %v7655_v52  ;;  %4467 = vmatpush.bf16.msra.mxu1 %v7815_v38  ;;  %v7607_v38 = vor.u32 %v8847_v10, %v7604_v48 }
 0x3a5   :  { %v4023_v31 = vpop.f32.mrf.mxu1  ;;  %4432 = vmatpush.bf16.msra.mxu3 %v7511_v12  ;;  %4488 = vmatpush.bf16.msra.mxu2 %v7911_v42 }
 0x3a6   :  { %v4024_v29 = vadd.f32 %v4023_v31, %v11668_v32  ;;  %v3988_v32 = vadd.f32 %v3987_v27, %v11407_v37  ;;  %4451 = vmatpush.bf16.msra.mxu0 %v7639_v49  ;;  %4468 = vmatpush.bf16.msra.mxu1 %v7799_v25  ;;  %v7748_v27 = vld [vmem:[%s13180_s3 + $0x538] sm:$0xf0] }
 0x3a7   :  { %v7751_v12 = vor.u32 %v8883_v6, %v7748_v27 }
 0x3a8   :  { %4326 = vmatmul.bf16.gmra.mxu1 %v11850_v36  ;;  %4345 = vmatmul.bf16.gmra.mxu2 %v11852_v33  ;;  %v4007_v14 = vadd.f32 %v4006_v26, %v3988_v32  ;;  %v8919_v26 = vld [vmem:[%s13180_s3 + $0x64c] sm:$0xf] }
 0x3a9   :  { %4433 = vmatpush.bf16.msra.mxu3 %v7495_v17  ;;  %v7895_v57 = vor.u32 %v8919_v26, %v7892_v35  ;;  %v8879_v32 = vld [vmem:[%s13180_s3 + $0x50c] sm:$0xf] }
 0x3aa   :  { %4452 = vmatpush.bf16.msra.mxu0 %v7623_v60  ;;  %4469 = vmatpush.bf16.msra.mxu1 %v7783_v58  ;;  %v7735_v2 = vor.u32 %v8879_v32, %v7732_v47 }
 0x3ab   :  { %v4042_v39 = vpop.f32.mrf.mxu2  ;;  %4489 = vmatpush.bf16.msra.mxu2 %v7895_v57 }
 0x3ac   :  { %v4043_v56 = vadd.f32 %v4042_v39, %v4024_v29  ;;  %v4075_v5 = vpop.f32.mrf.mxu0 }
 0x3ad   :  { %v4025_v41 = vpop.f32.mrf.mxu1  ;;  %4434 = vmatpush.bf16.msra.mxu3 %v7479_v63 }
 0x3ae   :  { %v4026_v52 = vadd.f32 %v4025_v41, %v4007_v14  ;;  %4453 = vmatpush.bf16.msra.mxu0 %v7607_v38  ;;  %4470 = vmatpush.bf16.msra.mxu1 %v7767_v24 }
 0x3af   :  { %7948 = vmatmul.msk.bf16.vlgmr.msrb.gmra.mxu3 %vm3964_vm1, %v11805_v16  ;;  %4378 = vmatmul.bf16.vlgmr.msrb.gmra.mxu0 %v11071_v8  ;;  %v8915_v8 = vld [vmem:[%s13180_s3 + $0x62c] sm:$0xf] }
 0x3b0   :  { %v7879_v34 = vor.u32 %v8915_v8, %v7876_v46 }
 0x3b2   :  { %v4056_v31 = vpop.f32.mrf.mxu3  ;;  %4471 = vmatpush.bf16.msra.mxu1 %v7751_v12  ;;  %4490 = vmatpush.bf16.msra.mxu2 %v7879_v34 }
 0x3b3   :  { %v4057_v29 = vadd.f32 %v4056_v31, %v12298_v55  ;;  %v4044_v49 = vpop.f32.mrf.mxu2  ;;  %v8911_v55 = vld [vmem:[%s13180_s3 + $0x60c] sm:$0xf] }
 0x3b4   :  { %v12572_v43 = vadd.f32 %v4044_v49, %v4026_v52  ;;  %v12574_v18 = vpop.f32.mrf.mxu0  ;;  %v7863_v17 = vor.u32 %v8911_v55, %v7860_v19 }
 0x3b5   :  { %v4076_v25 = vadd.f32 %v4075_v5, %v4057_v29  ;;  %v4094_v30 = vpop.f32.mrf.mxu1 }
 0x3b6   :  { %4472 = vmatpush.bf16.msra.mxu1 %v7735_v2  ;;  %4491 = vmatpush.bf16.msra.mxu2 %v7863_v17 }
 0x3b7   :  { %v12585_v7 = vadd.f32 %v4094_v30, %v4076_v25 }
 0x3b8   :  { %4397 = vmatmul.bf16.vlgmr.msrb.gmra.mxu1 %v11073_v13  ;;  %4416 = vmatmul.bf16.vlgmr.msrb.gmra.mxu2 %v11361_v4 }
 0x3ba   :  { %v12592_v15 = vpop.f32.mrf.mxu3 }
 0x3bb   :  { %v4113_v51 = vpop.f32.mrf.mxu2 }
 0x3bc   :  { %v4080_v61 = vpop.f32.mrf.mxu0 }
 0x3bd   :  { %v12594_v39 = vpop.f32.mrf.mxu1 }
 0x3bf   :  { %7949 = vmatmul.msk.bf16.gmra.mxu3 %vm3964_vm1, %v11916_v11  ;;  %4383 = vmatmul.bf16.gmra.mxu0 %v11130_v20  ;;  %v12612_v20 = vld [vmem:[%s13181_s4] sm:$0xf] }
 0x3c0   :  { %v2808_v47 = vperm.slane %v12612_v20, 2 }
 0x3c2   :  { %v4061_v60 = vpop.f32.mrf.mxu3 }
 0x3c3   :  { %v4062_v58 = vadd.f32 %v4061_v60, %v4043_v56  ;;  %v12599_v0 = vpop.f32.mrf.mxu2  ;;  %v12615_v56 = vperm.slane %v12612_v20, 1 }
 0x3c4   :  { %v12601_v13 = vpop.f32.mrf.mxu0 }
 0x3c5   :  { %v4081_v4 = vadd.f32 %v4080_v61, %v4062_v58  ;;  %v4099_v23 = vpop.f32.mrf.mxu1 }
 0x3c7   :  { %v12603_v5 = vadd.f32 %v4099_v23, %v4081_v4 }
 0x3c8   :  { %4402 = vmatmul.bf16.gmra.mxu1 %v11132_v50  ;;  %4421 = vmatmul.bf16.gmra.mxu2 %v11672_v44  ;;  %v4114_v50 = vadd.f32 %v4113_v51, %v12615_v56 }
 0x3ca   :  { %v12607_v14 = vpop.f32.mrf.mxu3 }
 0x3cb   :  { %v4118_v42 = vpop.f32.mrf.mxu2 }
 0x3cc   :  { %v4151_v62 = vpop.f32.mrf.mxu0  ;;  %v4119_v24 = vadd.f32 %v4118_v42, %v12615_v56 }
 0x3cd   :  { %v12617_v3 = vpop.f32.mrf.mxu1 }
 0x3cf   :  { %4435 = vmatmul.bf16.vlgmr.msra.gmra.mxu3 %v11363_v9  ;;  %4454 = vmatmul.bf16.vlgmr.msra.gmra.mxu0 %v11734_v1 }
 0x3d2   :  { %v4132_v44 = vpop.f32.mrf.mxu3 }
 0x3d3   :  { %v4133_v10 = vadd.f32 %v4132_v44, %v4114_v50  ;;  %v4120_v41 = vpop.f32.mrf.mxu2 }
 0x3d4   :  { %v12622_v63 = vpop.f32.mrf.mxu0  ;;  %v4121_v17 = vadd.f32 %v4120_v41, %v12615_v56 }
 0x3d5   :  { %v4152_v48 = vadd.f32 %v4151_v62, %v4133_v10  ;;  %v4170_v52 = vpop.f32.mrf.mxu1 }
 0x3d7   :  { %v4171_v38 = vadd.f32 %v4170_v52, %v4152_v48 }
 0x3d8   :  { %4473 = vmatmul.bf16.vlgmr.msra.gmra.mxu1 %v11736_v59  ;;  %7950 = vmatmul.msk.bf16.vlgmr.msra.gmra.mxu2 %vm3964_vm1, %v11805_v16 }
 0x3da   :  { %v12627_v53 = vpop.f32.mrf.mxu3 }
 0x3db   :  { %v4189_v9 = vpop.f32.mrf.mxu2 }
 0x3dc   :  { %v4190_v45 = vadd.f32 %v4189_v9, %v4171_v38  ;;  %v4156_v1 = vpop.f32.mrf.mxu0 }
 0x3dd   :  { %v12629_v26 = vpop.f32.mrf.mxu1 }
 0x3df   :  { %4440 = vmatmul.bf16.gmra.mxu3 %v11674_v21  ;;  %4459 = vmatmul.bf16.gmra.mxu0 %v11850_v36 }
 0x3e2   :  { %v4137_v35 = vpop.f32.mrf.mxu3 }
 0x3e3   :  { %v4138_v57 = vadd.f32 %v4137_v35, %v4119_v24  ;;  %v12634_v6 = vpop.f32.mrf.mxu2 }
 0x3e4   :  { %v4158_v59 = vpop.f32.mrf.mxu0 }
 0x3e5   :  { %v4157_v27 = vadd.f32 %v4156_v1, %v4138_v57  ;;  %v4175_v16 = vpop.f32.mrf.mxu1 }
 0x3e7   :  { %v4176_v8 = vadd.f32 %v4175_v16, %v4157_v27 }
 0x3e8   :  { %4478 = vmatmul.bf16.gmra.mxu1 %v11852_v33  ;;  %7951 = vmatmul.msk.bf16.gmra.mxu2 %vm3964_vm1, %v11916_v11 }
 0x3ea   :  { %v4139_v31 = vpop.f32.mrf.mxu3 }
 0x3eb   :  { %v4194_v12 = vpop.f32.mrf.mxu2  ;;  %v4140_v61 = vadd.f32 %v4139_v31, %v4121_v17 }
 0x3ec   :  { %v4195_v21 = vadd.f32 %v4194_v12, %v4176_v8  ;;  %v4227_v46 = vpop.f32.mrf.mxu0 }
 0x3ed   :  { %v4177_v36 = vpop.f32.mrf.mxu1  ;;  %v4159_v4 = vadd.f32 %v4158_v59, %v4140_v61 }
 0x3ef   :  { %v4178_v48 = vadd.f32 %v4177_v36, %v4159_v4 }
 0x3f2   :  { %v4208_v29 = vpop.f32.mrf.mxu3 }
 0x3f3   :  { %v4209_v49 = vadd.f32 %v4208_v29, %v4190_v45  ;;  %v4196_v34 = vpop.f32.mrf.mxu2 }
 0x3f4   :  { %v12639_v25 = vpop.f32.mrf.mxu0  ;;  %v4197_v52 = vadd.f32 %v4196_v34, %v4178_v48 }
 0x3f5   :  { %v12641_v30 = vadd.f32 %v4227_v46, %v4209_v49  ;;  %v4246_v32 = vpop.f32.mrf.mxu1 }
 0x3f6   :  { %v4247_v55 = vadd.f32 %v4246_v32, %v2808_v47 }
 0x3fa   :  { %v12644_v33 = vpop.f32.mrf.mxu3 }
 0x3fb   :  { %v4265_v2 = vpop.f32.mrf.mxu2 }
 0x3fc   :  { %v4266_v11 = vadd.f32 %v4265_v2, %v4247_v55  ;;  %v4232_v19 = vpop.f32.mrf.mxu0 }
 0x3fd   :  { %v4248_v51 = vpop.f32.mrf.mxu1 }
 0x3fe   :  { %v4249_v60 = vadd.f32 %v4248_v51, %v2808_v47 }
 0x402   :  { %v4213_v58 = vpop.f32.mrf.mxu3 }
 0x403   :  { %v4214_v23 = vadd.f32 %v4213_v58, %v4195_v21  ;;  %v4267_v42 = vpop.f32.mrf.mxu2 }
 0x404   :  { %v4268_v62 = vadd.f32 %v4267_v42, %v4249_v60  ;;  %v4234_v50 = vpop.f32.mrf.mxu0 }
 0x405   :  { %v12647_v44 = vadd.f32 %v4232_v19, %v4214_v23  ;;  %v4251_v10 = vpop.f32.mrf.mxu1 }
 0x406   :  { %v4252_v38 = vadd.f32 %v4251_v10, %v2808_v47 }
 0x40a   :  { %v4215_v9 = vpop.f32.mrf.mxu3 }
 0x40b   :  { %v4216_v45 = vadd.f32 %v4215_v9, %v4197_v52  ;;  %v4270_v1 = vpop.f32.mrf.mxu2 }
 0x40c   :  { %v4271_v24 = vadd.f32 %v4270_v1, %v4252_v38  ;;  %v4303_v41 = vpop.f32.mrf.mxu0 }
 0x40d   :  { %v12649_v35 = vadd.f32 %v4234_v50, %v4216_v45  ;;  %v4253_v57 = vpop.f32.mrf.mxu1 }
 0x40e   :  { %v4254_v27 = vadd.f32 %v4253_v57, %v2808_v47  ;;  %v4503_v57 = vmax.f32 %v12585_v7, 0.0  ;;  %v4064_v7 = vadd.f32 %v12607_v14, %v12572_v43  ;;  %v3983_v43 = vadd.f32 %v11561_v54, %v11407_v37 }
 0x412   :  { %v4284_v59 = vpop.f32.mrf.mxu3 }
 0x413   :  { %v4272_v16 = vpop.f32.mrf.mxu2  ;;  %v4285_v61 = vadd.f32 %v4284_v59, %v4266_v11 }
 0x414   :  { %v4273_v8 = vadd.f32 %v4272_v16, %v4254_v27  ;;  %v4305_v31 = vpop.f32.mrf.mxu0 }
 0x415   :  { %v4322_v12 = vpop.f32.mrf.mxu1  ;;  %v4304_v47 = vadd.f32 %v4303_v41, %v4285_v61  ;;  %v2809_v41 = vperm.slane %v12612_v20, 3  ;;  %v4511_v20 = vmax.f32 %v12603_v5, 0.0 }
 0x417   :  { %v4323_v10 = vadd.f32 %v4322_v12, %v4304_v47 }
 0x41a   :  { %v4286_v21 = vpop.f32.mrf.mxu3 }
 0x41b   :  { %v4287_v46 = vadd.f32 %v4286_v21, %v4268_v62  ;;  %v4341_v29 = vpop.f32.mrf.mxu2 }
 0x41c   :  { %v4308_v36 = vpop.f32.mrf.mxu0  ;;  %v4342_v48 = vadd.f32 %v4341_v29, %v4323_v10 }
 0x41d   :  { %v4306_v49 = vadd.f32 %v4305_v31, %v4287_v46  ;;  %v4324_v34 = vpop.f32.mrf.mxu1 }
 0x41f   :  { %v4325_v32 = vadd.f32 %v4324_v34, %v4306_v49 }
 0x422   :  { %v4289_v55 = vpop.f32.mrf.mxu3 }
 0x423   :  { %v4343_v2 = vpop.f32.mrf.mxu2  ;;  %v4290_v11 = vadd.f32 %v4289_v55, %v4271_v24 }
 0x424   :  { %v4344_v19 = vadd.f32 %v4343_v2, %v4325_v32  ;;  %v4310_v17 = vpop.f32.mrf.mxu0 }
 0x425   :  { %v4327_v51 = vpop.f32.mrf.mxu1  ;;  %v4309_v31 = vadd.f32 %v4308_v36, %v4290_v11  ;;  %v4083_v36 = vadd.f32 %v12601_v13, %v4064_v7  ;;  %v4002_v13 = vadd.f32 %v11579_v40, %v3983_v43 }
 0x427   :  { %v4328_v32 = vadd.f32 %v4327_v51, %v4309_v31  ;;  %v4102_v51 = vadd.f32 %v12617_v3, %v4083_v36  ;;  %v4116_v3 = vadd.f32 %v12599_v0, %v12615_v56 }
 0x429   :  { %v4515_v10 = vmax.f32 %v4102_v51, 0.0  ;;  %v4135_v37 = vadd.f32 %v12627_v53, %v4116_v3 }
 0x42a   :  { %v4291_v60 = vpop.f32.mrf.mxu3 }
 0x42b   :  { %v4292_v58 = vadd.f32 %v4291_v60, %v4273_v8  ;;  %v4346_v4 = vpop.f32.mrf.mxu2  ;;  %v4154_v31 = vadd.f32 %v12622_v63, %v4135_v37 }
 0x42c   :  { %v4379_v23 = vpop.f32.mrf.mxu0  ;;  %v4347_v2 = vadd.f32 %v4346_v4, %v4328_v32 }
 0x42d   :  { %v4311_v42 = vadd.f32 %v4310_v17, %v4292_v58  ;;  %v4329_v50 = vpop.f32.mrf.mxu1 }
 0x42f   :  { %v4330_v62 = vadd.f32 %v4329_v50, %v4311_v42 }
 0x432   :  { %v4360_v52 = vpop.f32.mrf.mxu3 }
 0x433   :  { %v4361_v38 = vadd.f32 %v4360_v52, %v4342_v48  ;;  %v4348_v9 = vpop.f32.mrf.mxu2 }
 0x434   :  { %v4349_v45 = vadd.f32 %v4348_v9, %v4330_v62  ;;  %v4381_v1 = vpop.f32.mrf.mxu0  ;;  %v4380_v62 = vadd.f32 %v4379_v23, %v2809_v41 }
 0x435   :  { %v4505_v27 = vmax.f32 %v4361_v38, 0.0  ;;  %v4398_v16 = vpop.f32.mrf.mxu1  ;;  %v4382_v46 = vadd.f32 %v4381_v1, %v2809_v41 }
 0x436   :  { %v4399_v38 = vadd.f32 %v4398_v16, %v4380_v62 }
 0x437   :  { %v12652_v59 = vmax.f32 %v4503_v57, %v4505_v27  ;;  %v4021_v57 = vadd.f32 %v12441_v22, %v4002_v13  ;;  %v4173_v22 = vadd.f32 %v12629_v26, %v4154_v31 }
 0x439   :  { %v4040_v23 = vadd.f32 %v12472_v28, %v4021_v57  ;;  %v4192_v28 = vadd.f32 %v12634_v6, %v4173_v22  ;;  %v4531_v26 = vrot.slane %v12652_v59, 1 }
 0x43a   :  { %v4362_v8 = vpop.f32.mrf.mxu3 }
 0x43b   :  { %v12655_v21 = vadd.f32 %v4362_v8, %v4344_v19  ;;  %v4417_v12 = vpop.f32.mrf.mxu2  ;;  %v4059_v40 = vadd.f32 %v12592_v15, %v4040_v23  ;;  %v4211_v63 = vadd.f32 %v12644_v33, %v4192_v28  ;;  %v4539_v33 = vmax.f32 %v12652_v59, %v4531_v26 }
 0x43c   :  { %v4384_v29 = vpop.f32.mrf.mxu0  ;;  %v4418_v27 = vadd.f32 %v4417_v12, %v4399_v38 }
 0x43d   :  { %v4400_v49 = vpop.f32.mrf.mxu1  ;;  %v4230_v6 = vadd.f32 %v12639_v25, %v4211_v63 }
 0x43e   :  { %v4401_v34 = vadd.f32 %v4400_v49, %v4382_v46  ;;  %v4078_v49 = vadd.f32 %v12574_v18, %v4059_v40 }
 0x440   :  { %v4097_v7 = vadd.f32 %v12594_v39, %v4078_v49 }
 0x442   :  { %v4365_v17 = vpop.f32.mrf.mxu3  ;;  %v4507_v36 = vmax.f32 %v4097_v7, 0.0 }
 0x443   :  { %v4366_v24 = vadd.f32 %v4365_v17, %v4347_v2  ;;  %v4419_v55 = vpop.f32.mrf.mxu2  ;;  %v4385_v2 = vadd.f32 %v4384_v29, %v2809_v41  ;;  %v4504_v17 = vmax.f32 %v12641_v30, 0.0 }
 0x444   :  { %v4420_v61 = vadd.f32 %v4419_v55, %v4401_v34  ;;  %v4386_v60 = vpop.f32.mrf.mxu0 }
 0x445   :  { %v4513_v19 = vmax.f32 %v4366_v24, 0.0  ;;  %v4387_v47 = vadd.f32 %v4386_v60, %v2809_v41  ;;  %v4403_v58 = vpop.f32.mrf.mxu1  ;;  %v4509_v60 = vmax.f32 %v12655_v21, 0.0 }
 0x446   :  { %v4404_v55 = vadd.f32 %v4403_v58, %v4385_v2 }
 0x447   :  { %v12661_v42 = vmax.f32 %v4511_v20, %v4513_v19  ;;  %v4521_v51 = vmax.f32 %v4507_v36, %v4509_v60 }
 0x449   :  { %v4667_v62 = vrot.slane %v4521_v51, 1 }
 0x44a   :  { %v4367_v50 = vpop.f32.mrf.mxu3 }
 0x44b   :  { %v4368_v14 = vadd.f32 %v4367_v50, %v4349_v45  ;;  %v4422_v4 = vpop.f32.mrf.mxu2  ;;  %v4675_v3 = vmax.f32 %v4521_v51, %v4667_v62 }
 0x44c   :  { %v4455_v1 = vpop.f32.mrf.mxu0  ;;  %v4423_v20 = vadd.f32 %v4422_v4, %v4404_v55 }
 0x44d   :  { %v4517_v48 = vmax.f32 %v4368_v14, 0.0  ;;  %v4405_v52 = vpop.f32.mrf.mxu1  ;;  %v4508_v14 = vmax.f32 %v4230_v6, 0.0 }
 0x44e   :  { %v4406_v5 = vadd.f32 %v4405_v52, %v4387_v47 }
 0x44f   :  { %v12667_v9 = vmax.f32 %v4515_v10, %v4517_v48 }
 0x451   :  { %v4669_v28 = vrot.slane %v12667_v9, 1 }
 0x452   :  { %v4436_v54 = vpop.f32.mrf.mxu3 }
 0x453   :  { %v4437_v45 = vadd.f32 %v4436_v54, %v4418_v27  ;;  %v4424_v11 = vpop.f32.mrf.mxu2  ;;  %v4512_v54 = vmax.f32 %v12647_v44, 0.0  ;;  %v4516_v44 = vmax.f32 %v12649_v35, 0.0 }
 0x454   :  { %v4425_v8 = vadd.f32 %v4424_v11, %v4406_v5  ;;  %v4457_v0 = vpop.f32.mrf.mxu0 }
 0x455   :  { %v4474_v16 = vpop.f32.mrf.mxu1  ;;  %v4456_v46 = vadd.f32 %v4455_v1, %v4437_v45 }
 0x457   :  { %v4475_v56 = vadd.f32 %v4474_v16, %v4456_v46  ;;  %v4533_v16 = vrot.slane %v12661_v42, 1 }
 0x459   :  { %v4541_v22 = vmax.f32 %v12661_v42, %v4533_v16  ;;  %v4677_v42 = vmax.f32 %v12667_v9, %v4669_v28  ;;  %v8939_v16 = vld [vmem:[%s13182_s5 + $0x28] sm:$0xff]  ;;  %v8954_v28 = vld [vmem:[%s13182_s5 + $0xa0] sm:$0xff] }
 0x45a   :  { %v4438_v12 = vpop.f32.mrf.mxu3 }
 0x45b   :  { %v4439_v53 = vadd.f32 %v4438_v12, %v4420_v61  ;;  %v4493_v34 = vpop.f32.mrf.mxu2 }
 0x45c   :  { %v4494_v32 = vadd.f32 %v4493_v34, %v4475_v56  ;;  %v4460_v29 = vpop.f32.mrf.mxu0 }
 0x45d   :  { %v4476_v15 = vpop.f32.mrf.mxu1  ;;  %v4458_v18 = vadd.f32 %v4457_v0, %v4439_v53 }
 0x45e   :  { %v4506_v24 = vmax.f32 %v4494_v32, 0.0 }
 0x45f   :  { %v4477_v39 = vadd.f32 %v4476_v15, %v4458_v18 }
 0x460   :  { %v4520_v61 = vmax.f32 %v4504_v17, %v4506_v24 }
 0x462   :  { %v4532_v19 = vrot.slane %v4520_v61, 1  ;;  %v4441_v41 = vpop.f32.mrf.mxu3 }
 0x463   :  { %v4442_v47 = vadd.f32 %v4441_v41, %v4423_v20  ;;  %v4495_v30 = vpop.f32.mrf.mxu2 }
 0x464   :  { %v4540_v50 = vmax.f32 %v4520_v61, %v4532_v19  ;;  %v4496_v58 = vadd.f32 %v4495_v30, %v4477_v39  ;;  %v4462_v37 = vpop.f32.mrf.mxu0 }
 0x465   :  { %v4479_v43 = vpop.f32.mrf.mxu1  ;;  %v4461_v4 = vadd.f32 %v4460_v29, %v4442_v47 }
 0x466   :  { %v12686_v10 = vpack.c.bf16 %v4540_v50, %v4539_v33  ;;  %v4510_v21 = vmax.f32 %v4496_v58, 0.0 }
 0x467   :  { %v4480_v13 = vadd.f32 %v4479_v43, %v4461_v4 }
 0x468   :  { %v4547_v25 = vrot.slane %v12686_v10, 3  ;;  %v4522_v48 = vmax.f32 %v4508_v14, %v4510_v21 }
 0x46a   :  { %v4552_v52 = vsel %vm13246_vm15, %v12686_v10, %v4547_v25  ;;  %v4668_v5 = vrot.slane %v4522_v48, 1  ;;  %v4443_v38 = vpop.f32.mrf.mxu3 }
 0x46b   :  { %4556 = vst [vmem:[#allocation1] ss:$4 sm:$0xff] %v4552_v52  ;;  %v4444_v59 = vadd.f32 %v4443_v38, %v4425_v8  ;;  %v4498_v1 = vpop.f32.mrf.mxu2  ;;  %v8957_v38 = vld [vmem:[%s13182_s5 + $0xb8] sm:$0xff] }
 0x46c   :  { %v4676_v57 = vmax.f32 %v4522_v48, %v4668_v5  ;;  %v4499_v27 = vadd.f32 %v4498_v1, %v4480_v13  ;;  %v8949_v13 = vld [vmem:[%s13182_s5 + $0x78] sm:$0xff]  ;;  %5889 = vmatpush.bf16.msrb.mxu1 %v8957_v38 }
 0x46d   :  { %v4463_v11 = vadd.f32 %v4462_v37, %v4444_v59  ;;  %v4481_v40 = vpop.f32.mrf.mxu1  ;;  %v8965_v59 = vld [vmem:[%s13182_s5 + $0xf8] sm:$0xff]  ;;  %5876 = vmatpush.bf16.msrb.mxu0 %v8949_v13  ;;  %v8956_v37 = vld [vmem:[%s13182_s5 + $0xb0] sm:$0xff] }
 0x46e   :  { %v12692_v23 = vpack.c.bf16 %v4676_v57, %v4675_v3  ;;  %v4514_v45 = vmax.f32 %v4499_v27, 0.0  ;;  %5902 = vmatpush.bf16.msrb.mxu2 %v8965_v59  ;;  %v8940_v57 = vld [vmem:[%s13182_s5 + $0x30] sm:$0xff]  ;;  %v8981_v13 = vld [vmem:[%s13182_s5 + $0x178] sm:$0xff] }
 0x46f   :  { %v4482_v0 = vadd.f32 %v4481_v40, %v4463_v11  ;;  %v8948_v27 = vld [vmem:[%s13182_s5 + $0x70] sm:$0xff]  ;;  %v8989_v59 = vld [vmem:[%s13182_s5 + $0x1b8] sm:$0xff] }
 0x470   :  { %v4524_v31 = vmax.f32 %v4512_v54, %v4514_v45  ;;  %v4683_v3 = vrot.slane %v12692_v23, 3  ;;  %v8964_v54 = vld [vmem:[%s13182_s5 + $0xf0] sm:$0xff]  ;;  %5890 = vmatpush.bf16.msrb.mxu1 %v8956_v37 }
 0x471   :  { %5877 = vmatpush.bf16.msrb.mxu0 %v8948_v27 }
 0x472   :  { %v4557_v46 = vld [vmem:[#allocation1] sm:$0xff]  ;;  %v4534_v49 = vrot.slane %v4524_v31, 1  ;;  %v4687_v11 = vsel %vm13250_vm13, %v12692_v23, %v4683_v3  ;;  %5903 = vmatpush.bf16.msrb.mxu2 %v8964_v54 }
 0x473   :  { %4579 = vst [vmem:[#allocation1] sm:$0xff] %v12686_v10  ;;  %v4500_v8 = vpop.f32.mrf.mxu2  ;;  %v4563_v60 = vunpack.c.l.b16 %v4557_v46  ;;  %v4564_v61 = vunpack.c.h.b16 %v4557_v46 }
 0x474   :  { %v4542_v56 = vmax.f32 %v4524_v31, %v4534_v49  ;;  %v4501_v12 = vadd.f32 %v4500_v8, %v4482_v0  ;;  %v8947_v31 = vld [vmem:[%s13182_s5 + $0x68] sm:$0xff] }
 0x475   :  { %v8955_v0 = vld [vmem:[%s13182_s5 + $0xa8] sm:$0xff]  ;;  %5878 = vmatpush.bf16.msrb.mxu0 %v8947_v31  ;;  %v8996_v31 = vld [vmem:[%s13182_s5 + $0x1f0] sm:$0xff] }
 0x476   :  { %v12698_v53 = vpack.c.bf16 %v4542_v56, %v4541_v22  ;;  %v4518_v34 = vmax.f32 %v4501_v12, 0.0  ;;  %v8963_v8 = vld [vmem:[%s13182_s5 + $0xe8] sm:$0xff]  ;;  %5891 = vmatpush.bf16.msrb.mxu1 %v8955_v0 }
 0x477   :  { %5904 = vmatpush.bf16.msrb.mxu2 %v8963_v8 }
 0x478   :  { %v4548_v32 = vrot.slane %v12698_v53, 3  ;;  %v4526_v7 = vmax.f32 %v4516_v44, %v4518_v34  ;;  %v8946_v34 = vld [vmem:[%s13182_s5 + $0x60] sm:$0xff] }
 0x479   :  { %5879 = vmatpush.bf16.msrb.mxu0 %v8946_v34 }
 0x47a   :  { %v4581_v2 = vld [vmem:[#allocation1 + $0x1] ss:$4 sm:$0xff]  ;;  %v4555_v15 = vsel %vm13247_vm9, %v12698_v53, %v4548_v32  ;;  %v4670_v17 = vrot.slane %v4526_v7, 1  ;;  %5892 = vmatpush.bf16.msrb.mxu1 %v8954_v28 }
 0x47b   :  { %4585 = vst [vmem:[#allocation1] ss:$4 sm:$0xff] %v4581_v2  ;;  %v8962_v2 = vld [vmem:[%s13182_s5 + $0xe0] sm:$0xff]  ;;  %v8995_v28 = vld [vmem:[%s13182_s5 + $0x1e8] sm:$0xff] }
 0x47c   :  { %4560 = vst [vmem:[#allocation1 + $0x20] ss:$4 sm:$0xff] %v4555_v15  ;;  %v4678_v63 = vmax.f32 %v4526_v7, %v4670_v17  ;;  %5905 = vmatpush.bf16.msrb.mxu2 %v8962_v2 }
 0x47e   :  { %v12705_v24 = vpack.c.bf16 %v4678_v63, %v4677_v42 }
 0x482   :  { %v4586_v35 = vld [vmem:[#allocation1] sm:$0xff] }
 0x483   :  { %4607 = vst [vmem:[#allocation1] sm:$0xff] %v12686_v10  ;;  %v4561_v18 = vld [vmem:[#allocation1 + $0x20] sm:$0xff]  ;;  %v4592_v58 = vunpack.c.l.b16 %v4586_v35  ;;  %v4593_v43 = vunpack.c.h.b16 %v4586_v35  ;;  %v8937_v35 = vld [vmem:[%s13182_s5 + $0x18] sm:$0xff] }
 0x484   :  { %v4565_v55 = vunpack.c.l.b16 %v4561_v18  ;;  %v4566_v26 = vunpack.c.h.b16 %v4561_v18  ;;  %4582 = vst [vmem:[#allocation1 + $0x20] sm:$0xff] %v12698_v53  ;;  %v8945_v18 = vld [vmem:[%s13182_s5 + $0x58] sm:$0xff] }
 0x485   :  { %5880 = vmatpush.bf16.msrb.mxu0 %v8945_v18  ;;  %v8969_v18 = vld [vmem:[%s13182_s5 + $0x118] sm:$0xff] }
 0x486   :  { %v4567_v20 = vrot.slane %v4565_v55, 7  ;;  %v4570_v36 = vrot.slane %v4566_v26, 7  ;;  %v8953_v55 = vld [vmem:[%s13182_s5 + $0x98] sm:$0xff] }
 0x487   :  { %v8961_v26 = vld [vmem:[%s13182_s5 + $0xd8] sm:$0xff]  ;;  %5893 = vmatpush.bf16.msrb.mxu1 %v8953_v55 }
 0x488   :  { %v4569_v6 = vsel %vm4568_vm11, %v4567_v20, %v4563_v60  ;;  %v4571_v9 = vsel %vm4568_vm11, %v4570_v36, %v4564_v61  ;;  %v4684_v61 = vrot.slane %v12705_v24, 3  ;;  %5906 = vmatpush.bf16.msrb.mxu2 %v8961_v26  ;;  %v8936_v20 = vld [vmem:[%s13182_s5 + $0x10] sm:$0xff]  ;;  %v8977_v55 = vld [vmem:[%s13182_s5 + $0x158] sm:$0xff] }
 0x489   :  { %v4572_v19 = vpack.c.b16 %v4571_v9, %v4569_v6  ;;  %v8944_v36 = vld [vmem:[%s13182_s5 + $0x50] sm:$0xff]  ;;  %v8985_v26 = vld [vmem:[%s13182_s5 + $0x198] sm:$0xff] }
 0x48a   :  { %v4609_v39 = vld [vmem:[#allocation1 + $0x2] ss:$4 sm:$0xff]  ;;  %5881 = vmatpush.bf16.msrb.mxu0 %v8944_v36 }
 0x48b   :  { %4613 = vst [vmem:[#allocation1] ss:$4 sm:$0xff] %v4609_v39  ;;  %v4573_v41 = vrot.slane %v4572_v19, 3  ;;  %v4584_v29 = vld [vmem:[#allocation1 + $0x21] ss:$4 sm:$0xff] }
 0x48c   :  { %4589 = vst [vmem:[#allocation1 + $0x20] ss:$4 sm:$0xff] %v4584_v29  ;;  %v8952_v6 = vld [vmem:[%s13182_s5 + $0x90] sm:$0xff]  ;;  %v8935_v29 = vld [vmem:[%s13182_s5 + $0x8] sm:$0xff] }
 0x48d   :  { %v4576_v47 = vsel %vm13248_vm6, %v4572_v19, %v4573_v41  ;;  %v8960_v9 = vld [vmem:[%s13182_s5 + $0xd0] sm:$0xff]  ;;  %5894 = vmatpush.bf16.msrb.mxu1 %v8952_v6  ;;  %v4690_v41 = vsel %vm13252_vm2, %v12705_v24, %v4684_v61 }
 0x48e   :  { %4578 = vst [vmem:[#allocation5] sm:$0x3] %v4576_v47  ;;  %5907 = vmatpush.bf16.msrb.mxu2 %v8960_v9  ;;  %v8943_v47 = vld [vmem:[%s13182_s5 + $0x48] sm:$0xff]  ;;  %v8968_v9 = vld [vmem:[%s13182_s5 + $0x110] sm:$0xff] }
 0x48f   :  { %5882 = vmatpush.bf16.msrb.mxu0 %v8943_v47 }
 0x492   :  { %v4614_v30 = vld [vmem:[#allocation1] sm:$0xff] }
 0x493   :  { %4635 = vst [vmem:[#allocation1] sm:$0xff] %v12686_v10  ;;  %v4590_v33 = vld [vmem:[#allocation1 + $0x20] sm:$0xff]  ;;  %v8941_v10 = vld [vmem:[%s13182_s5 + $0x38] sm:$0xff]  ;;  %v4620_v22 = vunpack.c.l.b16 %v4614_v30  ;;  %v4621_v56 = vunpack.c.h.b16 %v4614_v30 }
 0x494   :  { %v4594_v51 = vunpack.c.l.b16 %v4590_v33  ;;  %v4595_v50 = vunpack.c.h.b16 %v4590_v33  ;;  %4610 = vst [vmem:[#allocation1 + $0x20] sm:$0xff] %v12698_v53  ;;  %5863 = vmatpush.bf16.msrb.mxu3 %v8941_v10  ;;  %v8973_v10 = vld [vmem:[%s13182_s5 + $0x138] sm:$0xff] }
 0x496   :  { %v4596_v14 = vrot.slane %v4594_v51, 7  ;;  %v4598_v21 = vrot.slane %v4595_v50, 7  ;;  %v8951_v51 = vld [vmem:[%s13182_s5 + $0x88] sm:$0xff] }
 0x497   :  { %v8959_v50 = vld [vmem:[%s13182_s5 + $0xc8] sm:$0xff]  ;;  %5895 = vmatpush.bf16.msrb.mxu1 %v8951_v51 }
 0x498   :  { %v4597_v4 = vsel %vm4568_vm11, %v4596_v14, %v4592_v58  ;;  %v4599_v62 = vsel %vm4568_vm11, %v4598_v21, %v4593_v43  ;;  %5864 = vmatpush.bf16.msrb.mxu3 %v8940_v57  ;;  %5908 = vmatpush.bf16.msrb.mxu2 %v8959_v50  ;;  %v8967_v50 = vld [vmem:[%s13182_s5 + $0x108] sm:$0xff] }
 0x499   :  { %v4600_v25 = vpack.c.b16 %v4599_v62, %v4597_v4  ;;  %v8934_v4 = vld [vmem:[%s13182_s5] sm:$0xff] }
 0x49a   :  { %v4637_v48 = vld [vmem:[#allocation1 + $0x3] ss:$4 sm:$0xff] }
 0x49b   :  { %4641 = vst [vmem:[#allocation1] ss:$4 sm:$0xff] %v4637_v48  ;;  %v4601_v52 = vrot.slane %v4600_v25, 3  ;;  %v4612_v5 = vld [vmem:[#allocation1 + $0x22] ss:$4 sm:$0xff] }
 0x49c   :  { %4617 = vst [vmem:[#allocation1 + $0x20] ss:$4 sm:$0xff] %v4612_v5  ;;  %5865 = vmatpush.bf16.msrb.mxu3 %v8939_v16  ;;  %v8942_v62 = vld [vmem:[%s13182_s5 + $0x40] sm:$0xff] }
 0x49d   :  { %v4604_v1 = vsel %vm13249_vm12, %v4600_v25, %v4601_v52  ;;  %v8950_v25 = vld [vmem:[%s13182_s5 + $0x80] sm:$0xff]  ;;  %5883 = vmatpush.bf16.msrb.mxu0 %v8942_v62 }
 0x49e   :  { %4606 = vst [vmem:[#allocation5 + $0x2] sm:$0x3] %v4604_v1  ;;  %v8958_v5 = vld [vmem:[%s13182_s5 + $0xc0] sm:$0xff]  ;;  %v8997_v1 = vld [vmem:[%s13182_s5 + $0x1f8] sm:$0xff]  ;;  %5896 = vmatpush.bf16.msrb.mxu1 %v8950_v25 }
 0x49f   :  { %5909 = vmatpush.bf16.msrb.mxu2 %v8958_v5  ;;  %v8982_v5 = vld [vmem:[%s13182_s5 + $0x180] sm:$0xff] }
 0x4a1   :  { %5928 = vmatpush.bf16.msra.mxu0 %v8981_v13  ;;  %v8990_v13 = vld [vmem:[%s13182_s5 + $0x1c0] sm:$0xff] }
 0x4a2   :  { %v12742_v45 = vld [vmem:[#allocation1] sm:$0xff]  ;;  %5941 = vmatpush.bf16.msra.mxu1 %v8989_v59 }
 0x4a3   :  { %4691 = vst [vmem:[#allocation1] ss:$4 sm:$0xff] %v4687_v11  ;;  %v4618_v40 = vld [vmem:[#allocation1 + $0x20] sm:$0xff]  ;;  %v4648_v58 = vunpack.c.l.b16 %v12742_v45  ;;  %v4649_v43 = vunpack.c.h.b16 %v12742_v45  ;;  %v8972_v45 = vld [vmem:[%s13182_s5 + $0x130] sm:$0xff]  ;;  %5954 = vmatpush.bf16.msra.mxu2 %v8997_v1 }
 0x4a4   :  { %v4622_v46 = vunpack.c.l.b16 %v4618_v40  ;;  %v4623_v49 = vunpack.c.h.b16 %v4618_v40  ;;  %4638 = vst [vmem:[#allocation1 + $0x20] sm:$0xff] %v12698_v53  ;;  %v8938_v53 = vld [vmem:[%s13182_s5 + $0x20] sm:$0xff]  ;;  %v8980_v11 = vld [vmem:[%s13182_s5 + $0x170] sm:$0xff] }
 0x4a5   :  { %5866 = vmatpush.bf16.msrb.mxu3 %v8938_v53  ;;  %v8988_v40 = vld [vmem:[%s13182_s5 + $0x1b0] sm:$0xff]  ;;  %5929 = vmatpush.bf16.msra.mxu0 %v8980_v11  ;;  %v8987_v53 = vld [vmem:[%s13182_s5 + $0x1a8] sm:$0xff] }
 0x4a6   :  { %v4624_v12 = vrot.slane %v4622_v46, 7  ;;  %v4626_v44 = vrot.slane %v4623_v49, 7  ;;  %5942 = vmatpush.bf16.msra.mxu1 %v8988_v40 }
 0x4a7   :  { %5955 = vmatpush.bf16.msra.mxu2 %v8996_v31 }
 0x4a8   :  { %v4625_v32 = vsel %vm4568_vm11, %v4624_v12, %v4620_v22  ;;  %v4627_v7 = vsel %vm4568_vm11, %v4626_v44, %v4621_v56  ;;  %v8971_v12 = vld [vmem:[%s13182_s5 + $0x128] sm:$0xff] }
 0x4a9   :  { %v4628_v15 = vpack.c.b16 %v4627_v7, %v4625_v32  ;;  %5867 = vmatpush.bf16.msrb.mxu3 %v8937_v35  ;;  %v8979_v44 = vld [vmem:[%s13182_s5 + $0x168] sm:$0xff]  ;;  %v8994_v35 = vld [vmem:[%s13182_s5 + $0x1e0] sm:$0xff] }
 0x4aa   :  { %v12773_v17 = vld [vmem:[#allocation1] sm:$0xff]  ;;  %5930 = vmatpush.bf16.msra.mxu0 %v8979_v44  ;;  %5943 = vmatpush.bf16.msra.mxu1 %v8987_v53 }
 0x4ab   :  { %4713 = vst [vmem:[#allocation1] sm:$0xff] %v12692_v23  ;;  %v4629_v42 = vrot.slane %v4628_v15, 3  ;;  %v4640_v63 = vld [vmem:[#allocation1 + $0x23] ss:$4 sm:$0xff]  ;;  %v4698_v46 = vunpack.c.l.b16 %v12773_v17  ;;  %v4699_v49 = vunpack.c.h.b16 %v12773_v17  ;;  %5956 = vmatpush.bf16.msra.mxu2 %v8995_v28 }
 0x4ac   :  { %4645 = vst [vmem:[#allocation1 + $0x20] ss:$4 sm:$0xff] %v4640_v63  ;;  %v8978_v17 = vld [vmem:[%s13182_s5 + $0x160] sm:$0xff] }
 0x4ad   :  { %v4632_v60 = vsel %vm13251_vm4, %v4628_v15, %v4629_v42  ;;  %5868 = vmatpush.bf16.msrb.mxu3 %v8936_v20  ;;  %v8970_v15 = vld [vmem:[%s13182_s5 + $0x120] sm:$0xff] }
 0x4ae   :  { %4634 = vst [vmem:[#allocation5 + $0x4] sm:$0x3] %v4632_v60  ;;  %v8986_v42 = vld [vmem:[%s13182_s5 + $0x1a0] sm:$0xff]  ;;  %5931 = vmatpush.bf16.msra.mxu0 %v8978_v17  ;;  %v8993_v60 = vld [vmem:[%s13182_s5 + $0x1d8] sm:$0xff] }
 0x4af   :  { %5944 = vmatpush.bf16.msra.mxu1 %v8986_v42  ;;  %5957 = vmatpush.bf16.msra.mxu2 %v8994_v35 }
 0x4b1   :  { %5869 = vmatpush.bf16.msrb.mxu3 %v8935_v29 }
 0x4b2   :  { %v4715_v19 = vld [vmem:[#allocation1 + $0x1] ss:$4 sm:$0xff]  ;;  %5932 = vmatpush.bf16.msra.mxu0 %v8977_v55 }
 0x4b3   :  { %4719 = vst [vmem:[#allocation1] ss:$4 sm:$0xff] %v4715_v19  ;;  %v4646_v39 = vld [vmem:[#allocation1 + $0x20] sm:$0xff]  ;;  %5945 = vmatpush.bf16.msra.mxu1 %v8985_v26  ;;  %v8976_v19 = vld [vmem:[%s13182_s5 + $0x150] sm:$0xff]  ;;  %5958 = vmatpush.bf16.msra.mxu2 %v8993_v60 }
 0x4b4   :  { %v4650_v30 = vunpack.c.l.b16 %v4646_v39  ;;  %v4651_v33 = vunpack.c.h.b16 %v4646_v39  ;;  %4695 = vst [vmem:[#allocation1 + $0x20] ss:$4 sm:$0xff] %v4690_v41  ;;  %v8992_v39 = vld [vmem:[%s13182_s5 + $0x1d0] sm:$0xff] }
 0x4b5   :  { %5870 = vmatpush.bf16.msrb.mxu3 %v8934_v4  ;;  %v9004_v26 = vld [vmem:[%s13182_s5 + $0x230] sm:$0xff] }
 0x4b6   :  { %v4652_v14 = vrot.slane %v4650_v30, 7  ;;  %v4654_v21 = vrot.slane %v4651_v33, 7  ;;  %5933 = vmatpush.bf16.msra.mxu0 %v8976_v19  ;;  %v9012_v60 = vld [vmem:[%s13182_s5 + $0x270] sm:$0xff]  ;;  %v9027_v19 = vld [vmem:[%s13182_s5 + $0x2e8] sm:$0xff] }
 0x4b7   :  { %5959 = vmatpush.bf16.msra.mxu2 %v8992_v39 }
 0x4b8   :  { %v4653_v48 = vsel %vm4568_vm11, %v4652_v14, %v4648_v58  ;;  %v4655_v52 = vsel %vm4568_vm11, %v4654_v21, %v4649_v43  ;;  %v8975_v58 = vld [vmem:[%s13182_s5 + $0x148] sm:$0xff] }
 0x4b9   :  { %v4656_v38 = vpack.c.b16 %v4655_v52, %v4653_v48  ;;  %5915 = vmatpush.bf16.msra.mxu3 %v8973_v10  ;;  %v8983_v43 = vld [vmem:[%s13182_s5 + $0x188] sm:$0xff]  ;;  %v8966_v48 = vld [vmem:[%s13182_s5 + $0x100] sm:$0xff] }
 0x4ba   :  { %v12844_v3 = vld [vmem:[#allocation1] sm:$0xff]  ;;  %v8991_v21 = vld [vmem:[%s13182_s5 + $0x1c8] sm:$0xff]  ;;  %5934 = vmatpush.bf16.msra.mxu0 %v8975_v58  ;;  %v9001_v58 = vld [vmem:[%s13182_s5 + $0x218] sm:$0xff] }
 0x4bb   :  { %4741 = vst [vmem:[#allocation1] sm:$0xff] %v12692_v23  ;;  %v4657_v57 = vrot.slane %v4656_v38, 3  ;;  %v4696_v27 = vld [vmem:[#allocation1 + $0x20] sm:$0xff]  ;;  %v4726_v41 = vunpack.c.l.b16 %v12844_v3  ;;  %v4727_v29 = vunpack.c.h.b16 %v12844_v3  ;;  %5960 = vmatpush.bf16.msra.mxu2 %v8991_v21  ;;  %v9025_v21 = vld [vmem:[%s13182_s5 + $0x2d8] sm:$0xff] }
 0x4bc   :  { %v4700_v37 = vunpack.c.l.b16 %v4696_v27  ;;  %v4701_v54 = vunpack.c.h.b16 %v4696_v27  ;;  %4716 = vst [vmem:[#allocation1 + $0x20] sm:$0xff] %v12705_v24  ;;  %v8974_v52 = vld [vmem:[%s13182_s5 + $0x140] sm:$0xff] }
 0x4bd   :  { %v4660_v16 = vsel %vm13253_vm5, %v4656_v38, %v4657_v57  ;;  %5916 = vmatpush.bf16.msra.mxu3 %v8972_v45 }
 0x4be   :  { %4662 = vst [vmem:[#allocation5 + $0x6] sm:$0x3] %v4660_v16  ;;  %v4702_v0 = vrot.slane %v4700_v37, 7  ;;  %v4704_v8 = vrot.slane %v4701_v54, 7  ;;  %5935 = vmatpush.bf16.msra.mxu0 %v8974_v52  ;;  %v8999_v52 = vld [vmem:[%s13182_s5 + $0x208] sm:$0xff] }
 0x4bf   :  { %5961 = vmatpush.bf16.msra.mxu2 %v8990_v13  ;;  %v9023_v13 = vld [vmem:[%s13182_s5 + $0x2c8] sm:$0xff] }
 0x4c0   :  { %v4703_v22 = vsel %vm4568_vm11, %v4702_v0, %v4698_v46  ;;  %v4705_v56 = vsel %vm4568_vm11, %v4704_v8, %v4699_v49 }
 0x4c1   :  { %v4706_v34 = vpack.c.b16 %v4705_v56, %v4703_v22  ;;  %5917 = vmatpush.bf16.msra.mxu3 %v8971_v12 }
 0x4c2   :  { %v4743_v32 = vld [vmem:[#allocation1 + $0x2] ss:$4 sm:$0xff] }
 0x4c3   :  { %4747 = vst [vmem:[#allocation1] ss:$4 sm:$0xff] %v4743_v32  ;;  %v4707_v7 = vrot.slane %v4706_v34, 3  ;;  %v4718_v2 = vld [vmem:[#allocation1 + $0x21] ss:$4 sm:$0xff] }
 0x4c4   :  { %4723 = vst [vmem:[#allocation1 + $0x20] ss:$4 sm:$0xff] %v4718_v2  ;;  %v9005_v32 = vld [vmem:[%s13182_s5 + $0x238] sm:$0xff] }
 0x4c5   :  { %v4710_v63 = vsel %vm13254_vm0, %v4706_v34, %v4707_v7  ;;  %5918 = vmatpush.bf16.msra.mxu3 %v8970_v15  ;;  %v4797_v0 = vld [vmem:[#allocation5] sm:$0xff]  ;;  %v9013_v7 = vld [vmem:[%s13182_s5 + $0x278] sm:$0xff] }
 0x4c6   :  { %4712 = vst [vmem:[#allocation5 + $0x8] sm:$0x3] %v4710_v63  ;;  %v9021_v2 = vld [vmem:[%s13182_s5 + $0x2b8] sm:$0xff] }
 0x4c7   :  { %v9029_v15 = vld [vmem:[%s13182_s5 + $0x2f8] sm:$0xff] }
 0x4c9   :  { %5919 = vmatpush.bf16.msra.mxu3 %v8969_v18 }
 0x4ca   :  { %v4748_v61 = vld [vmem:[#allocation1] sm:$0xff] }
 0x4cb   :  { %4769 = vst [vmem:[#allocation1] sm:$0xff] %v12692_v23  ;;  %v4724_v20 = vld [vmem:[#allocation1 + $0x20] sm:$0xff]  ;;  %v8984_v23 = vld [vmem:[%s13182_s5 + $0x190] sm:$0xff]  ;;  %v4754_v3 = vunpack.c.l.b16 %v4748_v61  ;;  %v4755_v57 = vunpack.c.h.b16 %v4748_v61 }
 0x4cc   :  { %v4728_v36 = vunpack.c.l.b16 %v4724_v20  ;;  %v4729_v6 = vunpack.c.h.b16 %v4724_v20  ;;  %4744 = vst [vmem:[#allocation1 + $0x20] sm:$0xff] %v12705_v24  ;;  %5946 = vmatpush.bf16.msra.mxu1 %v8984_v23  ;;  %v9020_v61 = vld [vmem:[%s13182_s5 + $0x2b0] sm:$0xff] }
 0x4cd   :  { %5920 = vmatpush.bf16.msra.mxu3 %v8968_v9  ;;  %v9028_v20 = vld [vmem:[%s13182_s5 + $0x2f0] sm:$0xff]  ;;  %v9019_v9 = vld [vmem:[%s13182_s5 + $0x2a8] sm:$0xff] }
 0x4ce   :  { %v4730_v47 = vrot.slane %v4728_v36, 7  ;;  %v4732_v30 = vrot.slane %v4729_v6, 7  ;;  %v9003_v36 = vld [vmem:[%s13182_s5 + $0x228] sm:$0xff] }
 0x4cf   :  { %v9011_v6 = vld [vmem:[%s13182_s5 + $0x268] sm:$0xff] }
 0x4d0   :  { %v4731_v33 = vsel %vm4568_vm11, %v4730_v47, %v4726_v41  ;;  %v4733_v51 = vsel %vm4568_vm11, %v4732_v30, %v4727_v29  ;;  %5947 = vmatpush.bf16.msra.mxu1 %v8983_v43  ;;  %v9002_v30 = vld [vmem:[%s13182_s5 + $0x220] sm:$0xff]  ;;  %v9009_v43 = vld [vmem:[%s13182_s5 + $0x258] sm:$0xff] }
 0x4d1   :  { %v4734_v14 = vpack.c.b16 %v4733_v51, %v4731_v33  ;;  %5921 = vmatpush.bf16.msra.mxu3 %v8967_v50  ;;  %v9010_v33 = vld [vmem:[%s13182_s5 + $0x260] sm:$0xff] }
 0x4d2   :  { %v4771_v4 = vld [vmem:[#allocation1 + $0x3] ss:$4 sm:$0xff] }
 0x4d3   :  { %4775 = vst [vmem:[#allocation1] ss:$4 sm:$0xff] %v4771_v4  ;;  %v4735_v62 = vrot.slane %v4734_v14, 3  ;;  %v4746_v25 = vld [vmem:[#allocation1 + $0x22] ss:$4 sm:$0xff] }
 0x4d4   :  { %4751 = vst [vmem:[#allocation1 + $0x20] ss:$4 sm:$0xff] %v4746_v25  ;;  %5948 = vmatpush.bf16.msra.mxu1 %v8982_v5  ;;  %v9018_v51 = vld [vmem:[%s13182_s5 + $0x2a0] sm:$0xff]  ;;  %v9000_v4 = vld [vmem:[%s13182_s5 + $0x210] sm:$0xff]  ;;  %v9007_v5 = vld [vmem:[%s13182_s5 + $0x248] sm:$0xff] }
 0x4d5   :  { %v4738_v10 = vsel %vm13255_vm3, %v4734_v14, %v4735_v62  ;;  %5922 = vmatpush.bf16.msra.mxu3 %v8966_v48  ;;  %v9026_v50 = vld [vmem:[%s13182_s5 + $0x2e0] sm:$0xff]  ;;  %v9017_v14 = vld [vmem:[%s13182_s5 + $0x298] sm:$0xff]  ;;  %v9008_v62 = vld [vmem:[%s13182_s5 + $0x250] sm:$0xff] }
 0x4d6   :  { %4740 = vst [vmem:[#allocation5 + $0xa] sm:$0x3] %v4738_v10  ;;  %v9016_v25 = vld [vmem:[%s13182_s5 + $0x290] sm:$0xff]  ;;  %v9015_v10 = vld [vmem:[%s13182_s5 + $0x288] sm:$0xff] }
 0x4d7   :  { %v9024_v48 = vld [vmem:[%s13182_s5 + $0x2d0] sm:$0xff] }
 0x4da   :  { %v4776_v46 = vld [vmem:[#allocation1] sm:$0xff] }
 0x4db   :  { %v4752_v38 = vld [vmem:[#allocation1 + $0x20] sm:$0xff]  ;;  %v4782_v22 = vunpack.c.l.b16 %v4776_v46  ;;  %v4783_v56 = vunpack.c.h.b16 %v4776_v46  ;;  %v9060_v46 = vld [vmem:[%s13182_s5 + $0x3f0] sm:$0xff] }
 0x4dc   :  { %v4756_v59 = vunpack.c.l.b16 %v4752_v38  ;;  %v4757_v1 = vunpack.c.h.b16 %v4752_v38  ;;  %4772 = vst [vmem:[#allocation1 + $0x20] sm:$0xff] %v12705_v24  ;;  %v8998_v38 = vld [vmem:[%s13182_s5 + $0x200] sm:$0xff] }
 0x4de   :  { %v4758_v27 = vrot.slane %v4756_v59, 7  ;;  %v4760_v37 = vrot.slane %v4757_v1, 7  ;;  %v9006_v59 = vld [vmem:[%s13182_s5 + $0x240] sm:$0xff] }
 0x4df   :  { %v9014_v1 = vld [vmem:[%s13182_s5 + $0x280] sm:$0xff] }
 0x4e0   :  { %v4759_v54 = vsel %vm4568_vm11, %v4758_v27, %v4754_v3  ;;  %v4761_v45 = vsel %vm4568_vm11, %v4760_v37, %v4755_v57  ;;  %v9022_v3 = vld [vmem:[%s13182_s5 + $0x2c0] sm:$0xff]  ;;  %v9037_v57 = vld [vmem:[%s13182_s5 + $0x338] sm:$0xff] }
 0x4e1   :  { %v4762_v11 = vpack.c.b16 %v4761_v45, %v4759_v54  ;;  %v9045_v27 = vld [vmem:[%s13182_s5 + $0x378] sm:$0xff]  ;;  %v9036_v45 = vld [vmem:[%s13182_s5 + $0x330] sm:$0xff] }
 0x4e2   :  { %v9053_v37 = vld [vmem:[%s13182_s5 + $0x3b8] sm:$0xff] }
 0x4e3   :  { %v4763_v40 = vrot.slane %v4762_v11, 3  ;;  %v4774_v16 = vld [vmem:[#allocation1 + $0x23] ss:$4 sm:$0xff] }
 0x4e4   :  { %4779 = vst [vmem:[#allocation1 + $0x20] ss:$4 sm:$0xff] %v4774_v16  ;;  %v9061_v54 = vld [vmem:[%s13182_s5 + $0x3f8] sm:$0xff] }
 0x4e5   :  { %v4766_v31 = vsel %vm13256_vm8, %v4762_v11, %v4763_v40  ;;  %v9044_v11 = vld [vmem:[%s13182_s5 + $0x370] sm:$0xff] }
 0x4e6   :  { %4768 = vst [vmem:[#allocation5 + $0xc] sm:$0x3] %v4766_v31  ;;  %v9052_v40 = vld [vmem:[%s13182_s5 + $0x3b0] sm:$0xff] }
 0x4eb   :  { %v4780_v49 = vld [vmem:[#allocation1 + $0x20] sm:$0xff] }
 0x4ec   :  { %v4784_v8 = vunpack.c.l.b16 %v4780_v49  ;;  %v4785_v24 = vunpack.c.h.b16 %v4780_v49  ;;  %5060 = vst [vmem:[#allocation1] ss:$9 sm:$0xff] %v4797_v0 }
 0x4ee   :  { %v4786_v12 = vrot.slane %v4784_v8, 7  ;;  %v4788_v44 = vrot.slane %v4785_v24, 7  ;;  %v9035_v8 = vld [vmem:[%s13182_s5 + $0x328] sm:$0xff] }
 0x4ef   :  { %v9043_v24 = vld [vmem:[%s13182_s5 + $0x368] sm:$0xff] }
 0x4f0   :  { %v4787_v53 = vsel %vm4568_vm11, %v4786_v12, %v4782_v22  ;;  %v4789_v34 = vsel %vm4568_vm11, %v4788_v44, %v4783_v56  ;;  %v9051_v22 = vld [vmem:[%s13182_s5 + $0x3a8] sm:$0xff]  ;;  %v9034_v12 = vld [vmem:[%s13182_s5 + $0x320] sm:$0xff] }
 0x4f1   :  { %v4790_v28 = vpack.c.b16 %v4789_v34, %v4787_v53  ;;  %v9059_v56 = vld [vmem:[%s13182_s5 + $0x3e8] sm:$0xff]  ;;  %v9042_v44 = vld [vmem:[%s13182_s5 + $0x360] sm:$0xff] }
 0x4f2   :  { %v9050_v53 = vld [vmem:[%s13182_s5 + $0x3a0] sm:$0xff] }
 0x4f3   :  { %v4791_v17 = vrot.slane %v4790_v28, 3  ;;  %v5061_v42 = vld [vmem:[#allocation1] sm:$0xff]  ;;  %v5062_v63 = vld [vmem:[#allocation1 + $0x9] sm:$0xff]  ;;  %v5063_v35 = vld [vmem:[#allocation1 + $0x12] sm:$0xff] }
 0x4f4   :  { %5871 = vmatmul.bf16.vlgmr.msrb.gmra.mxu3 %v5061_v42  ;;  %5884 = vmatmul.bf16.vlgmr.msrb.gmra.mxu0 %v5062_v63  ;;  %v5064_v18 = vld [vmem:[#allocation1 + $0x1b] sm:$0xff]  ;;  %v5065_v23 = vld [vmem:[#allocation1 + $0x24] sm:$0xff]  ;;  %v5066_v39 = vld [vmem:[#allocation1 + $0x2d] sm:$0xff] }
 0x4f5   :  { %v4794_v55 = vsel %vm13257_vm10, %v4790_v28, %v4791_v17  ;;  %5897 = vmatmul.bf16.vlgmr.msrb.gmra.mxu1 %v5063_v35  ;;  %5910 = vmatmul.bf16.vlgmr.msrb.gmra.mxu2 %v5064_v18  ;;  %v5067_v29 = vld [vmem:[#allocation1 + $0x36] sm:$0xff]  ;;  %v5068_v47 = vld [vmem:[#allocation1 + $0x3f] sm:$0xff]  ;;  %v9031_v35 = vld [vmem:[%s13182_s5 + $0x308] sm:$0xff] }
 0x4f6   :  { %4796 = vst [vmem:[#allocation5 + $0xe] sm:$0x3] %v4794_v55  ;;  %5967 = vmatpush.bf16.msrb.mxu3 %v9005_v32  ;;  %5980 = vmatpush.bf16.msrb.mxu0 %v9013_v7  ;;  %v9058_v34 = vld [vmem:[%s13182_s5 + $0x3e0] sm:$0xff]  ;;  %v9033_v28 = vld [vmem:[%s13182_s5 + $0x318] sm:$0xff]  ;;  %v9040_v17 = vld [vmem:[%s13182_s5 + $0x350] sm:$0xff] }
 0x4f7   :  { %5993 = vmatpush.bf16.msrb.mxu1 %v9021_v2  ;;  %6006 = vmatpush.bf16.msrb.mxu2 %v9029_v15  ;;  %v9041_v32 = vld [vmem:[%s13182_s5 + $0x358] sm:$0xff]  ;;  %v9032_v15 = vld [vmem:[%s13182_s5 + $0x310] sm:$0xff]  ;;  %v9039_v18 = vld [vmem:[%s13182_s5 + $0x348] sm:$0xff] }
 0x4f8   :  { %v9049_v7 = vld [vmem:[%s13182_s5 + $0x398] sm:$0xff]  ;;  %v9048_v42 = vld [vmem:[%s13182_s5 + $0x390] sm:$0xff]  ;;  %v9047_v55 = vld [vmem:[%s13182_s5 + $0x388] sm:$0xff] }
 0x4f9   :  { %v9057_v2 = vld [vmem:[%s13182_s5 + $0x3d8] sm:$0xff]  ;;  %v9056_v63 = vld [vmem:[%s13182_s5 + $0x3d0] sm:$0xff] }
 0x4fa   :  { %5968 = vmatpush.bf16.msrb.mxu3 %v9004_v26  ;;  %5981 = vmatpush.bf16.msrb.mxu0 %v9012_v60  ;;  %v9055_v26 = vld [vmem:[%s13182_s5 + $0x3c8] sm:$0xff]  ;;  %v9030_v60 = vld [vmem:[%s13182_s5 + $0x300] sm:$0xff] }
 0x4fb   :  { %5994 = vmatpush.bf16.msrb.mxu1 %v9020_v61  ;;  %6007 = vmatpush.bf16.msrb.mxu2 %v9028_v20  ;;  %v9038_v61 = vld [vmem:[%s13182_s5 + $0x340] sm:$0xff] }
 0x4fc   :  { %v9046_v20 = vld [vmem:[%s13182_s5 + $0x380] sm:$0xff] }
 0x4fd   :  { %v4798_v41 = vld [vmem:[#allocation5 + $0x8] sm:$0xff] }
 0x4fe   :  { %5969 = vmatpush.bf16.msrb.mxu3 %v9003_v36  ;;  %5982 = vmatpush.bf16.msrb.mxu0 %v9011_v6  ;;  %5070 = vst [vmem:[#allocation1] ss:$9 sm:$0xff] %v4798_v41  ;;  %v9054_v36 = vld [vmem:[%s13182_s5 + $0x3c0] sm:$0xff] }
 0x4ff   :  { %5995 = vmatpush.bf16.msrb.mxu1 %v9019_v9  ;;  %6008 = vmatpush.bf16.msrb.mxu2 %v9027_v19 }
 0x502   :  { %5970 = vmatpush.bf16.msrb.mxu3 %v9002_v30  ;;  %5983 = vmatpush.bf16.msrb.mxu0 %v9010_v33 }
 0x503   :  { %5996 = vmatpush.bf16.msrb.mxu1 %v9018_v51  ;;  %6009 = vmatpush.bf16.msrb.mxu2 %v9026_v50 }
 0x504   :  { %5923 = vmatmul.bf16.vlgmr.msra.gmra.mxu3 %v5065_v23  ;;  %5936 = vmatmul.bf16.vlgmr.msra.gmra.mxu0 %v5066_v39 }
 0x505   :  { %5949 = vmatmul.bf16.vlgmr.msra.gmra.mxu1 %v5067_v29  ;;  %5962 = vmatmul.bf16.vlgmr.msra.gmra.mxu2 %v5068_v47  ;;  %v5071_v16 = vld [vmem:[#allocation1] sm:$0xff]  ;;  %v5072_v31 = vld [vmem:[#allocation1 + $0x9] sm:$0xff]  ;;  %v5073_v49 = vld [vmem:[#allocation1 + $0x12] sm:$0xff] }
 0x506   :  { %5971 = vmatpush.bf16.msrb.mxu3 %v9001_v58  ;;  %5984 = vmatpush.bf16.msrb.mxu0 %v9009_v43  ;;  %v5074_v0 = vld [vmem:[#allocation1 + $0x1b] sm:$0xff]  ;;  %v5075_v6 = vld [vmem:[#allocation1 + $0x24] sm:$0xff]  ;;  %v5076_v9 = vld [vmem:[#allocation1 + $0x2d] sm:$0xff] }
 0x507   :  { %5997 = vmatpush.bf16.msrb.mxu1 %v9017_v14  ;;  %6010 = vmatpush.bf16.msrb.mxu2 %v9025_v21  ;;  %v5077_v19 = vld [vmem:[#allocation1 + $0x36] sm:$0xff]  ;;  %v5078_v23 = vld [vmem:[#allocation1 + $0x3f] sm:$0xff] }
 0x508   :  { %v9069_v14 = vld [vmem:[%s13184_s7 + $0x38] sm:$0xff]  ;;  %v9068_v21 = vld [vmem:[%s13184_s7 + $0x30] sm:$0xff] }
 0x50a   :  { %5972 = vmatpush.bf16.msrb.mxu3 %v9000_v4  ;;  %5985 = vmatpush.bf16.msrb.mxu0 %v9008_v62 }
 0x50b   :  { %5998 = vmatpush.bf16.msrb.mxu1 %v9016_v25  ;;  %6011 = vmatpush.bf16.msrb.mxu2 %v9024_v48  ;;  %v9067_v25 = vld [vmem:[%s13184_s7 + $0x28] sm:$0xff]  ;;  %v9076_v48 = vld [vmem:[%s13183_s6] ss:$0 sm:$0xff] }
 0x50e   :  { %5973 = vmatpush.bf16.msrb.mxu3 %v8999_v52  ;;  %5986 = vmatpush.bf16.msrb.mxu0 %v9007_v5 }
 0x50f   :  { %5999 = vmatpush.bf16.msrb.mxu1 %v9015_v10  ;;  %6012 = vmatpush.bf16.msrb.mxu2 %v9023_v13 }
 0x512   :  { %5974 = vmatpush.bf16.msrb.mxu3 %v8998_v38  ;;  %5987 = vmatpush.bf16.msrb.mxu0 %v9006_v59  ;;  %v9066_v38 = vld [vmem:[%s13184_s7 + $0x20] sm:$0xff] }
 0x513   :  { %6000 = vmatpush.bf16.msrb.mxu1 %v9014_v1  ;;  %6013 = vmatpush.bf16.msrb.mxu2 %v9022_v3  ;;  %v9065_v3 = vld [vmem:[%s13184_s7 + $0x18] sm:$0xff] }
 0x515   :  { %5975 = vmatmul.bf16.vlgmr.msrb.gmra.mxu3 %v5071_v16  ;;  %5988 = vmatmul.bf16.vlgmr.msrb.gmra.mxu0 %v5072_v31 }
 0x516   :  { %6019 = vmatpush.bf16.msra.mxu3 %v9037_v57  ;;  %6032 = vmatpush.bf16.msra.mxu0 %v9045_v27 }
 0x517   :  { %6045 = vmatpush.bf16.msra.mxu1 %v9053_v37  ;;  %6058 = vmatpush.bf16.msra.mxu2 %v9061_v54  ;;  %v9064_v54 = vld [vmem:[%s13184_s7 + $0x10] sm:$0xff] }
 0x518   :  { %6001 = vmatmul.bf16.vlgmr.msrb.gmra.mxu1 %v5073_v49  ;;  %6014 = vmatmul.bf16.vlgmr.msrb.gmra.mxu2 %v5074_v0 }
 0x51a   :  { %6020 = vmatpush.bf16.msra.mxu3 %v9036_v45  ;;  %6033 = vmatpush.bf16.msra.mxu0 %v9044_v11 }
 0x51b   :  { %6046 = vmatpush.bf16.msra.mxu1 %v9052_v40  ;;  %6059 = vmatpush.bf16.msra.mxu2 %v9060_v46  ;;  %v9063_v46 = vld [vmem:[%s13184_s7 + $0x8] sm:$0xff] }
 0x51e   :  { %6021 = vmatpush.bf16.msra.mxu3 %v9035_v8  ;;  %6034 = vmatpush.bf16.msra.mxu0 %v9043_v24  ;;  %v9062_v8 = vld [vmem:[%s13184_s7] sm:$0xff] }
 0x51f   :  { %6047 = vmatpush.bf16.msra.mxu1 %v9051_v22  ;;  %6060 = vmatpush.bf16.msra.mxu2 %v9059_v56 }
 0x522   :  { %6022 = vmatpush.bf16.msra.mxu3 %v9034_v12  ;;  %6035 = vmatpush.bf16.msra.mxu0 %v9042_v44 }
 0x523   :  { %6048 = vmatpush.bf16.msra.mxu1 %v9050_v53  ;;  %6061 = vmatpush.bf16.msra.mxu2 %v9058_v34 }
 0x526   :  { %6023 = vmatpush.bf16.msra.mxu3 %v9033_v28  ;;  %6036 = vmatpush.bf16.msra.mxu0 %v9041_v32 }
 0x527   :  { %6049 = vmatpush.bf16.msra.mxu1 %v9049_v7  ;;  %6062 = vmatpush.bf16.msra.mxu2 %v9057_v2 }
 0x52a   :  { %6024 = vmatpush.bf16.msra.mxu3 %v9032_v15  ;;  %6037 = vmatpush.bf16.msra.mxu0 %v9040_v17 }
 0x52b   :  { %6050 = vmatpush.bf16.msra.mxu1 %v9048_v42  ;;  %6063 = vmatpush.bf16.msra.mxu2 %v9056_v63 }
 0x52e   :  { %6025 = vmatpush.bf16.msra.mxu3 %v9031_v35  ;;  %6038 = vmatpush.bf16.msra.mxu0 %v9039_v18 }
 0x52f   :  { %6051 = vmatpush.bf16.msra.mxu1 %v9047_v55  ;;  %6064 = vmatpush.bf16.msra.mxu2 %v9055_v26 }
 0x532   :  { %6026 = vmatpush.bf16.msra.mxu3 %v9030_v60  ;;  %6039 = vmatpush.bf16.msra.mxu0 %v9038_v61 }
 0x533   :  { %6052 = vmatpush.bf16.msra.mxu1 %v9046_v20  ;;  %6065 = vmatpush.bf16.msra.mxu2 %v9054_v36  ;;  %v9077_v36 = vld [vmem:[%s13185_s8] ss:$0 sm:$0xff] }
 0x535   :  { %6027 = vmatmul.bf16.vlgmr.msra.gmra.mxu3 %v5075_v6  ;;  %6040 = vmatmul.bf16.vlgmr.msra.gmra.mxu0 %v5076_v9 }
 0x536   :  { %6053 = vmatmul.bf16.vlgmr.msra.gmra.mxu1 %v5077_v19  ;;  %6066 = vmatmul.bf16.vlgmr.msra.gmra.mxu2 %v5078_v23 }
 0x537   :  { %6141 = vmatpush.bf16.msrb.mxu3 %v9069_v14 }
 0x53b   :  { %6142 = vmatpush.bf16.msrb.mxu3 %v9068_v21 }
 0x53f   :  { %6143 = vmatpush.bf16.msrb.mxu3 %v9067_v25 }
 0x543   :  { %6144 = vmatpush.bf16.msrb.mxu3 %v9066_v38 }
 0x547   :  { %6145 = vmatpush.bf16.msrb.mxu3 %v9065_v3 }
 0x54b   :  { %6146 = vmatpush.bf16.msrb.mxu3 %v9064_v54 }
 0x54f   :  { %6147 = vmatpush.bf16.msrb.mxu3 %v9063_v46 }
 0x553   :  { %6148 = vmatpush.bf16.msrb.mxu3 %v9062_v8 }
 0x571   :  { %v5885_v39 = vpop.f32.mrf.mxu0 }
 0x572   :  { %v5898_v41 = vpop.f32.mrf.mxu1 }
 0x577   :  { %v5872_v29 = vpop.f32.mrf.mxu3 }
 0x578   :  { %v5911_v47 = vpop.f32.mrf.mxu2  ;;  %v5873_v10 = vadd.f32 %v9076_v48, %v5872_v29 }
 0x579   :  { %v5887_v30 = vpop.f32.mrf.mxu0 }
 0x57a   :  { %v5900_v33 = vpop.f32.mrf.mxu1  ;;  %v5886_v1 = vadd.f32 %v5885_v39, %v5873_v10 }
 0x57c   :  { %v5899_v37 = vadd.f32 %v5898_v41, %v5886_v1 }
 0x57e   :  { %v5912_v45 = vadd.f32 %v5911_v47, %v5899_v37 }
 0x57f   :  { %v5874_v51 = vpop.f32.mrf.mxu3 }
 0x580   :  { %v5913_v50 = vpop.f32.mrf.mxu2 }
 0x581   :  { %v5937_v58 = vpop.f32.mrf.mxu0 }
 0x582   :  { %v5950_v43 = vpop.f32.mrf.mxu1 }
 0x587   :  { %v5924_v4 = vpop.f32.mrf.mxu3 }
 0x588   :  { %v5963_v62 = vpop.f32.mrf.mxu2  ;;  %v5925_v16 = vadd.f32 %v5924_v4, %v5912_v45 }
 0x589   :  { %v5939_v52 = vpop.f32.mrf.mxu0 }
 0x58a   :  { %v5952_v5 = vpop.f32.mrf.mxu1  ;;  %v5938_v0 = vadd.f32 %v5937_v58, %v5925_v16 }
 0x58c   :  { %v5951_v56 = vadd.f32 %v5950_v43, %v5938_v0 }
 0x58e   :  { %v5964_v12 = vadd.f32 %v5963_v62, %v5951_v56 }
 0x58f   :  { %v5926_v13 = vpop.f32.mrf.mxu3 }
 0x590   :  { %v5965_v59 = vpop.f32.mrf.mxu2 }
 0x592   :  { %v5989_v57 = vpop.f32.mrf.mxu0 }
 0x595   :  { %v6002_v27 = vpop.f32.mrf.mxu1 }
 0x598   :  { %v5976_v11 = vpop.f32.mrf.mxu3 }
 0x599   :  { %v5977_v44 = vadd.f32 %v5976_v11, %v5964_v12 }
 0x59a   :  { %v5991_v31 = vpop.f32.mrf.mxu0 }
 0x59b   :  { %v6015_v40 = vpop.f32.mrf.mxu2  ;;  %v5990_v53 = vadd.f32 %v5989_v57, %v5977_v44 }
 0x59d   :  { %v6004_v49 = vpop.f32.mrf.mxu1  ;;  %v6003_v28 = vadd.f32 %v6002_v27, %v5990_v53 }
 0x59f   :  { %v6016_v7 = vadd.f32 %v6015_v40, %v6003_v28 }
 0x5a0   :  { %v5978_v24 = vpop.f32.mrf.mxu3 }
 0x5a3   :  { %v6017_v22 = vpop.f32.mrf.mxu2 }
 0x5b2   :  { %v6041_v34 = vpop.f32.mrf.mxu0 }
 0x5b3   :  { %v6054_v32 = vpop.f32.mrf.mxu1 }
 0x5b8   :  { %v6028_v2 = vpop.f32.mrf.mxu3 }
 0x5b9   :  { %v6029_v15 = vadd.f32 %v6028_v2, %v6016_v7  ;;  %v6067_v17 = vpop.f32.mrf.mxu2 }
 0x5ba   :  { %v6043_v42 = vpop.f32.mrf.mxu0 }
 0x5bb   :  { %v6042_v63 = vadd.f32 %v6041_v34, %v6029_v15  ;;  %v6056_v35 = vpop.f32.mrf.mxu1 }
 0x5bd   :  { %v6055_v18 = vadd.f32 %v6054_v32, %v6042_v63 }
 0x5bf   :  { %v6068_v55 = vadd.f32 %v6067_v17, %v6055_v18 }
 0x5c0   :  { %v6030_v26 = vpop.f32.mrf.mxu3 }
 0x5c1   :  { %v6071_v60 = vmax.f32 %v6068_v55, 0.0  ;;  %v6069_v61 = vpop.f32.mrf.mxu2 }
 0x5c3   :  { %v6072_v20 = vpack.c.bf16 %v6071_v60, %v6071_v60 }
 0x5c5   :  { %6149 = vmatmul.bf16.vlgmr.msrb.gmra.mxu3 %v6072_v20 }
 0x648   :  { %v6150_v6 = vpop.f32.mrf.mxu3 }
 0x649   :  { %v6151_v9 = vadd.f32 %v9077_v36, %v6150_v6 }
 0x64b   :  { %6155 = vst.msk [vmem:[#allocation6] sm:$0x3] %vm6154_vm14, %v6151_v9 }
 0x64c   :  { %6166 = dma.vmem_to_hbm [thread:$0]  %s6162_s28, 32, %s6164_s1, [#allocation7]  }
 0x650   :  { %v6152_v19 = vpop.f32.mrf.mxu3 }
 0x651   :  { %9103 = dma.done.wait [#allocation7], 32  }
 0x652   :  { %9104 = vsyncadd [#allocation7], 4294967264 }
 0x653   :  { %6171 = vsyncpa [#allocation7], 1 }

</bundles_post_ra>
